<compile_context>
chip_gen: v5e
topology: v5e:2x2
jax: 0.10.0
libtpu: 0.0.40
codegen_flags: <defaults>
</compile_context>

<pallas_src>
import jax
import jax.numpy as jnp
from jax.experimental import pallas as pl
from jax.experimental.pallas import tpu as pltpu


# ----------------------------------------------------------------------------
# helpers
# ----------------------------------------------------------------------------
def _round_up(n, m):
    return ((n + m - 1) // m) * m


def _im2col(x, kh, kw, stride, pad):
    """x: (B, C, H, W) -> (B*Ho*Wo, C*kh*kw), dtype-preserving."""
    B, C, H, W = x.shape
    Ho = (H + 2 * pad - kh) // stride + 1
    Wo = (W + 2 * pad - kw) // stride + 1
    xp = jnp.pad(x, ((0, 0), (0, 0), (pad, pad), (pad, pad)))
    cols = []
    for i in range(kh):
        for j in range(kw):
            cols.append(xp[:, :, i:i + stride * Ho:stride, j:j + stride * Wo:stride])
    patches = jnp.stack(cols, axis=2)                      # (B, C, kh*kw, Ho, Wo)
    patches = jnp.transpose(patches, (0, 3, 4, 1, 2))      # (B, Ho, Wo, C, kh*kw)
    return patches.reshape(B * Ho * Wo, C * kh * kw), Ho, Wo


# ----------------------------------------------------------------------------
# backbone: conv(3x3, stride 2, pad 1) + ReLU  -> im2col + tiled Pallas matmul
# ----------------------------------------------------------------------------
def _conv_matmul_kernel(a_ref, w_ref, b_ref, o_ref):
    # a: (tm, Kp) bf16, w: (Kp, Cp) bf16, b: (1, Cp) f32, o: (tm, Cp) bf16
    acc = jnp.dot(a_ref[...], w_ref[...], preferred_element_type=jnp.float32)
    acc = acc + b_ref[...]
    o_ref[...] = jnp.maximum(acc, 0.0).astype(o_ref.dtype)


def backbone_forward(x, conv_w, conv_b, tm=256):
    """x: (B, Cin, H, W) -> features (B, Ho*Wo, Cpad) in bf16 (Cpad = Cout
    rounded up to a multiple of 128; padded channels are exactly zero)."""
    B, Cin, H, W = x.shape
    Cout = conv_w.shape[0]

    # im2col in bf16 (halves the HBM bytes of the expanded patch matrix).
    patches, Ho, Wo = _im2col(x.astype(jnp.bfloat16), kh=3, kw=3, stride=2, pad=1)
    M, K = patches.shape

    Kp = _round_up(K, 8)                       # sublane-align the contraction dim
    Cp = _round_up(Cout, 128)                  # lane-dense output stores
    tm = min(tm, _round_up(M, 8))
    Mp = _round_up(M, tm)

    patches = jnp.pad(patches, ((0, Mp - M), (0, Kp - K)))
    w_mat = conv_w.reshape(Cout, K).T                              # (K, Cout)
    w_mat = jnp.pad(w_mat, ((0, Kp - K), (0, Cp - Cout))).astype(jnp.bfloat16)
    b_mat = jnp.pad(conv_b, (0, Cp - Cout)).reshape(1, Cp).astype(jnp.float32)

    grid = (Mp // tm,)
    cost = pl.CostEstimate(
        flops=2 * Mp * Kp * Cp,
        transcendentals=0,
        bytes_accessed=Mp * Kp * 2 + Kp * Cp * 2 + Cp * 4 + Mp * Cp * 2,
    )

    out = pl.pallas_call(
        _conv_matmul_kernel,
        out_shape=jax.ShapeDtypeStruct((Mp, Cp), jnp.bfloat16),
        grid=grid,
        in_specs=[
            pl.BlockSpec((tm, Kp), lambda i: (i, 0)),   # M-tiled patches
            pl.BlockSpec((Kp, Cp), lambda i: (0, 0)),   # weights resident
            pl.BlockSpec((1, Cp), lambda i: (0, 0)),    # bias resident
        ],
        out_specs=pl.BlockSpec((tm, Cp), lambda i: (i, 0)),
        compiler_params=pltpu.CompilerParams(
            dimension_semantics=("parallel",),
            vmem_limit_bytes=32 * 1024 * 1024,          # fits v7x's tighter VMEM
        ),
        cost_estimate=cost,
    )(patches, w_mat, b_mat)

    if Mp != M:
        out = out[:M]
    return out.reshape(B, Ho * Wo, Cp)          # contiguous reshape, no transpose


# ----------------------------------------------------------------------------
# aggregator: MixVPR, one Pallas kernel, grid over batch (parallel)
# ----------------------------------------------------------------------------
def _mixvpr_kernel(x_ref, ln_g_ref, ln_b_ref, w1_ref, b1_ref, w2_ref, b2_ref,
                   wct_ref, bc_ref, wr_ref, br_ref, o_ref):
    # x_ref: (HW, Cp) bf16 for the current batch element; o_ref: (OC, OR) f32
    depth = w1_ref.shape[0]

    # single in-VMEM transpose to (C, HW); kept flat 2D across all mixer blocks
    x = x_ref[...].astype(jnp.float32).T                      # (Cp, HW)

    for d in range(depth):                                    # small static unroll
        g = ln_g_ref[d]                                       # (HW,)
        be = ln_b_ref[d]                                      # (HW,)
        # one-pass LayerNorm statistics over HW (lane reduction)
        mu = jnp.mean(x, axis=-1, keepdims=True)
        var = jnp.mean(x * x, axis=-1, keepdims=True) - mu * mu
        xn = (x - mu) * jax.lax.rsqrt(var + 1e-5) * g + be
        h = jnp.dot(xn.astype(jnp.bfloat16), w1_ref[d],
                    preferred_element_type=jnp.float32) + b1_ref[d]
        h = jnp.maximum(h, 0.0)                               # ReLU
        x = x + jnp.dot(h.astype(jnp.bfloat16), w2_ref[d],
                        preferred_element_type=jnp.float32) + b2_ref[d]

    # channel projection (contract C) then row projection (contract HW),
    # ordered so no transposes are needed: wc^T @ x -> (OC, HW); @ wr -> (OC, OR)
    y = jnp.dot(wct_ref[...], x.astype(jnp.bfloat16),
                preferred_element_type=jnp.float32) + bc_ref[...]     # (OC, HW)
    z = jnp.dot(y.astype(jnp.bfloat16), wr_ref[...],
                preferred_element_type=jnp.float32) + br_ref[...]     # (OC, OR)

    # L2-normalize the flattened (OC*OR) descriptor
    nrm = jnp.sqrt(jnp.sum(z * z))
    o_ref[...] = z / jnp.maximum(nrm, 1e-12)


def aggregator_forward(feat, params):
    """feat: (B, HW, Cpad) bf16 -> descriptor (B, out_channels * out_rows) f32."""
    B, HW, Cp = feat.shape
    C, OC = params['wc'].shape
    OR = params['wr'].shape[1]
    depth = params['w1'].shape[0]

    # weights prepared once in the wrapper: bf16 MXU operands, wc pre-transposed
    # and zero-padded over the padded channels (keeps the padded channels inert).
    wc_t = jnp.pad(params['wc'], ((0, Cp - C), (0, 0))).T.astype(jnp.bfloat16)  # (OC, Cp)
    bc = params['bc'].reshape(OC, 1).astype(jnp.float32)
    wr = params['wr'].astype(jnp.bfloat16)                                      # (HW, OR)
    br = params['br'].reshape(1, OR).astype(jnp.float32)
    w1 = params['w1'].astype(jnp.bfloat16)
    w2 = params['w2'].astype(jnp.bfloat16)

    args = (feat, params['ln_g'], params['ln_b'], w1, params['b1'],
            w2, params['b2'], wc_t, bc, wr, br)

    cost = pl.CostEstimate(
        flops=B * (depth * 2 * (2 * Cp * HW * HW) + 2 * OC * Cp * HW + 2 * OC * HW * OR),
        transcendentals=B * (depth * Cp + 1),
        bytes_accessed=(feat.size * 2
                        + (w1.size + w2.size + wc_t.size + wr.size) * 2
                        + (params['ln_g'].size + params['ln_b'].size
                           + params['b1'].size + params['b2'].size
                           + bc.size + br.size) * 4
                        + B * OC * OR * 4),
    )

    in_specs = [
        pl.BlockSpec((None, HW, Cp), lambda b: (b, 0, 0)),        # per-batch features
        pl.BlockSpec((depth, HW), lambda b: (0, 0)),              # ln_g (resident)
        pl.BlockSpec((depth, HW), lambda b: (0, 0)),              # ln_b
        pl.BlockSpec((depth, HW, HW), lambda b: (0, 0, 0)),       # w1
        pl.BlockSpec((depth, HW), lambda b: (0, 0)),              # b1
        pl.BlockSpec((depth, HW, HW), lambda b: (0, 0, 0)),       # w2
        pl.BlockSpec((depth, HW), lambda b: (0, 0)),              # b2
        pl.BlockSpec((OC, Cp), lambda b: (0, 0)),                 # wc^T (padded)
        pl.BlockSpec((OC, 1), lambda b: (0, 0)),                  # bc
        pl.BlockSpec((HW, OR), lambda b: (0, 0)),                 # wr
        pl.BlockSpec((1, OR), lambda b: (0, 0)),                  # br
    ]

    out = pl.pallas_call(
        _mixvpr_kernel,
        out_shape=jax.ShapeDtypeStruct((B, OC, OR), jnp.float32),
        grid=(B,),
        in_specs=in_specs,
        out_specs=pl.BlockSpec((None, OC, OR), lambda b: (b, 0, 0)),
        compiler_params=pltpu.CompilerParams(
            dimension_semantics=("parallel",),
            vmem_limit_bytes=32 * 1024 * 1024,
        ),
        cost_estimate=cost,
    )(*args)

    return out.reshape(B, OC * OR)


# ----------------------------------------------------------------------------
# MixVPRModel.forward = aggregator(backbone(x))
# ----------------------------------------------------------------------------
@jax.jit
def mixvpr_model_forward(x, conv_w, conv_b, agg_params):
    feat = backbone_forward(x, conv_w, conv_b)
    return aggregator_forward(feat, agg_params)


# ----------------------------------------------------------------------------
# pure-JAX f32 reference (for numerical validation)
# ----------------------------------------------------------------------------
def _reference(x, conv_w, conv_b, p):
    patches, Ho, Wo = _im2col(x, 3, 3, 2, 1)
    cout = conv_w.shape[0]
    feat = jnp.maximum(patches @ conv_w.reshape(cout, -1).T + conv_b, 0.0)
    B = x.shape[0]
    z = jnp.transpose(feat.reshape(B, Ho * Wo, cout), (0, 2, 1))   # (B, C, HW)
    for d in range(p['ln_g'].shape[0]):
        mu = jnp.mean(z, axis=-1, keepdims=True)
        var = jnp.mean((z - mu) ** 2, axis=-1, keepdims=True)
        zn = (z - mu) * jax.lax.rsqrt(var + 1e-5) * p['ln_g'][d] + p['ln_b'][d]
        h = jnp.maximum(jnp.einsum('bch,ho->bco', zn, p['w1'][d]) + p['b1'][d], 0.0)
        z = z + jnp.einsum('bch,ho->bco', h, p['w2'][d]) + p['b2'][d]
    y = jnp.einsum('bhc,co->bho', jnp.transpose(z, (0, 2, 1)), p['wc']) + p['bc']
    w = jnp.einsum('boh,hr->bor', jnp.transpose(y, (0, 2, 1)), p['wr']) + p['br']
    w = w.reshape(B, -1)
    return w / jnp.maximum(jnp.linalg.norm(w, axis=-1, keepdims=True), 1e-12)


# ----------------------------------------------------------------------------
# deterministic parameter construction + demo
# ----------------------------------------------------------------------------
def make_params(key, cin=3, cfeat=32, hw=256, depth=2, out_channels=16, out_rows=4):
    ks = jax.random.split(key, 12)
    n = lambda k, s, fan: (jax.random.normal(k, s, jnp.float32) / jnp.sqrt(fan))
    conv_w = n(ks[0], (cfeat, cin, 3, 3), cin * 9)
    conv_b = n(ks[1], (cfeat,), cfeat)
    agg = {
        'ln_g': jnp.ones((depth, hw), jnp.float32),
        'ln_b': jnp.zeros((depth, hw), jnp.float32),
        # Linear weights stored already transposed: (in, out)
        'w1': n(ks[2], (depth, hw, hw), hw),
        'b1': n(ks[3], (depth, hw), hw),
        'w2': n(ks[4], (depth, hw, hw), hw),
        'b2': n(ks[5], (depth, hw), hw),
        'wc': n(ks[6], (cfeat, out_channels), cfeat),
        'bc': n(ks[7], (out_channels,), cfeat),
        'wr': n(ks[8], (hw, out_rows), hw),
        'br': n(ks[9], (out_rows,), hw),
    }
    return conv_w, conv_b, agg


if __name__ == "__main__":
    key = jax.random.PRNGKey(0)
    kx, kp = jax.random.split(key)

    # NCHW like PyTorch; H=W=32 -> Ho=Wo=16 -> HW=256 (lane-dense aggregator).
    B, CIN, H, W = 2, 3, 32, 32
    x = jax.random.normal(kx, (B, CIN, H, W), jnp.float32)

    HW = (H // 2) * (W // 2)
    conv_w, conv_b, agg_params = make_params(kp, cin=CIN, cfeat=32, hw=HW,
                                             depth=2, out_channels=16, out_rows=4)

    out = mixvpr_model_forward(x, conv_w, conv_b, agg_params)
    out = jax.block_until_ready(out)

    assert out.shape == (B, 16 * 4), out.shape
    assert bool(jnp.all(jnp.isfinite(out)))
    # descriptors are L2-normalized
    norms = jnp.linalg.norm(out, axis=-1)
    assert bool(jnp.all(jnp.abs(norms - 1.0) < 1e-3)), norms

    ref = _reference(x, conv_w, conv_b, agg_params)
    assert bool(jnp.allclose(out, ref, atol=2e-2, rtol=2e-2)), \
        float(jnp.max(jnp.abs(out - ref)))

    print("KERNEL_OK")
</pallas_src>

<mosaic_0001>
module attributes {stable_mosaic.version = 11 : i64} {
  func.func @_conv_matmul_kernel(%arg0: i32, %arg1: memref<256x32xbf16, #tpu.memory_space<vmem>>, %arg2: memref<32x128xbf16, #tpu.memory_space<vmem>>, %arg3: memref<1x128xf32, #tpu.memory_space<vmem>>, %arg4: memref<256x128xbf16, #tpu.memory_space<vmem>>) attributes {dimension_semantics = [#tpu.dimension_semantics<parallel>], iteration_bounds = array<i64: 2>, scalar_prefetch = 0 : i64, scratch_operands = 0 : i64, tpu.core_type = #tpu.core_type<tc>, window_params = [{transform_indices = @transform_0, window_bounds = array<i64: 256, 32>}, {pipeline_mode = #tpu.pipeline_mode<synchronous>, transform_indices = @transform_1, window_bounds = array<i64: 32, 128>}, {pipeline_mode = #tpu.pipeline_mode<synchronous>, transform_indices = @transform_2, window_bounds = array<i64: 1, 128>}, {transform_indices = @transform_3, window_bounds = array<i64: 256, 128>}]} {
    %c0 = arith.constant 0 : index
    %c0_0 = arith.constant 0 : index
    %0 = vector.load %arg1[%c0, %c0_0] : memref<256x32xbf16, #tpu.memory_space<vmem>>, vector<256x32xbf16>
    %c0_1 = arith.constant 0 : index
    %c0_2 = arith.constant 0 : index
    %1 = vector.load %arg2[%c0_1, %c0_2] : memref<32x128xbf16, #tpu.memory_space<vmem>>, vector<32x128xbf16>
    %cst = arith.constant dense<0.000000e+00> : vector<256x128xf32>
    %2 = tpu.matmul %0, %1, %cst {dimension_numbers = #tpu.dot_dimension_numbers<[1], [0], [0], [1], [0, 0, 1, 1], [], []>} : vector<256x32xbf16>, vector<32x128xbf16>, vector<256x128xf32> -> vector<256x128xf32>
    %c0_3 = arith.constant 0 : index
    %c0_4 = arith.constant 0 : index
    %3 = vector.load %arg3[%c0_3, %c0_4] : memref<1x128xf32, #tpu.memory_space<vmem>>, vector<1x128xf32>
    %4 = vector.broadcast %3 : vector<1x128xf32> to vector<256x128xf32>
    %5 = arith.addf %2, %4 : vector<256x128xf32>
    %cst_5 = arith.constant 0.000000e+00 : f32
    %6 = vector.broadcast %cst_5 : f32 to vector<256x128xf32>
    %7 = arith.maximumf %5, %6 : vector<256x128xf32>
    %8 = arith.truncf %7 : vector<256x128xf32> to vector<256x128xbf16>
    %c0_6 = arith.constant 0 : index
    %c0_7 = arith.constant 0 : index
    %9 = vector.load %arg4[%c0_6, %c0_7] : memref<256x128xbf16, #tpu.memory_space<vmem>>, vector<256x128xbf16>
    tpu.vector_store %arg4[%c0_6, %c0_7], %8 {strides = array<i32>} : memref<256x128xbf16, #tpu.memory_space<vmem>>, vector<256x128xbf16>,
    return
  }
  func.func @transform_0(%arg0: i32) -> (i32, i32) {
    %c0_i32 = arith.constant 0 : i32
    %c0_i32_0 = arith.constant 0 : i32
    return %arg0, %c0_i32 : i32, i32
  }
  func.func @transform_1(%arg0: i32) -> (i32, i32) {
    %c0_i32 = arith.constant 0 : i32
    %c0_i32_0 = arith.constant 0 : i32
    %c0_i32_1 = arith.constant 0 : i32
    return %c0_i32, %c0_i32_0 : i32, i32
  }
  func.func @transform_2(%arg0: i32) -> (i32, i32) {
    %c0_i32 = arith.constant 0 : i32
    %c0_i32_0 = arith.constant 0 : i32
    %c0_i32_1 = arith.constant 0 : i32
    return %c0_i32, %c0_i32_0 : i32, i32
  }
  func.func @transform_3(%arg0: i32) -> (i32, i32) {
    %c0_i32 = arith.constant 0 : i32
    %c0_i32_0 = arith.constant 0 : i32
    return %arg0, %c0_i32 : i32, i32
  }
}

module attributes {stable_mosaic.version = 11 : i64} {
  func.func @_mixvpr_kernel(%arg0: i32, %arg1: memref<1x256x128xbf16, #tpu.memory_space<vmem>>, %arg2: memref<2x256xf32, #tpu.memory_space<vmem>>, %arg3: memref<2x256xf32, #tpu.memory_space<vmem>>, %arg4: memref<2x256x256xbf16, #tpu.memory_space<vmem>>, %arg5: memref<2x256xf32, #tpu.memory_space<vmem>>, %arg6: memref<2x256x256xbf16, #tpu.memory_space<vmem>>, %arg7: memref<2x256xf32, #tpu.memory_space<vmem>>, %arg8: memref<16x128xbf16, #tpu.memory_space<vmem>>, %arg9: memref<16x1xf32, #tpu.memory_space<vmem>>, %arg10: memref<256x4xbf16, #tpu.memory_space<vmem>>, %arg11: memref<1x4xf32, #tpu.memory_space<vmem>>, %arg12: memref<1x16x4xf32, #tpu.memory_space<vmem>>) attributes {dimension_semantics = [#tpu.dimension_semantics<parallel>], iteration_bounds = array<i64: 2>, scalar_prefetch = 0 : i64, scratch_operands = 0 : i64, tpu.core_type = #tpu.core_type<tc>, window_params = [{transform_indices = @transform_0, window_bounds = array<i64: 1, 256, 128>}, {pipeline_mode = #tpu.pipeline_mode<synchronous>, transform_indices = @transform_1, window_bounds = array<i64: 2, 256>}, {pipeline_mode = #tpu.pipeline_mode<synchronous>, transform_indices = @transform_2, window_bounds = array<i64: 2, 256>}, {pipeline_mode = #tpu.pipeline_mode<synchronous>, transform_indices = @transform_3, window_bounds = array<i64: 2, 256, 256>}, {pipeline_mode = #tpu.pipeline_mode<synchronous>, transform_indices = @transform_4, window_bounds = array<i64: 2, 256>}, {pipeline_mode = #tpu.pipeline_mode<synchronous>, transform_indices = @transform_5, window_bounds = array<i64: 2, 256, 256>}, {pipeline_mode = #tpu.pipeline_mode<synchronous>, transform_indices = @transform_6, window_bounds = array<i64: 2, 256>}, {pipeline_mode = #tpu.pipeline_mode<synchronous>, transform_indices = @transform_7, window_bounds = array<i64: 16, 128>}, {pipeline_mode = #tpu.pipeline_mode<synchronous>, transform_indices = @transform_8, window_bounds = array<i64: 16, 1>}, {pipeline_mode = #tpu.pipeline_mode<synchronous>, transform_indices = @transform_9, window_bounds = array<i64: 256, 4>}, {pipeline_mode = #tpu.pipeline_mode<synchronous>, transform_indices = @transform_10, window_bounds = array<i64: 1, 4>}, {transform_indices = @transform_11, window_bounds = array<i64: 1, 16, 4>}]} {
    %c0 = arith.constant 0 : index
    %c0_0 = arith.constant 0 : index
    %c0_1 = arith.constant 0 : index
    %0 = vector.load %arg1[%c0, %c0_0, %c0_1] : memref<1x256x128xbf16, #tpu.memory_space<vmem>>, vector<1x256x128xbf16>
    %1 = vector.shape_cast %0 : vector<1x256x128xbf16> to vector<256x128xbf16>
    %2 = arith.extf %1 : vector<256x128xbf16> to vector<256x128xf32>
    %3 = tpu.transpose %2, [1, 0] : vector<256x128xf32> -> vector<128x256xf32>
    %c0_2 = arith.constant 0 : index
    %c0_3 = arith.constant 0 : index
    %4 = vector.load %arg2[%c0_2, %c0_3] : memref<2x256xf32, #tpu.memory_space<vmem>>, vector<1x256xf32>
    %5 = vector.shape_cast %4 : vector<1x256xf32> to vector<256xf32>
    %c0_4 = arith.constant 0 : index
    %c0_5 = arith.constant 0 : index
    %6 = vector.load %arg3[%c0_4, %c0_5] : memref<2x256xf32, #tpu.memory_space<vmem>>, vector<1x256xf32>
    %7 = vector.shape_cast %6 : vector<1x256xf32> to vector<256xf32>
    %cst = arith.constant dense<0.000000e+00> : vector<128xf32>
    %8 = vector.multi_reduction <add>, %3, %cst [1] : vector<128x256xf32> to vector<128xf32>
    %9 = vector.shape_cast %8 : vector<128xf32> to vector<128x1xf32>
    %cst_6 = arith.constant 2.560000e+02 : f32
    %10 = vector.broadcast %cst_6 : f32 to vector<128x1xf32>
    %11 = arith.divf %9, %10 : vector<128x1xf32>
    %12 = arith.mulf %3, %3 : vector<128x256xf32>
    %cst_7 = arith.constant dense<0.000000e+00> : vector<128xf32>
    %13 = vector.multi_reduction <add>, %12, %cst_7 [1] : vector<128x256xf32> to vector<128xf32>
    %14 = vector.shape_cast %13 : vector<128xf32> to vector<128x1xf32>
    %cst_8 = arith.constant 2.560000e+02 : f32
    %15 = vector.broadcast %cst_8 : f32 to vector<128x1xf32>
    %16 = arith.divf %14, %15 : vector<128x1xf32>
    %17 = arith.mulf %11, %11 : vector<128x1xf32>
    %18 = arith.subf %16, %17 : vector<128x1xf32>
    %19 = vector.broadcast %11 : vector<128x1xf32> to vector<128x256xf32>
    %20 = arith.subf %3, %19 : vector<128x256xf32>
    %cst_9 = arith.constant 9.99999974E-6 : f32
    %21 = vector.broadcast %cst_9 : f32 to vector<128x1xf32>
    %22 = arith.addf %18, %21 : vector<128x1xf32>
    %23 = math.rsqrt %22 : vector<128x1xf32>
    %24 = vector.broadcast %23 : vector<128x1xf32> to vector<128x256xf32>
    %25 = arith.mulf %20, %24 : vector<128x256xf32>
    %26 = vector.shape_cast %5 : vector<256xf32> to vector<1x256xf32>
    %27 = vector.broadcast %26 : vector<1x256xf32> to vector<128x256xf32>
    %28 = arith.mulf %25, %27 : vector<128x256xf32>
    %29 = vector.shape_cast %7 : vector<256xf32> to vector<1x256xf32>
    %30 = vector.broadcast %29 : vector<1x256xf32> to vector<128x256xf32>
    %31 = arith.addf %28, %30 : vector<128x256xf32>
    %32 = arith.truncf %31 : vector<128x256xf32> to vector<128x256xbf16>
    %c0_10 = arith.constant 0 : index
    %c0_11 = arith.constant 0 : index
    %c0_12 = arith.constant 0 : index
    %33 = vector.load %arg4[%c0_10, %c0_11, %c0_12] : memref<2x256x256xbf16, #tpu.memory_space<vmem>>, vector<1x256x256xbf16>
    %34 = vector.shape_cast %33 : vector<1x256x256xbf16> to vector<256x256xbf16>
    %cst_13 = arith.constant dense<0.000000e+00> : vector<128x256xf32>
    %35 = tpu.matmul %32, %34, %cst_13 {dimension_numbers = #tpu.dot_dimension_numbers<[1], [0], [0], [1], [0, 0, 1, 1], [], []>} : vector<128x256xbf16>, vector<256x256xbf16>, vector<128x256xf32> -> vector<128x256xf32>
    %c0_14 = arith.constant 0 : index
    %c0_15 = arith.constant 0 : index
    %36 = vector.load %arg5[%c0_14, %c0_15] : memref<2x256xf32, #tpu.memory_space<vmem>>, vector<1x256xf32>
    %37 = vector.shape_cast %36 : vector<1x256xf32> to vector<256xf32>
    %38 = vector.shape_cast %37 : vector<256xf32> to vector<1x256xf32>
    %39 = vector.broadcast %38 : vector<1x256xf32> to vector<128x256xf32>
    %40 = arith.addf %35, %39 : vector<128x256xf32>
    %cst_16 = arith.constant 0.000000e+00 : f32
    %41 = vector.broadcast %cst_16 : f32 to vector<128x256xf32>
    %42 = arith.maximumf %40, %41 : vector<128x256xf32>
    %43 = arith.truncf %42 : vector<128x256xf32> to vector<128x256xbf16>
    %c0_17 = arith.constant 0 : index
    %c0_18 = arith.constant 0 : index
    %c0_19 = arith.constant 0 : index
    %44 = vector.load %arg6[%c0_17, %c0_18, %c0_19] : memref<2x256x256xbf16, #tpu.memory_space<vmem>>, vector<1x256x256xbf16>
    %45 = vector.shape_cast %44 : vector<1x256x256xbf16> to vector<256x256xbf16>
    %cst_20 = arith.constant dense<0.000000e+00> : vector<128x256xf32>
    %46 = tpu.matmul %43, %45, %cst_20 {dimension_numbers = #tpu.dot_dimension_numbers<[1], [0], [0], [1], [0, 0, 1, 1], [], []>} : vector<128x256xbf16>, vector<256x256xbf16>, vector<128x256xf32> -> vector<128x256xf32>
    %47 = arith.addf %3, %46 : vector<128x256xf32>
    %c0_21 = arith.constant 0 : index
    %c0_22 = arith.constant 0 : index
    %48 = vector.load %arg7[%c0_21, %c0_22] : memref<2x256xf32, #tpu.memory_space<vmem>>, vector<1x256xf32>
    %49 = vector.shape_cast %48 : vector<1x256xf32> to vector<256xf32>
    %50 = vector.shape_cast %49 : vector<256xf32> to vector<1x256xf32>
    %51 = vector.broadcast %50 : vector<1x256xf32> to vector<128x256xf32>
    %52 = arith.addf %47, %51 : vector<128x256xf32>
    %c1 = arith.constant 1 : index
    %c0_23 = arith.constant 0 : index
    %53 = vector.load %arg2[%c1, %c0_23] : memref<2x256xf32, #tpu.memory_space<vmem>>, vector<1x256xf32>
    %54 = vector.shape_cast %53 : vector<1x256xf32> to vector<256xf32>
    %c1_24 = arith.constant 1 : index
    %c0_25 = arith.constant 0 : index
    %55 = vector.load %arg3[%c1_24, %c0_25] : memref<2x256xf32, #tpu.memory_space<vmem>>, vector<1x256xf32>
    %56 = vector.shape_cast %55 : vector<1x256xf32> to vector<256xf32>
    %cst_26 = arith.constant dense<0.000000e+00> : vector<128xf32>
    %57 = vector.multi_reduction <add>, %52, %cst_26 [1] : vector<128x256xf32> to vector<128xf32>
    %58 = vector.shape_cast %57 : vector<128xf32> to vector<128x1xf32>
    %cst_27 = arith.constant 2.560000e+02 : f32
    %59 = vector.broadcast %cst_27 : f32 to vector<128x1xf32>
    %60 = arith.divf %58, %59 : vector<128x1xf32>
    %61 = arith.mulf %52, %52 : vector<128x256xf32>
    %cst_28 = arith.constant dense<0.000000e+00> : vector<128xf32>
    %62 = vector.multi_reduction <add>, %61, %cst_28 [1] : vector<128x256xf32> to vector<128xf32>
    %63 = vector.shape_cast %62 : vector<128xf32> to vector<128x1xf32>
    %cst_29 = arith.constant 2.560000e+02 : f32
    %64 = vector.broadcast %cst_29 : f32 to vector<128x1xf32>
    %65 = arith.divf %63, %64 : vector<128x1xf32>
    %66 = arith.mulf %60, %60 : vector<128x1xf32>
    %67 = arith.subf %65, %66 : vector<128x1xf32>
    %68 = vector.broadcast %60 : vector<128x1xf32> to vector<128x256xf32>
    %69 = arith.subf %52, %68 : vector<128x256xf32>
    %cst_30 = arith.constant 9.99999974E-6 : f32
    %70 = vector.broadcast %cst_30 : f32 to vector<128x1xf32>
    %71 = arith.addf %67, %70 : vector<128x1xf32>
    %72 = math.rsqrt %71 : vector<128x1xf32>
    %73 = vector.broadcast %72 : vector<128x1xf32> to vector<128x256xf32>
    %74 = arith.mulf %69, %73 : vector<128x256xf32>
    %75 = vector.shape_cast %54 : vector<256xf32> to vector<1x256xf32>
    %76 = vector.broadcast %75 : vector<1x256xf32> to vector<128x256xf32>
    %77 = arith.mulf %74, %76 : vector<128x256xf32>
    %78 = vector.shape_cast %56 : vector<256xf32> to vector<1x256xf32>
    %79 = vector.broadcast %78 : vector<1x256xf32> to vector<128x256xf32>
    %80 = arith.addf %77, %79 : vector<128x256xf32>
    %81 = arith.truncf %80 : vector<128x256xf32> to vector<128x256xbf16>
    %c1_31 = arith.constant 1 : index
    %c0_32 = arith.constant 0 : index
    %c0_33 = arith.constant 0 : index
    %82 = vector.load %arg4[%c1_31, %c0_32, %c0_33] : memref<2x256x256xbf16, #tpu.memory_space<vmem>>, vector<1x256x256xbf16>
    %83 = vector.shape_cast %82 : vector<1x256x256xbf16> to vector<256x256xbf16>
    %cst_34 = arith.constant dense<0.000000e+00> : vector<128x256xf32>
    %84 = tpu.matmul %81, %83, %cst_34 {dimension_numbers = #tpu.dot_dimension_numbers<[1], [0], [0], [1], [0, 0, 1, 1], [], []>} : vector<128x256xbf16>, vector<256x256xbf16>, vector<128x256xf32> -> vector<128x256xf32>
    %c1_35 = arith.constant 1 : index
    %c0_36 = arith.constant 0 : index
    %85 = vector.load %arg5[%c1_35, %c0_36] : memref<2x256xf32, #tpu.memory_space<vmem>>, vector<1x256xf32>
    %86 = vector.shape_cast %85 : vector<1x256xf32> to vector<256xf32>
    %87 = vector.shape_cast %86 : vector<256xf32> to vector<1x256xf32>
    %88 = vector.broadcast %87 : vector<1x256xf32> to vector<128x256xf32>
    %89 = arith.addf %84, %88 : vector<128x256xf32>
    %cst_37 = arith.constant 0.000000e+00 : f32
    %90 = vector.broadcast %cst_37 : f32 to vector<128x256xf32>
    %91 = arith.maximumf %89, %90 : vector<128x256xf32>
    %92 = arith.truncf %91 : vector<128x256xf32> to vector<128x256xbf16>
    %c1_38 = arith.constant 1 : index
    %c0_39 = arith.constant 0 : index
    %c0_40 = arith.constant 0 : index
    %93 = vector.load %arg6[%c1_38, %c0_39, %c0_40] : memref<2x256x256xbf16, #tpu.memory_space<vmem>>, vector<1x256x256xbf16>
    %94 = vector.shape_cast %93 : vector<1x256x256xbf16> to vector<256x256xbf16>
    %cst_41 = arith.constant dense<0.000000e+00> : vector<128x256xf32>
    %95 = tpu.matmul %92, %94, %cst_41 {dimension_numbers = #tpu.dot_dimension_numbers<[1], [0], [0], [1], [0, 0, 1, 1], [], []>} : vector<128x256xbf16>, vector<256x256xbf16>, vector<128x256xf32> -> vector<128x256xf32>
    %96 = arith.addf %52, %95 : vector<128x256xf32>
    %c1_42 = arith.constant 1 : index
    %c0_43 = arith.constant 0 : index
    %97 = vector.load %arg7[%c1_42, %c0_43] : memref<2x256xf32, #tpu.memory_space<vmem>>, vector<1x256xf32>
    %98 = vector.shape_cast %97 : vector<1x256xf32> to vector<256xf32>
    %99 = vector.shape_cast %98 : vector<256xf32> to vector<1x256xf32>
    %100 = vector.broadcast %99 : vector<1x256xf32> to vector<128x256xf32>
    %101 = arith.addf %96, %100 : vector<128x256xf32>
    %c0_44 = arith.constant 0 : index
    %c0_45 = arith.constant 0 : index
    %102 = vector.load %arg8[%c0_44, %c0_45] : memref<16x128xbf16, #tpu.memory_space<vmem>>, vector<16x128xbf16>
    %103 = arith.truncf %101 : vector<128x256xf32> to vector<128x256xbf16>
    %cst_46 = arith.constant dense<0.000000e+00> : vector<16x256xf32>
    %104 = tpu.matmul %102, %103, %cst_46 {dimension_numbers = #tpu.dot_dimension_numbers<[1], [0], [0], [1], [0, 0, 1, 1], [], []>} : vector<16x128xbf16>, vector<128x256xbf16>, vector<16x256xf32> -> vector<16x256xf32>
    %c0_47 = arith.constant 0 : index
    %c0_48 = arith.constant 0 : index
    %105 = vector.load %arg9[%c0_47, %c0_48] : memref<16x1xf32, #tpu.memory_space<vmem>>, vector<16x1xf32>
    %106 = vector.broadcast %105 : vector<16x1xf32> to vector<16x256xf32>
    %107 = arith.addf %104, %106 : vector<16x256xf32>
    %108 = arith.truncf %107 : vector<16x256xf32> to vector<16x256xbf16>
    %c0_49 = arith.constant 0 : index
    %c0_50 = arith.constant 0 : index
    %109 = vector.load %arg10[%c0_49, %c0_50] : memref<256x4xbf16, #tpu.memory_space<vmem>>, vector<256x4xbf16>
    %cst_51 = arith.constant dense<0.000000e+00> : vector<16x4xf32>
    %110 = tpu.matmul %108, %109, %cst_51 {dimension_numbers = #tpu.dot_dimension_numbers<[1], [0], [0], [1], [0, 0, 1, 1], [], []>} : vector<16x256xbf16>, vector<256x4xbf16>, vector<16x4xf32> -> vector<16x4xf32>
    %c0_52 = arith.constant 0 : index
    %c0_53 = arith.constant 0 : index
    %111 = vector.load %arg11[%c0_52, %c0_53] : memref<1x4xf32, #tpu.memory_space<vmem>>, vector<1x4xf32>
    %112 = vector.broadcast %111 : vector<1x4xf32> to vector<16x4xf32>
    %113 = arith.addf %110, %112 : vector<16x4xf32>
    %114 = arith.mulf %113, %113 : vector<16x4xf32>
    %115 = vector.shape_cast %114 : vector<16x4xf32> to vector<1x16x4xf32>
    %cst_54 = arith.constant dense<0.000000e+00> : vector<1xf32>
    %116 = vector.multi_reduction <add>, %115, %cst_54 [1, 2] : vector<1x16x4xf32> to vector<1xf32>
    %117 = vector.shape_cast %116 : vector<1xf32> to vector<1x1x1xf32>
    %118 = vector.extract %117[0, 0, 0] : f32 from vector<1x1x1xf32>
    %119 = math.sqrt %118 : f32
    %cst_55 = arith.constant 9.99999996E-13 : f32
    %120 = arith.maximumf %119, %cst_55 : f32
    %121 = vector.broadcast %120 : f32 to vector<16x4xf32>
    %122 = arith.divf %113, %121 : vector<16x4xf32>
    %c0_56 = arith.constant 0 : index
    %c0_57 = arith.constant 0 : index
    %c0_58 = arith.constant 0 : index
    %123 = vector.load %arg12[%c0_56, %c0_57, %c0_58] : memref<1x16x4xf32, #tpu.memory_space<vmem>>, vector<1x16x4xf32>
    %124 = vector.shape_cast %123 : vector<1x16x4xf32> to vector<16x4xf32>
    %125 = vector.shape_cast %122 : vector<16x4xf32> to vector<1x16x4xf32>
    tpu.vector_store %arg12[%c0_56, %c0_57, %c0_58], %125 {strides = array<i32>} : memref<1x16x4xf32, #tpu.memory_space<vmem>>, vector<1x16x4xf32>,
    return
  }
  func.func @transform_0(%arg0: i32) -> (i32, i32, i32) {
    %c0_i32 = arith.constant 0 : i32
    %c0_i32_0 = arith.constant 0 : i32
    %c0_i32_1 = arith.constant 0 : i32
    return %arg0, %c0_i32, %c0_i32_0 : i32, i32, i32
  }
  func.func @transform_1(%arg0: i32) -> (i32, i32) {
    %c0_i32 = arith.constant 0 : i32
    %c0_i32_0 = arith.constant 0 : i32
    %c0_i32_1 = arith.constant 0 : i32
    return %c0_i32, %c0_i32_0 : i32, i32
  }
  func.func @transform_2(%arg0: i32) -> (i32, i32) {
    %c0_i32 = arith.constant 0 : i32
    %c0_i32_0 = arith.constant 0 : i32
    %c0_i32_1 = arith.constant 0 : i32
    return %c0_i32, %c0_i32_0 : i32, i32
  }
  func.func @transform_3(%arg0: i32) -> (i32, i32, i32) {
    %c0_i32 = arith.constant 0 : i32
    %c0_i32_0 = arith.constant 0 : i32
    %c0_i32_1 = arith.constant 0 : i32
    %c0_i32_2 = arith.constant 0 : i32
    return %c0_i32, %c0_i32_0, %c0_i32_1 : i32, i32, i32
  }
  func.func @transform_4(%arg0: i32) -> (i32, i32) {
    %c0_i32 = arith.constant 0 : i32
    %c0_i32_0 = arith.constant 0 : i32
    %c0_i32_1 = arith.constant 0 : i32
    return %c0_i32, %c0_i32_0 : i32, i32
  }
  func.func @transform_5(%arg0: i32) -> (i32, i32, i32) {
    %c0_i32 = arith.constant 0 : i32
    %c0_i32_0 = arith.constant 0 : i32
    %c0_i32_1 = arith.constant 0 : i32
    %c0_i32_2 = arith.constant 0 : i32
    return %c0_i32, %c0_i32_0, %c0_i32_1 : i32, i32, i32
  }
  func.func @transform_6(%arg0: i32) -> (i32, i32) {
    %c0_i32 = arith.constant 0 : i32
    %c0_i32_0 = arith.constant 0 : i32
    %c0_i32_1 = arith.constant 0 : i32
    return %c0_i32, %c0_i32_0 : i32, i32
  }
  func.func @transform_7(%arg0: i32) -> (i32, i32) {
    %c0_i32 = arith.constant 0 : i32
    %c0_i32_0 = arith.constant 0 : i32
    %c0_i32_1 = arith.constant 0 : i32
    return %c0_i32, %c0_i32_0 : i32, i32
  }
  func.func @transform_8(%arg0: i32) -> (i32, i32) {
    %c0_i32 = arith.constant 0 : i32
    %c0_i32_0 = arith.constant 0 : i32
    %c0_i32_1 = arith.constant 0 : i32
    return %c0_i32, %c0_i32_0 : i32, i32
  }
  func.func @transform_9(%arg0: i32) -> (i32, i32) {
    %c0_i32 = arith.constant 0 : i32
    %c0_i32_0 = arith.constant 0 : i32
    %c0_i32_1 = arith.constant 0 : i32
    return %c0_i32, %c0_i32_0 : i32, i32
  }
  func.func @transform_10(%arg0: i32) -> (i32, i32) {
    %c0_i32 = arith.constant 0 : i32
    %c0_i32_0 = arith.constant 0 : i32
    %c0_i32_1 = arith.constant 0 : i32
    return %c0_i32, %c0_i32_0 : i32, i32
  }
  func.func @transform_11(%arg0: i32) -> (i32, i32, i32) {
    %c0_i32 = arith.constant 0 : i32
    %c0_i32_0 = arith.constant 0 : i32
    %c0_i32_1 = arith.constant 0 : i32
    return %arg0, %c0_i32, %c0_i32_0 : i32, i32, i32
  }
}

</mosaic_0001>

<bundles_post_ra>
// kernel: mixvpr_model_forward.2
= control target key start
LH: loop header
LB: loop body
LE: loop exit
PB: predicated region body
PF: predicated region fallthrough
CT: control target
= control target key end

     0   :  { %s852_s12 = smov 0   ;;  %s971_s0 = inlined_call_operand.vmem [shape: bf16[512,32], index: 0, kind: input, shape index: {}]   ;;  %s972_s1 = inlined_call_operand.vmem [shape: bf16[32,128], index: 1, kind: input, shape index: {}]   ;;  %s973_s2 = inlined_call_operand.vmem [shape: f32[1,128], index: 2, kind: input, shape index: {}]   ;;  %s974_s3 = inlined_call_operand.vmem [shape: bf16[512,128], index: 3, kind: output, shape index: {}]  }
   0x1 LB: > { %s597_s13 = sadd.s32 4294967295, %s830_s12   ;;  %p601_p0 = scmp.ge.s32.totalorder %s830_s12, 1  ;;  %s830_s12 = sphi %s852_s12, %s13_s12  }
   0x2   : > { %p138_p1 = scmp.lt.s32.totalorder %s830_s12, 3 }
   0x4   : > { %p139_p2 = pnand %p601_p0, %p138_p1 }
   0x5   : > { %s602_s16 = sshll.u32 (!%p139_p2), %s597_s13, 5 }
   0x6   : > { %142 = sbr.rel (%p139_p2) target bundleno = 216 (0xd8), region = 32  ;;  %p163_p3 = scmp.lt.s32.totalorder (!%p139_p2), %s602_s16, 63 }
   0xb   : > { %v713_v0 = vld [vmem:[%s972_s1 + $0x8] sm:$0xff]  ;;  %v712_v1 = vld [vmem:[%s972_s1] sm:$0xff]  ;;  %s976_s16 = smov (!%p163_p3, %s602_s16), 63  ;;  %vm307_vm0 = vcmask 261120  }
   0xc   : > { %362 = vmatpush.bf16.msra.mxu0 %v713_v0  ;;  %809 = vmatpush.bf16.msra.mxu1 %v713_v0  ;;  %s603_s19 = sshll.u32 %s976_s16, 2  ;;  %v911_v20 = vld [vmem:[%s973_s2] ss:$0 sm:$0xff] }
   0xd   : > { %810 = vmatpush.bf16.msra.mxu2 %v713_v0  ;;  %811 = vmatpush.bf16.msra.mxu3 %v713_v0  ;;  %s874_s22 = scalar_lea.vmem %s971_s0, %s603_s19  ;;  %s922_s27 = scalar_lea.vmem %s974_s3, %s603_s19 }
   0xe   : > { %v696_v2 = vld [vmem:[%s874_s22] sm:$0xff]  ;;  %v697_v6 = vld [vmem:[%s874_s22 + $0x8] sm:$0xff]  ;;  %v698_v10 = vld [vmem:[%s874_s22 + $0x10] sm:$0xff] }
   0xf   : > { %v700_v3 = vld [vmem:[%s874_s22 + $0x20] sm:$0xff]  ;;  %v701_v7 = vld [vmem:[%s874_s22 + $0x28] sm:$0xff]  ;;  %v702_v11 = vld [vmem:[%s874_s22 + $0x30] sm:$0xff] }
  0x10   : > { %363 = vmatpush.bf16.msra.mxu0 %v712_v1  ;;  %812 = vmatpush.bf16.msra.mxu1 %v712_v1  ;;  %v704_v4 = vld [vmem:[%s874_s22 + $0x40] sm:$0xff]  ;;  %v705_v8 = vld [vmem:[%s874_s22 + $0x48] sm:$0xff]  ;;  %v706_v12 = vld [vmem:[%s874_s22 + $0x50] sm:$0xff] }
  0x11   : > { %813 = vmatpush.bf16.msra.mxu2 %v712_v1  ;;  %814 = vmatpush.bf16.msra.mxu3 %v712_v1  ;;  %v708_v5 = vld [vmem:[%s874_s22 + $0x60] sm:$0xff]  ;;  %v709_v9 = vld [vmem:[%s874_s22 + $0x68] sm:$0xff]  ;;  %v710_v13 = vld [vmem:[%s874_s22 + $0x70] sm:$0xff] }
  0x12   : > { %v699_v14 = vld [vmem:[%s874_s22 + $0x18] sm:$0xff] }
  0x13   : > { %678 = vmatmul.msk.bf16.vlgmr.msra.gmra.mxu0 %vm307_vm0, %v696_v2  ;;  %682 = vmatmul.msk.bf16.vlgmr.msra.gmra.mxu1 %vm307_vm0, %v700_v3  ;;  %v703_v15 = vld [vmem:[%s874_s22 + $0x38] sm:$0xff] }
  0x14   : > { %686 = vmatmul.msk.bf16.vlgmr.msra.gmra.mxu2 %vm307_vm0, %v704_v4  ;;  %690 = vmatmul.msk.bf16.vlgmr.msra.gmra.mxu3 %vm307_vm0, %v708_v5  ;;  %v707_v16 = vld [vmem:[%s874_s22 + $0x58] sm:$0xff] }
  0x15   : > { %v711_v17 = vld [vmem:[%s874_s22 + $0x78] sm:$0xff] }
  0x23   : > { %679 = vmatmul.msk.bf16.gmra.mxu0 %vm307_vm0, %v697_v6  ;;  %683 = vmatmul.msk.bf16.gmra.mxu1 %vm307_vm0, %v701_v7 }
  0x24   : > { %687 = vmatmul.msk.bf16.gmra.mxu2 %vm307_vm0, %v705_v8  ;;  %691 = vmatmul.msk.bf16.gmra.mxu3 %vm307_vm0, %v709_v9 }
  0x33   : > { %680 = vmatmul.msk.bf16.gmra.mxu0 %vm307_vm0, %v698_v10  ;;  %684 = vmatmul.msk.bf16.gmra.mxu1 %vm307_vm0, %v702_v11 }
  0x34   : > { %688 = vmatmul.msk.bf16.gmra.mxu2 %vm307_vm0, %v706_v12  ;;  %692 = vmatmul.msk.bf16.gmra.mxu3 %vm307_vm0, %v710_v13 }
  0x43   : > { %681 = vmatmul.msk.bf16.gmra.mxu0 %vm307_vm0, %v699_v14  ;;  %685 = vmatmul.msk.bf16.gmra.mxu1 %vm307_vm0, %v703_v15 }
  0x44   : > { %689 = vmatmul.msk.bf16.gmra.mxu2 %vm307_vm0, %v707_v16  ;;  %693 = vmatmul.msk.bf16.gmra.mxu3 %vm307_vm0, %v711_v17 }
  0x90   : > { %v365_v18 = vpop.f32.mrf.mxu0  ;;  %v385_v19 = vpop.f32.mrf.mxu1 }
  0x91   : > { %v366_v21 = vadd.f32 %v911_v20, %v365_v18  ;;  %v386_v22 = vadd.f32 %v911_v20, %v385_v19 }
  0x93   : > { %v445_v29 = vmax.f32 %v366_v21, 0.0  ;;  %v453_v30 = vmax.f32 %v386_v22, 0.0 }
  0x97   : > { %v405_v23 = vpop.f32.mrf.mxu2  ;;  %v425_v24 = vpop.f32.mrf.mxu3 }
  0x98   : > { %v367_v25 = vpop.f32.mrf.mxu0  ;;  %v387_v26 = vpop.f32.mrf.mxu1  ;;  %v406_v35 = vadd.f32 %v911_v20, %v405_v23  ;;  %v426_v36 = vadd.f32 %v911_v20, %v425_v24 }
  0x99   : > { %v368_v27 = vadd.f32 %v911_v20, %v367_v25  ;;  %v388_v28 = vadd.f32 %v911_v20, %v387_v26 }
  0x9a   : > { %v461_v43 = vmax.f32 %v406_v35, 0.0  ;;  %v469_v44 = vmax.f32 %v426_v36, 0.0 }
  0x9b   : > { %v446_v31 = vmax.f32 %v368_v27, 0.0  ;;  %v454_v32 = vmax.f32 %v388_v28, 0.0 }
  0x9d   : > { %v717_v33 = vpack.c.bf16 %v446_v31, %v445_v29  ;;  %v737_v34 = vpack.c.bf16 %v454_v32, %v453_v30 }
  0x9f   : > { %718 = vst [vmem:[%s922_s27] sm:$0xff] %v717_v33   ;;  %v407_v37 = vpop.f32.mrf.mxu2  ;;  %v427_v38 = vpop.f32.mrf.mxu3 }
  0xa0   : > { %797 = vst [vmem:[%s922_s27 + $0x20] sm:$0xff] %v737_v34   ;;  %v408_v39 = vadd.f32 %v911_v20, %v407_v37  ;;  %v428_v40 = vadd.f32 %v911_v20, %v427_v38  ;;  %v370_v41 = vpop.f32.mrf.mxu0  ;;  %v390_v42 = vpop.f32.mrf.mxu1 }
  0xa1   : > { %v371_v49 = vadd.f32 %v911_v20, %v370_v41  ;;  %v391_v50 = vadd.f32 %v911_v20, %v390_v42 }
  0xa2   : > { %v462_v45 = vmax.f32 %v408_v39, 0.0  ;;  %v470_v46 = vmax.f32 %v428_v40, 0.0 }
  0xa3   : > { %v447_v57 = vmax.f32 %v371_v49, 0.0  ;;  %v455_v58 = vmax.f32 %v391_v50, 0.0 }
  0xa4   : > { %v757_v47 = vpack.c.bf16 %v462_v45, %v461_v43  ;;  %v777_v48 = vpack.c.bf16 %v470_v46, %v469_v44 }
  0xa6   : > { %801 = vst [vmem:[%s922_s27 + $0x40] sm:$0xff] %v757_v47  }
  0xa7   : > { %805 = vst [vmem:[%s922_s27 + $0x60] sm:$0xff] %v777_v48   ;;  %v410_v51 = vpop.f32.mrf.mxu2  ;;  %v430_v52 = vpop.f32.mrf.mxu3 }
  0xa8   : > { %v372_v53 = vpop.f32.mrf.mxu0  ;;  %v392_v54 = vpop.f32.mrf.mxu1  ;;  %v411_v63 = vadd.f32 %v911_v20, %v410_v51  ;;  %v431_v0 = vadd.f32 %v911_v20, %v430_v52 }
  0xa9   : > { %v373_v55 = vadd.f32 %v911_v20, %v372_v53  ;;  %v393_v56 = vadd.f32 %v911_v20, %v392_v54 }
  0xaa   : > { %v463_v7 = vmax.f32 %v411_v63, 0.0  ;;  %v471_v8 = vmax.f32 %v431_v0, 0.0 }
  0xab   : > { %v448_v59 = vmax.f32 %v373_v55, 0.0  ;;  %v456_v60 = vmax.f32 %v393_v56, 0.0 }
  0xad   : > { %v722_v61 = vpack.c.bf16 %v448_v59, %v447_v57  ;;  %v742_v62 = vpack.c.bf16 %v456_v60, %v455_v58 }
  0xaf   : > { %794 = vst [vmem:[%s922_s27 + $0x8] sm:$0xff] %v722_v61   ;;  %v412_v1 = vpop.f32.mrf.mxu2  ;;  %v432_v2 = vpop.f32.mrf.mxu3 }
  0xb0   : > { %798 = vst [vmem:[%s922_s27 + $0x28] sm:$0xff] %v742_v62   ;;  %v413_v3 = vadd.f32 %v911_v20, %v412_v1  ;;  %v433_v4 = vadd.f32 %v911_v20, %v432_v2  ;;  %v375_v5 = vpop.f32.mrf.mxu0  ;;  %v395_v6 = vpop.f32.mrf.mxu1 }
  0xb1   : > { %v376_v13 = vadd.f32 %v911_v20, %v375_v5  ;;  %v396_v14 = vadd.f32 %v911_v20, %v395_v6 }
  0xb2   : > { %v464_v9 = vmax.f32 %v413_v3, 0.0  ;;  %v472_v10 = vmax.f32 %v433_v4, 0.0 }
  0xb3   : > { %v449_v22 = vmax.f32 %v376_v13, 0.0  ;;  %v457_v23 = vmax.f32 %v396_v14, 0.0 }
  0xb4   : > { %v762_v11 = vpack.c.bf16 %v464_v9, %v463_v7  ;;  %v782_v12 = vpack.c.bf16 %v472_v10, %v471_v8 }
  0xb6   : > { %802 = vst [vmem:[%s922_s27 + $0x48] sm:$0xff] %v762_v11  }
  0xb7   : > { %806 = vst [vmem:[%s922_s27 + $0x68] sm:$0xff] %v782_v12   ;;  %v415_v15 = vpop.f32.mrf.mxu2  ;;  %v435_v16 = vpop.f32.mrf.mxu3 }
  0xb8   : > { %v377_v17 = vpop.f32.mrf.mxu0  ;;  %v397_v18 = vpop.f32.mrf.mxu1  ;;  %v416_v28 = vadd.f32 %v911_v20, %v415_v15  ;;  %v436_v29 = vadd.f32 %v911_v20, %v435_v16 }
  0xb9   : > { %v378_v19 = vadd.f32 %v911_v20, %v377_v17  ;;  %v398_v21 = vadd.f32 %v911_v20, %v397_v18 }
  0xba   : > { %v465_v36 = vmax.f32 %v416_v28, 0.0  ;;  %v473_v37 = vmax.f32 %v436_v29, 0.0 }
  0xbb   : > { %v450_v24 = vmax.f32 %v378_v19, 0.0  ;;  %v458_v25 = vmax.f32 %v398_v21, 0.0 }
  0xbd   : > { %v727_v26 = vpack.c.bf16 %v450_v24, %v449_v22  ;;  %v747_v27 = vpack.c.bf16 %v458_v25, %v457_v23 }
  0xbf   : > { %795 = vst [vmem:[%s922_s27 + $0x10] sm:$0xff] %v727_v26   ;;  %v417_v30 = vpop.f32.mrf.mxu2  ;;  %v437_v31 = vpop.f32.mrf.mxu3 }
  0xc0   : > { %799 = vst [vmem:[%s922_s27 + $0x30] sm:$0xff] %v747_v27   ;;  %v418_v32 = vadd.f32 %v911_v20, %v417_v30  ;;  %v438_v33 = vadd.f32 %v911_v20, %v437_v31  ;;  %v380_v34 = vpop.f32.mrf.mxu0  ;;  %v400_v35 = vpop.f32.mrf.mxu1 }
  0xc1   : > { %v381_v42 = vadd.f32 %v911_v20, %v380_v34  ;;  %v401_v43 = vadd.f32 %v911_v20, %v400_v35 }
  0xc2   : > { %v466_v38 = vmax.f32 %v418_v32, 0.0  ;;  %v474_v39 = vmax.f32 %v438_v33, 0.0 }
  0xc3   : > { %v451_v50 = vmax.f32 %v381_v42, 0.0  ;;  %v459_v51 = vmax.f32 %v401_v43, 0.0 }
  0xc4   : > { %v767_v40 = vpack.c.bf16 %v466_v38, %v465_v36  ;;  %v787_v41 = vpack.c.bf16 %v474_v39, %v473_v37 }
  0xc6   : > { %803 = vst [vmem:[%s922_s27 + $0x50] sm:$0xff] %v767_v40  }
  0xc7   : > { %807 = vst [vmem:[%s922_s27 + $0x70] sm:$0xff] %v787_v41   ;;  %v420_v44 = vpop.f32.mrf.mxu2  ;;  %v440_v45 = vpop.f32.mrf.mxu3 }
  0xc8   : > { %v382_v46 = vpop.f32.mrf.mxu0  ;;  %v402_v47 = vpop.f32.mrf.mxu1  ;;  %v421_v56 = vadd.f32 %v911_v20, %v420_v44  ;;  %v441_v57 = vadd.f32 %v911_v20, %v440_v45 }
  0xc9   : > { %v383_v48 = vadd.f32 %v911_v20, %v382_v46  ;;  %v403_v49 = vadd.f32 %v911_v20, %v402_v47 }
  0xca   : > { %v467_v62 = vmax.f32 %v421_v56, 0.0  ;;  %v475_v63 = vmax.f32 %v441_v57, 0.0 }
  0xcb   : > { %v452_v52 = vmax.f32 %v383_v48, 0.0  ;;  %v460_v53 = vmax.f32 %v403_v49, 0.0 }
  0xcd   : > { %v732_v54 = vpack.c.bf16 %v452_v52, %v451_v50  ;;  %v752_v55 = vpack.c.bf16 %v460_v53, %v459_v51 }
  0xcf   : > { %796 = vst [vmem:[%s922_s27 + $0x18] sm:$0xff] %v732_v54   ;;  %v422_v58 = vpop.f32.mrf.mxu2  ;;  %v442_v59 = vpop.f32.mrf.mxu3 }
  0xd0   : > { %800 = vst [vmem:[%s922_s27 + $0x38] sm:$0xff] %v752_v55   ;;  %v423_v60 = vadd.f32 %v911_v20, %v422_v58  ;;  %v443_v61 = vadd.f32 %v911_v20, %v442_v59 }
  0xd2   : > { %v468_v0 = vmax.f32 %v423_v60, 0.0  ;;  %v476_v1 = vmax.f32 %v443_v61, 0.0 }
  0xd4   : > { %v772_v2 = vpack.c.bf16 %v468_v0, %v467_v62  ;;  %v792_v3 = vpack.c.bf16 %v476_v1, %v475_v63 }
  0xd6   : > { %804 = vst [vmem:[%s922_s27 + $0x58] sm:$0xff] %v772_v2  }
  0xd7   : > { %808 = vst [vmem:[%s922_s27 + $0x78] sm:$0xff] %v792_v3  }
  0xd8 PF: > { %s13_s12 = sadd.s32 1, %s830_s12  }
  0xd9   : > { %p10_p4 = scmp.ge.s32.totalorder %s13_s12, 4  }
  0xdb   :  { %12 = sbr.rel (!%p10_p4) target bundleno = 1 (0x1), region = 62 }

// kernel: mixvpr_model_forward.3
= control target key start
LH: loop header
LB: loop body
LE: loop exit
PB: predicated region body
PF: predicated region fallthrough
CT: control target
= control target key end

     0   :  { %s4807_s17 = smov 0   ;;  %s6966_s0 = inlined_call_operand.vmem [shape: bf16[2,256,128], index: 0, kind: input, shape index: {}]   ;;  %s6967_s1 = inlined_call_operand.vmem [shape: f32[2,256], index: 1, kind: input, shape index: {}]   ;;  %s6968_s2 = inlined_call_operand.vmem [shape: f32[2,256], index: 2, kind: input, shape index: {}]   ;;  %s6969_s3 = inlined_call_operand.vmem [shape: bf16[2,256,256], index: 3, kind: input, shape index: {}]   ;;  %s6970_s4 = inlined_call_operand.vmem [shape: f32[2,256], index: 4, kind: input, shape index: {}]   ;;  %s6971_s5 = inlined_call_operand.vmem [shape: bf16[2,256,256], index: 5, kind: input, shape index: {}]   ;;  %s6972_s6 = inlined_call_operand.vmem [shape: f32[2,256], index: 6, kind: input, shape index: {}]   ;;  %s6973_s7 = inlined_call_operand.vmem [shape: bf16[16,128], index: 7, kind: input, shape index: {}]   ;;  %s6974_s8 = inlined_call_operand.vmem [shape: f32[16,1], index: 8, kind: input, shape index: {}]   ;;  %s6975_s9 = inlined_call_operand.vmem [shape: bf16[256,4], index: 9, kind: input, shape index: {}]   ;;  %s6976_s10 = inlined_call_operand.vmem [shape: f32[1,4], index: 10, kind: input, shape index: {}]   ;;  %s6977_s11 = inlined_call_operand.vmem [shape: f32[2,16,4], index: 11, kind: output, shape index: {}]  }
   0x1 LB: > { %s3706_s18 = sadd.s32 4294967295, %s4742_s17   ;;  %p3710_p0 = scmp.ge.s32.totalorder %s4742_s17, 1  ;;  %s4742_s17 = sphi %s4807_s17, %s21_s17  }
   0x2   : > { %p337_p1 = scmp.lt.s32.totalorder %s4742_s17, 3 }
   0x4   : > { %p338_p2 = pnand %p3710_p0, %p337_p1 }
   0x6   : > { %341 = sbr.rel (%p338_p2) target bundleno = 1811 (0x713), region = 64 }
   0xb   : > { %p377_p3 = scmp.lt.s32.totalorder %s3706_s18, 1  ;;  %s4746_s13 = smov 1e-12  }
   0xd   : > { %s7030_s18 = smov (!%p377_p3, %s3706_s18), 1 }
   0xe   : > { %s4365_s19 = sshll.u32 %s7030_s18, 7  ;;  %s4366_s15 = sshll.u32 %s7030_s18, 4 }
   0xf   : > { %s381_s22 = scalar_lea.vmem %s6966_s0, %s4365_s19  ;;  %s386_s20 = scalar_lea.vmem %s6977_s11, %s4366_s15 }
  0x10   : > { %v4513_v0 = vld [vmem:[%s381_s22] sm:$0xff]   ;;  %v4576_v2 = vld [vmem:[%s381_s22 + $0x8] sm:$0xff]   ;;  %v4577_v4 = vld [vmem:[%s381_s22 + $0x10] sm:$0xff]  }
  0x11   : > { %v4583_v1 = vld [vmem:[%s381_s22 + $0x40] sm:$0xff]   ;;  %v4584_v3 = vld [vmem:[%s381_s22 + $0x48] sm:$0xff]   ;;  %v4585_v5 = vld [vmem:[%s381_s22 + $0x50] sm:$0xff]  }
  0x12   : > { %4606 = vxpose.binary.xlu0.c.b16.start [1/16] %v4583_v1, %v4513_v0, 128  ;;  %v4578_v6 = vld [vmem:[%s381_s22 + $0x18] sm:$0xff]   ;;  %v4579_v8 = vld [vmem:[%s381_s22 + $0x20] sm:$0xff]   ;;  %v4580_v10 = vld [vmem:[%s381_s22 + $0x28] sm:$0xff]  }
  0x13   : > { %v4586_v7 = vld [vmem:[%s381_s22 + $0x58] sm:$0xff]   ;;  %v4587_v9 = vld [vmem:[%s381_s22 + $0x60] sm:$0xff]   ;;  %v4588_v11 = vld [vmem:[%s381_s22 + $0x68] sm:$0xff]  }
  0x14   : > { %v4581_v12 = vld [vmem:[%s381_s22 + $0x30] sm:$0xff]   ;;  %v4582_v14 = vld [vmem:[%s381_s22 + $0x38] sm:$0xff]  }
  0x15   : > { %v4589_v13 = vld [vmem:[%s381_s22 + $0x70] sm:$0xff]   ;;  %v4590_v15 = vld [vmem:[%s381_s22 + $0x78] sm:$0xff]  }
  0x22   : > { %4607 = vxpose.binary.xlu0.c.b16.cont [2/16] %v4584_v3, %v4576_v2, 128 }
  0x32   : > { %4608 = vxpose.binary.xlu0.c.b16.cont [3/16] %v4585_v5, %v4577_v4, 128 }
  0x42   : > { %4609 = vxpose.binary.xlu0.c.b16.cont [4/16] %v4586_v7, %v4578_v6, 128 }
  0x52   : > { %4610 = vxpose.binary.xlu0.c.b16.cont [5/16] %v4587_v9, %v4579_v8, 128 }
  0x62   : > { %4611 = vxpose.binary.xlu0.c.b16.cont [6/16] %v4588_v11, %v4580_v10, 128 }
  0x72   : > { %4612 = vxpose.binary.xlu0.c.b16.cont [7/16] %v4589_v13, %v4581_v12, 128 }
  0x82   : > { %4613 = vxpose.binary.xlu0.c.b16.end [8/16] %v4590_v15, %v4582_v14, 128 }
  0xbe   : > { %v4614_v16 = vpop.trf.xlu0 }
  0xbf   : > { %v4821_v17 = vunpack.c.l.bf16 %v4614_v16  ;;  %v4833_v25 = vunpack.c.h.bf16 %v4614_v16 }
  0xc1   : > { %v588_v21 = vmul.f32 %v4821_v17, %v4821_v17  ;;  %6992 = vst [vmem:[#allocation3_spill] sm:$0xff] %v4833_v25  ;;  %v590_v29 = vmul.f32 %v4833_v25, %v4833_v25 }
  0xc6   : > { %v4615_v18 = vpop.trf.xlu0 }
  0xc7   : > { %v4823_v19 = vunpack.c.l.bf16 %v4615_v18  ;;  %v4831_v23 = vunpack.c.h.bf16 %v4615_v18 }
  0xc9   : > { %v517_v20 = vadd.f32 %v4823_v19, %v4821_v17  ;;  %v589_v22 = vmul.f32 %v4823_v19, %v4823_v19  ;;  %6991 = vst [vmem:[#allocation2_spill] sm:$0xff] %v4831_v23  ;;  %v591_v27 = vmul.f32 %v4831_v23, %v4831_v23  ;;  %v520_v28 = vadd.f32 %v4831_v23, %v4833_v25 }
  0xcb   : > { %518 = vadd.xlane.f32.xlu1 %v517_v20  ;;  %v620_v24 = vadd.f32 %v589_v22, %v588_v21  ;;  %v623_v30 = vadd.f32 %v591_v27, %v590_v29 }
  0xcd   : > { %621 = vadd.xlane.f32.xlu2 %v620_v24 }
  0xce   : > { %v4620_v26 = vpop.trf.xlu0 }
  0xcf   : > { %v4841_v32 = vunpack.c.l.bf16 %v4620_v26  ;;  %v4847_v35 = vunpack.c.h.bf16 %v4620_v26 }
  0xd1   : > { %v592_v40 = vmul.f32 %v4841_v32, %v4841_v32  ;;  %v594_v43 = vmul.f32 %v4847_v35, %v4847_v35 }
  0xd3   : > { %521 = vadd.xlane.f32.xlu1 %v520_v28 }
  0xd5   : > { %624 = vadd.xlane.f32.xlu2 %v623_v30 }
  0xd6   : > { %v4621_v31 = vpop.trf.xlu0 }
  0xd7   : > { %v4843_v33 = vunpack.c.h.bf16 %v4621_v31  ;;  %v4845_v34 = vunpack.c.l.bf16 %v4621_v31 }
  0xd9   : > { %v523_v36 = vadd.f32 %v4845_v34, %v4841_v32  ;;  %v526_v37 = vadd.f32 %v4843_v33, %v4847_v35  ;;  %v593_v38 = vmul.f32 %v4845_v34, %v4845_v34  ;;  %v595_v41 = vmul.f32 %v4843_v33, %v4843_v33 }
  0xdb   : > { %524 = vadd.xlane.f32.xlu1 %v523_v36  ;;  %v626_v42 = vadd.f32 %v593_v38, %v592_v40  ;;  %v629_v44 = vadd.f32 %v595_v41, %v594_v43 }
  0xdd   : > { %527 = vadd.xlane.f32.xlu2 %v526_v37 }
  0xde   : > { %v4626_v39 = vpop.trf.xlu0 }
  0xdf   : > { %v4861_v46 = vunpack.c.l.bf16 %v4626_v39  ;;  %v4867_v49 = vunpack.c.h.bf16 %v4626_v39 }
  0xe1   : > { %v596_v54 = vmul.f32 %v4861_v46, %v4861_v46  ;;  %v598_v57 = vmul.f32 %v4867_v49, %v4867_v49 }
  0xe3   : > { %627 = vadd.xlane.f32.xlu1 %v626_v42 }
  0xe5   : > { %630 = vadd.xlane.f32.xlu2 %v629_v44  ;;  %v4744_v44 = vmov 256.0  }
  0xe6   : > { %v4627_v45 = vpop.trf.xlu0  ;;  %4666 = vrcp.f32 %v4744_v44  ;;  %v3757_v44 = vld [vmem:[%s6969_s3 + $0x50] sm:$0xf] }
  0xe7   : > { %v4863_v47 = vunpack.c.h.bf16 %v4627_v45  ;;  %v4865_v48 = vunpack.c.l.bf16 %v4627_v45 }
  0xe9   : > { %v529_v50 = vadd.f32 %v4865_v48, %v4861_v46  ;;  %v532_v51 = vadd.f32 %v4863_v47, %v4867_v49  ;;  %v597_v52 = vmul.f32 %v4865_v48, %v4865_v48  ;;  %v599_v55 = vmul.f32 %v4863_v47, %v4863_v47 }
  0xeb   : > { %530 = vadd.xlane.f32.xlu1 %v529_v50  ;;  %v632_v56 = vadd.f32 %v597_v52, %v596_v54  ;;  %v635_v58 = vadd.f32 %v599_v55, %v598_v57  ;;  %v3773_v55 = vld [vmem:[%s6969_s3 + $0x70] sm:$0xf] }
  0xec   : > { %v3837_v57 = vld [vmem:[%s6969_s3 + $0xf0] sm:$0xf] }
  0xed   : > { %533 = vadd.xlane.f32.xlu2 %v532_v51  ;;  %v4941_v51 = vpop.eup %4666 }
  0xee   : > { %v4632_v53 = vpop.trf.xlu0  ;;  %vm570_vm0 = vweird.f32 %v4941_v51 }
  0xef   : > { %v4881_v60 = vunpack.c.l.bf16 %v4632_v53  ;;  %v4887_v63 = vunpack.c.h.bf16 %v4632_v53 }
  0xf1   : > { %v600_v4 = vmul.f32 %v4881_v60, %v4881_v60  ;;  %v602_v7 = vmul.f32 %v4887_v63, %v4887_v63 }
  0xf3   : > { %633 = vadd.xlane.f32.xlu1 %v632_v56  ;;  %v4382_v56 = vld [vmem:[%s6969_s3 + $0x74] sm:$0xf0] }
  0xf5   : > { %636 = vadd.xlane.f32.xlu2 %v635_v58  ;;  %v3774_v58 = vor.u32 %v4382_v56, %v3773_v55  ;;  %v4394_v56 = vld [vmem:[%s6969_s3 + $0xd4] sm:$0xf0] }
  0xf6   : > { %v4633_v59 = vpop.trf.xlu0 }
  0xf7   : > { %v4883_v61 = vunpack.c.h.bf16 %v4633_v59  ;;  %v4885_v62 = vunpack.c.l.bf16 %v4633_v59  ;;  %v4398_v59 = vld [vmem:[%s6969_s3 + $0xf4] sm:$0xf0]  ;;  %1244 = vmatpush.bf16.msra.mxu0 %v3774_v58  ;;  %v3759_v58 = vld [vmem:[%s6969_s3 + $0x58] sm:$0xf0] }
  0xf9   : > { %v535_v0 = vadd.f32 %v4885_v62, %v4881_v60  ;;  %v538_v1 = vadd.f32 %v4883_v61, %v4887_v63  ;;  %v601_v2 = vmul.f32 %v4885_v62, %v4885_v62  ;;  %v603_v5 = vmul.f32 %v4883_v61, %v4883_v61 }
  0xfb   : > { %536 = vadd.xlane.f32.xlu1 %v535_v0  ;;  %v638_v6 = vadd.f32 %v601_v2, %v600_v4  ;;  %v641_v8 = vadd.f32 %v603_v5, %v602_v7  ;;  %v4381_v0 = vld [vmem:[%s6969_s3 + $0x74] sm:$0xf]  ;;  %v3839_v5 = vld [vmem:[%s6969_s3 + $0xf8] sm:$0xf0]  ;;  %v3838_v7 = vor.u32 %v4398_v59, %v3837_v57 }
  0xfc   : > { %v4397_v4 = vld [vmem:[%s6969_s3 + $0xf4] sm:$0xf] }
  0xfd   : > { %539 = vadd.xlane.f32.xlu2 %v538_v1  ;;  %v3775_v1 = vld [vmem:[%s6969_s3 + $0x78] sm:$0xf0]  ;;  %1293 = vmatpush.bf16.msra.mxu1 %v3838_v7  ;;  %v4377_v57 = vld [vmem:[%s6969_s3 + $0x54] sm:$0xf] }
  0xfe   : > { %v4638_v3 = vpop.trf.xlu0 }
  0xff   : > { %v4901_v10 = vunpack.c.l.bf16 %v4638_v3  ;;  %v4907_v13 = vunpack.c.h.bf16 %v4638_v3 }
 0x101   : > { %v604_v20 = vmul.f32 %v4901_v10, %v4901_v10  ;;  %v606_v24 = vmul.f32 %v4907_v13, %v4907_v13 }
 0x103   : > { %639 = vadd.xlane.f32.xlu1 %v638_v6  ;;  %v566_v6 = vmul.f32 256.0, %v4941_v51 }
 0x105   : > { %642 = vadd.xlane.f32.xlu2 %v641_v8  ;;  %v3778_v8 = vor.u32 %v4381_v0, %v3775_v1 }
 0x106   : > { %v4639_v9 = vpop.trf.xlu0 }
 0x107   : > { %v4903_v11 = vunpack.c.h.bf16 %v4639_v9  ;;  %v4905_v12 = vunpack.c.l.bf16 %v4639_v9  ;;  %v3842_v9 = vor.u32 %v4397_v4, %v3839_v5  ;;  %1342 = vmatpush.bf16.msra.mxu2 %v3778_v8  ;;  %v4393_v4 = vld [vmem:[%s6969_s3 + $0xd4] sm:$0xf]  ;;  %v3823_v5 = vld [vmem:[%s6969_s3 + $0xd8] sm:$0xf0]  ;;  %v3749_v8 = vld [vmem:[%s6969_s3 + $0x40] sm:$0xf] }
 0x109   : > { %v541_v14 = vadd.f32 %v4905_v12, %v4901_v10  ;;  %v544_v15 = vadd.f32 %v4903_v11, %v4907_v13  ;;  %v605_v16 = vmul.f32 %v4905_v12, %v4905_v12  ;;  %v607_v21 = vmul.f32 %v4903_v11, %v4903_v11  ;;  %1391 = vmatpush.bf16.msra.mxu3 %v3842_v9  ;;  %v4376_v9 = vld [vmem:[%s6969_s3 + $0x44] sm:$0xf0] }
 0x10b   : > { %542 = vadd.xlane.f32.xlu1 %v541_v14  ;;  %v644_v22 = vadd.f32 %v605_v16, %v604_v20  ;;  %v647_v26 = vadd.f32 %v607_v21, %v606_v24  ;;  %v4380_v16 = vld [vmem:[%s6969_s3 + $0x64] sm:$0xf0]  ;;  %v3767_v24 = vld [vmem:[%s6969_s3 + $0x68] sm:$0xf0] }
 0x10c   : > { %v4396_v21 = vld [vmem:[%s6969_s3 + $0xe4] sm:$0xf0] }
 0x10d   : > { %545 = vadd.xlane.f32.xlu2 %v544_v15  ;;  %v3765_v15 = vld [vmem:[%s6969_s3 + $0x60] sm:$0xf] }
 0x10e   : > { %v4644_v18 = vpop.trf.xlu0  ;;  %v3766_v20 = vor.u32 %v4380_v16, %v3765_v15  ;;  %v3750_v16 = vor.u32 %v4376_v9, %v3749_v8  ;;  %v3797_v8 = vld [vmem:[%s6969_s3 + $0xa0] sm:$0xf] }
 0x10f   : > { %v4921_v28 = vunpack.c.l.bf16 %v4644_v18  ;;  %v4927_v31 = vunpack.c.h.bf16 %v4644_v18  ;;  %v3829_v18 = vld [vmem:[%s6969_s3 + $0xe0] sm:$0xf] }
 0x110   : > { %1245 = vmatpush.bf16.msra.mxu0 %v3766_v20  ;;  %v4375_v20 = vld [vmem:[%s6969_s3 + $0x44] sm:$0xf] }
 0x111   : > { %v608_v40 = vmul.f32 %v4921_v28, %v4921_v28  ;;  %v610_v43 = vmul.f32 %v4927_v31, %v4927_v31 }
 0x113   : > { %645 = vadd.xlane.f32.xlu1 %v644_v22  ;;  %v4379_v22 = vld [vmem:[%s6969_s3 + $0x64] sm:$0xf] }
 0x115   : > { %648 = vadd.xlane.f32.xlu2 %v647_v26 }
 0x116   : > { %v4645_v27 = vpop.trf.xlu0 }
 0x117   : > { %v4923_v29 = vunpack.c.h.bf16 %v4645_v27  ;;  %v4925_v30 = vunpack.c.l.bf16 %v4645_v27  ;;  %v3830_v27 = vor.u32 %v4396_v21, %v3829_v18  ;;  %v4392_v18 = vld [vmem:[%s6969_s3 + $0xc4] sm:$0xf0]  ;;  %v3751_v21 = vld [vmem:[%s6969_s3 + $0x48] sm:$0xf0] }
 0x119   : > { %v547_v36 = vadd.f32 %v4925_v30, %v4921_v28  ;;  %v550_v37 = vadd.f32 %v4923_v29, %v4927_v31  ;;  %v609_v38 = vmul.f32 %v4925_v30, %v4925_v30  ;;  %v611_v41 = vmul.f32 %v4923_v29, %v4923_v29  ;;  %1294 = vmatpush.bf16.msra.mxu1 %v3830_v27  ;;  %v4391_v27 = vld [vmem:[%s6969_s3 + $0xc4] sm:$0xf] }
 0x11b   : > { %548 = vadd.xlane.f32.xlu1 %v547_v36  ;;  %v650_v42 = vadd.f32 %v609_v38, %v608_v40  ;;  %v653_v45 = vadd.f32 %v611_v41, %v610_v43  ;;  %v3770_v36 = vor.u32 %v4379_v22, %v3767_v24  ;;  %v3831_v38 = vld [vmem:[%s6969_s3 + $0xe8] sm:$0xf0]  ;;  %v567_v40 = vsub.f32 1.0, %v566_v6 }
 0x11c   : > { %v3826_v6 = vor.u32 %v4393_v4, %v3823_v5 }
 0x11d   : > { %551 = vadd.xlane.f32.xlu2 %v550_v37  ;;  %v4395_v37 = vld [vmem:[%s6969_s3 + $0xe4] sm:$0xf]  ;;  %1343 = vmatpush.bf16.msra.mxu2 %v3770_v36  ;;  %v568_v15 = vmul.f32 %v4941_v51, %v567_v40  ;;  %v3815_v36 = vld [vmem:[%s6969_s3 + $0xc8] sm:$0xf0] }
 0x11e   : > { %v4650_v39 = vpop.trf.xlu0  ;;  %v3834_v41 = vor.u32 %v4395_v37, %v3831_v38  ;;  %v3818_v38 = vor.u32 %v4391_v27, %v3815_v36  ;;  %v3799_v27 = vld [vmem:[%s6969_s3 + $0xa8] sm:$0xf0] }
 0x11f   : > { %v4943_v52 = vunpack.c.l.bf16 %v4650_v39  ;;  %v4967_v2 = vunpack.c.h.bf16 %v4650_v39 }
 0x120   : > { %1392 = vmatpush.bf16.msra.mxu3 %v3834_v41 }
 0x121   : > { %v614_v0 = vmul.f32 %v4967_v2, %v4967_v2 }
 0x123   : > { %651 = vadd.xlane.f32.xlu1 %v650_v42  ;;  %v612_v42 = vmul.f32 %v4943_v52, %v4943_v52 }
 0x124   : > { %1393 = vmatpush.bf16.msra.mxu3 %v3826_v6  ;;  %v3733_v6 = vld [vmem:[%s6969_s3 + $0x20] sm:$0xf] }
 0x125   : > { %654 = vadd.xlane.f32.xlu2 %v653_v45  ;;  %v4378_v45 = vld [vmem:[%s6969_s3 + $0x54] sm:$0xf0] }
 0x126   : > { %v4651_v50 = vpop.trf.xlu0  ;;  %v3758_v55 = vor.u32 %v4378_v45, %v3757_v44  ;;  %v4374_v44 = vld [vmem:[%s6969_s3 + $0x34] sm:$0xf0]  ;;  %v3805_v45 = vld [vmem:[%s6969_s3 + $0xb0] sm:$0xf] }
 0x127   : > { %v4945_v53 = vunpack.c.h.bf16 %v4651_v50  ;;  %v4947_v54 = vunpack.c.l.bf16 %v4651_v50  ;;  %v3821_v50 = vld [vmem:[%s6969_s3 + $0xd0] sm:$0xf] }
 0x128   : > { %v3822_v1 = vor.u32 %v4394_v56, %v3821_v50  ;;  %1246 = vmatpush.bf16.msra.mxu0 %v3758_v55  ;;  %v569_v50 = vadd.f32 %v4941_v51, %v568_v15  ;;  %v4390_v55 = vld [vmem:[%s6969_s3 + $0xb4] sm:$0xf0]  ;;  %v4373_v56 = vld [vmem:[%s6969_s3 + $0x34] sm:$0xf]  ;;  %1394 = vmatpush.bf16.msra.mxu3 %v3818_v38 }
 0x129   : > { %v553_v3 = vadd.f32 %v4947_v54, %v4943_v52  ;;  %v556_v14 = vadd.f32 %v4945_v53, %v4967_v2  ;;  %v613_v26 = vmul.f32 %v4947_v54, %v4947_v54  ;;  %v615_v43 = vmul.f32 %v4945_v53, %v4945_v53 }
 0x12a   : > { %1295 = vmatpush.bf16.msra.mxu1 %v3822_v1  ;;  %v3806_v1 = vor.u32 %v4390_v55, %v3805_v45  ;;  %v5109_v9 = vsel %vm570_vm0, %v4941_v51, %v569_v50  ;;  %v3725_v45 = vld [vmem:[%s6969_s3 + $0x10] sm:$0xf]  ;;  %v4370_v50 = vld [vmem:[%s6969_s3 + $0x14] sm:$0xf0] }
 0x12b   : > { %554 = vadd.xlane.f32.xlu1 %v553_v3  ;;  %v656_v59 = vadd.f32 %v613_v26, %v612_v42  ;;  %v3762_v3 = vor.u32 %v4377_v57, %v3759_v58  ;;  %v659_v7 = vadd.f32 %v615_v43, %v614_v0  ;;  %v3754_v26 = vor.u32 %v4375_v20, %v3751_v21  ;;  %v3741_v43 = vld [vmem:[%s6969_s3 + $0x30] sm:$0xf]  ;;  %v3743_v57 = vld [vmem:[%s6969_s3 + $0x38] sm:$0xf0]  ;;  %v3735_v20 = vld [vmem:[%s6969_s3 + $0x28] sm:$0xf0] }
 0x12c   : > { %1247 = vmatpush.bf16.msra.mxu0 %v3750_v16  ;;  %v3807_v0 = vld [vmem:[%s6969_s3 + $0xb8] sm:$0xf0]  ;;  %v4388_v16 = vld [vmem:[%s6969_s3 + $0xa4] sm:$0xf0] }
 0x12d   : > { %557 = vadd.xlane.f32.xlu2 %v556_v14  ;;  %v3813_v14 = vld [vmem:[%s6969_s3 + $0xc0] sm:$0xf]  ;;  %1344 = vmatpush.bf16.msra.mxu2 %v3762_v3  ;;  %v3746_v3 = vor.u32 %v4373_v56, %v3743_v57  ;;  %v3798_v21 = vor.u32 %v4388_v16, %v3797_v8  ;;  %v3726_v56 = vor.u32 %v4370_v50, %v3725_v45  ;;  %v4386_v57 = vld [vmem:[%s6969_s3 + $0x94] sm:$0xf0] }
 0x12e   : > { %v4656_v39 = vpop.trf.xlu0  ;;  %v3814_v24 = vor.u32 %v4392_v18, %v3813_v14  ;;  %v4371_v18 = vld [vmem:[%s6969_s3 + $0x24] sm:$0xf] }
 0x12f   : > { %v5055_v22 = vunpack.c.l.bf16 %v4656_v39  ;;  %v5063_v40 = vunpack.c.h.bf16 %v4656_v39  ;;  %v3742_v39 = vor.u32 %v4374_v44, %v3741_v43 }
 0x130   : > { %1296 = vmatpush.bf16.msra.mxu1 %v3814_v24  ;;  %v3738_v24 = vor.u32 %v4371_v18, %v3735_v20  ;;  %v4368_v18 = vld [vmem:[%s6969_s3 + $0x4] sm:$0xf0]  ;;  %v3781_v20 = vld [vmem:[%s6969_s3 + $0x80] sm:$0xf] }
 0x131   : > { %1345 = vmatpush.bf16.msra.mxu2 %v3754_v26  ;;  %1248 = vmatpush.bf16.msra.mxu0 %v3742_v39  ;;  %v616_v14 = vmul.f32 %v5055_v22, %v5055_v22  ;;  %v4387_v26 = vld [vmem:[%s6969_s3 + $0xa4] sm:$0xf]  ;;  %v618_v43 = vmul.f32 %v5063_v40, %v5063_v40  ;;  %v3789_v39 = vld [vmem:[%s6969_s3 + $0x90] sm:$0xf] }
 0x133   : > { %657 = vadd.xlane.f32.xlu1 %v656_v59  ;;  %v4389_v59 = vld [vmem:[%s6969_s3 + $0xb4] sm:$0xf] }
 0x134   : > { %v3810_v4 = vor.u32 %v4389_v59, %v3807_v0  ;;  %1297 = vmatpush.bf16.msra.mxu1 %v3806_v1  ;;  %v3727_v59 = vld [vmem:[%s6969_s3 + $0x18] sm:$0xf0] }
 0x135   : > { %660 = vadd.xlane.f32.xlu2 %v659_v7  ;;  %v4372_v7 = vld [vmem:[%s6969_s3 + $0x24] sm:$0xf0]  ;;  %1346 = vmatpush.bf16.msra.mxu2 %v3746_v3 }
 0x136   : > { %v4657_v37 = vpop.trf.xlu0  ;;  %v3734_v15 = vor.u32 %v4372_v7, %v3733_v6  ;;  %1395 = vmatpush.bf16.msra.mxu3 %v3810_v4  ;;  %v4385_v4 = vld [vmem:[%s6969_s3 + $0x94] sm:$0xf]  ;;  %v3790_v6 = vor.u32 %v4386_v57, %v3789_v39 }
 0x137   : > { %v5065_v41 = vunpack.c.h.bf16 %v4657_v37  ;;  %v5067_v42 = vunpack.c.l.bf16 %v4657_v37  ;;  %v3802_v37 = vor.u32 %v4387_v26, %v3799_v27  ;;  %v3719_v26 = vld [vmem:[%s6969_s3 + $0x8] sm:$0xf0] }
 0x138   : > { %1249 = vmatpush.bf16.msra.mxu0 %v3734_v15  ;;  %1298 = vmatpush.bf16.msra.mxu1 %v3798_v21  ;;  %v4384_v21 = vld [vmem:[%s6969_s3 + $0x84] sm:$0xf0] }
 0x139   : > { %v559_v58 = vadd.f32 %v5067_v42, %v5055_v22  ;;  %v562_v5 = vadd.f32 %v5065_v41, %v5063_v40  ;;  %v617_v51 = vmul.f32 %v5067_v42, %v5067_v42  ;;  %v619_v44 = vmul.f32 %v5065_v41, %v5065_v41  ;;  %1347 = vmatpush.bf16.msra.mxu2 %v3738_v24  ;;  %v4367_v24 = vld [vmem:[%s6969_s3 + $0x4] sm:$0xf] }
 0x13a   : > { %1396 = vmatpush.bf16.msra.mxu3 %v3802_v37  ;;  %v3722_v37 = vor.u32 %v4367_v24, %v3719_v26 }
 0x13b   : > { %560 = vadd.xlane.f32.xlu1 %v559_v58  ;;  %v4369_v58 = vld [vmem:[%s6969_s3 + $0x14] sm:$0xf]  ;;  %v662_v3 = vadd.f32 %v617_v51, %v616_v14  ;;  %v665_v16 = vadd.f32 %v619_v44, %v618_v43  ;;  %v3717_v14 = vld [vmem:[%s6969_s3] sm:$0xf]  ;;  %v4383_v43 = vld [vmem:[%s6969_s3 + $0x84] sm:$0xf] }
 0x13c   : > { %1250 = vmatpush.bf16.msra.mxu0 %v3726_v56  ;;  %v3730_v7 = vor.u32 %v4369_v58, %v3727_v59  ;;  %1299 = vmatpush.bf16.msra.mxu1 %v3790_v6  ;;  %v3718_v51 = vor.u32 %v4368_v18, %v3717_v14  ;;  %v3783_v44 = vld [vmem:[%s6969_s3 + $0x88] sm:$0xf0] }
 0x13d   : > { %563 = vadd.xlane.f32.xlu2 %v562_v5  ;;  %v3791_v5 = vld [vmem:[%s6969_s3 + $0x98] sm:$0xf0]  ;;  %v3786_v50 = vor.u32 %v4383_v43, %v3783_v44 }
 0x13e   : > { %v519_v36 = vpop.xlane.xlu1 %518  ;;  %v3794_v8 = vor.u32 %v4385_v4, %v3791_v5  ;;  %1348 = vmatpush.bf16.msra.mxu2 %v3730_v7 }
 0x13f   : > { %v5131_v38 = vmul.f32 %v5109_v9, %v519_v36  ;;  %v3782_v36 = vor.u32 %v4384_v21, %v3781_v20 }
 0x140   : > { %v622_v55 = vpop.xlane.xlu2 %621  ;;  %1397 = vmatpush.bf16.msra.mxu3 %v3794_v8  ;;  %1251 = vmatpush.bf16.msra.mxu0 %v3718_v51 }
 0x141   : > { %v684_v0 = vmul.f32 %v5131_v38, %v5131_v38  ;;  %v668_v1 = vmul.f32 %v622_v55, %v5109_v9  ;;  %1300 = vmatpush.bf16.msra.mxu1 %v3782_v36 }
 0x142   : > { %1349 = vmatpush.bf16.msra.mxu2 %v3722_v37 }
 0x143   : > { %v700_v15 = vsub.f32 %v668_v1, %v684_v0  ;;  %663 = vadd.xlane.f32.xlu1 %v662_v3 }
 0x144   : > { %1398 = vmatpush.bf16.msra.mxu3 %v3786_v50 }
 0x145   : > { %v748_v27 = vadd.f32 1e-05, %v700_v15  ;;  %666 = vadd.xlane.f32.xlu2 %v665_v16 }
 0x146   : > { %v522_v45 = vpop.xlane.xlu1 %521 }
 0x147   : > { %4668 = vrsqrt.f32 %v748_v27  ;;  %v573_v39 = vmul.f32 %v5109_v9, %v522_v45  ;;  %vm770_vm2 = vweird.f32 %v748_v27 }
 0x148   : > { %v625_v55 = vpop.xlane.xlu2 %624 }
 0x149   : > { %v685_v56 = vmul.f32 %v573_v39, %v573_v39  ;;  %v669_v57 = vmul.f32 %v625_v55, %v5109_v9  ;;  %v515_v55 = vld [vmem:[%s6967_s1] ss:$2 sm:$0x3] }
 0x14b   : > { %v701_v58 = vsub.f32 %v669_v57, %v685_v56  ;;  %v716_v57 = vsub.f32 %v4821_v17, %v5131_v38 }
 0x14d   : > { %v4669_v59 = vpop.eup %4668  ;;  %v749_v0 = vadd.f32 1e-05, %v701_v58  ;;  %v717_v58 = vsub.f32 %v4823_v19, %v5131_v38  ;;  %v718_v38 = vsub.f32 %v4833_v25, %v573_v39 }
 0x14e   : > { %v765_v1 = vmul.f32 %v4669_v59, %v748_v27  ;;  %v525_v3 = vpop.xlane.xlu1 %524  ;;  %vm771_vm1 = vweird.f32 %v4669_v59 }
 0x14f   : > { %4670 = vrsqrt.f32 %v749_v0  ;;  %v5191_v7 = vmul.f32 %v5109_v9, %v525_v3  ;;  %vm772_vm3 = vmor %vm770_vm2, %vm771_vm1  ;;  %vm780_vm5 = vweird.f32 %v749_v0 }
 0x150   : > { %v766_v4 = vmul.f32 %v4669_v59, %v765_v1  ;;  %v528_v5 = vpop.xlane.xlu2 %527 }
 0x151   : > { %v5194_v16 = vmul.f32 %v5109_v9, %v528_v5  ;;  %v686_v51 = vmul.f32 %v5191_v7, %v5191_v7 }
 0x152   : > { %v767_v6 = vmul.f32 0.5, %v766_v4 }
 0x153   : > { %v687_v37 = vmul.f32 %v5194_v16, %v5194_v16 }
 0x154   : > { %v768_v8 = vsub.f32 1.5, %v767_v6  ;;  %v5214_v6 = vperm.slane %v515_v55, 0 }
 0x155   : > { %v4671_v15 = vpop.eup %4670 }
 0x156   : > { %v775_v14 = vmul.f32 %v4671_v15, %v749_v0  ;;  %v628_v18 = vpop.xlane.xlu1 %627  ;;  %v769_v20 = vmul.f32 %v4669_v59, %v768_v8  ;;  %vm781_vm4 = vweird.f32 %v4671_v15 }
 0x157   : > { %v670_v21 = vmul.f32 %v628_v18, %v5109_v9  ;;  %vm782_vm6 = vmor %vm780_vm5, %vm781_vm4  ;;  %v719_v18 = vsub.f32 %v4831_v23, %v573_v39 }
 0x158   : > { %v776_v24 = vmul.f32 %v4671_v15, %v775_v14  ;;  %v631_v26 = vpop.xlane.xlu2 %630  ;;  %v773_v56 = vsel %vm772_vm3, %v4669_v59, %v769_v20  ;;  %v516_v59 = vld [vmem:[%s6968_s2] ss:$2 sm:$0x3]  ;;  %v5220_v14 = vperm.slane %v515_v55, 1 }
 0x159   : > { %v702_v36 = vsub.f32 %v670_v21, %v686_v51  ;;  %v671_v43 = vmul.f32 %v631_v26, %v5109_v9  ;;  %v924_v5 = vmul.f32 %v773_v56, %v716_v57  ;;  %v925_v8 = vmul.f32 %v773_v56, %v717_v58 }
 0x15a   : > { %v777_v44 = vmul.f32 0.5, %v776_v24  ;;  %v5225_v24 = vperm.slane %v516_v59, 0 }
 0x15b   : > { %v5202_v45 = vadd.f32 1e-05, %v702_v36  ;;  %v703_v50 = vsub.f32 %v671_v43, %v687_v37  ;;  %v961_v21 = vmul.f32 %v5214_v6, %v924_v5  ;;  %v962_v43 = vmul.f32 %v5220_v14, %v925_v8 }
 0x15c   : > { %v778_v27 = vsub.f32 1.5, %v777_v44  ;;  %v5231_v44 = vperm.slane %v516_v59, 1 }
 0x15d   : > { %4672 = vrsqrt.f32 %v5202_v45  ;;  %v5212_v1 = vadd.f32 1e-05, %v703_v50  ;;  %vm790_vm8 = vweird.f32 %v5202_v45 }
 0x15e   : > { %v779_v3 = vmul.f32 %v4671_v15, %v778_v27  ;;  %v531_v4 = vpop.xlane.xlu1 %530  ;;  %v999_v8 = vadd.f32 %v5231_v44, %v962_v43 }
 0x15f   : > { %4674 = vrsqrt.f32 %v5212_v1  ;;  %v5228_v37 = vmul.f32 %v5109_v9, %v531_v4  ;;  %vm800_vm11 = vweird.f32 %v5212_v1 }
 0x160   : > { %v534_v20 = vpop.xlane.xlu2 %533  ;;  %v783_v0 = vsel %vm782_vm6, %v4671_v15, %v779_v3  ;;  %v998_v3 = vadd.f32 %v5225_v24, %v961_v21 }
 0x161   : > { %v926_v51 = vmul.f32 %v783_v0, %v718_v38  ;;  %v927_v26 = vmul.f32 %v783_v0, %v719_v18  ;;  %v5237_v56 = vmul.f32 %v5109_v9, %v534_v20  ;;  %v688_v5 = vmul.f32 %v5228_v37, %v5228_v37 }
 0x163   : > { %v4673_v36 = vpop.eup %4672  ;;  %v963_v39 = vmul.f32 %v5214_v6, %v926_v51  ;;  %v964_v15 = vmul.f32 %v5220_v14, %v927_v26 }
 0x164   : > { %v785_v50 = vmul.f32 %v4673_v36, %v5202_v45  ;;  %vm791_vm7 = vweird.f32 %v4673_v36  ;;  %v722_v45 = vsub.f32 %v4847_v35, %v5194_v16 }
 0x165   : > { %v4675_v55 = vpop.eup %4674  ;;  %v1000_v4 = vadd.f32 %v5225_v24, %v963_v39  ;;  %v1001_v38 = vadd.f32 %v5231_v44, %v964_v15  ;;  %vm792_vm10 = vmor %vm790_vm8, %vm791_vm7 }
 0x166   : > { %v786_v57 = vmul.f32 %v4673_v36, %v785_v50  ;;  %v795_v27 = vmul.f32 %v4675_v55, %v5212_v1  ;;  %v634_v58 = vpop.xlane.xlu1 %633  ;;  %v689_v50 = vmul.f32 %v5237_v56, %v5237_v56  ;;  %vm801_vm9 = vweird.f32 %v4675_v55 }
 0x167   : > { %v672_v59 = vmul.f32 %v634_v58, %v5109_v9  ;;  %v1030_v51 = vpack.c.bf16 %v1000_v4, %v998_v3  ;;  %v1031_v39 = vpack.c.bf16 %v1001_v38, %v999_v8  ;;  %v721_v4 = vsub.f32 %v4845_v34, %v5191_v7  ;;  %vm802_vm12 = vmor %vm800_vm11, %vm801_vm9 }
 0x168   : > { %v787_v18 = vmul.f32 0.5, %v786_v57  ;;  %v796_v20 = vmul.f32 %v4675_v55, %v795_v27  ;;  %v637_v0 = vpop.xlane.xlu2 %636  ;;  %v720_v27 = vsub.f32 %v4841_v32, %v5191_v7  ;;  %v723_v8 = vsub.f32 %v4843_v33, %v5194_v16 }
 0x169   : > { %v704_v26 = vsub.f32 %v672_v59, %v688_v5  ;;  %v673_v21 = vmul.f32 %v637_v0, %v5109_v9  ;;  %1252 = vmatmul.bf16.vlgmr.msra.gmra.mxu0 %v1030_v51  ;;  %1350 = vmatmul.bf16.vlgmr.msra.gmra.mxu2 %v1030_v51 }
 0x16a   : > { %v788_v23 = vsub.f32 1.5, %v787_v18  ;;  %v797_v25 = vmul.f32 0.5, %v796_v20  ;;  %1301 = vmatmul.bf16.vlgmr.msra.gmra.mxu1 %v1031_v39  ;;  %1399 = vmatmul.bf16.vlgmr.msra.gmra.mxu3 %v1031_v39 }
 0x16b   : > { %v5250_v58 = vadd.f32 1e-05, %v704_v26  ;;  %v705_v43 = vsub.f32 %v673_v21, %v689_v50 }
 0x16c   : > { %v789_v15 = vmul.f32 %v4673_v36, %v788_v23  ;;  %v798_v57 = vsub.f32 1.5, %v797_v25 }
 0x16d   : > { %4676 = vrsqrt.f32 %v5250_v58  ;;  %v5256_v3 = vadd.f32 1e-05, %v705_v43  ;;  %vm810_vm14 = vweird.f32 %v5250_v58 }
 0x16e   : > { %v799_v5 = vmul.f32 %v4675_v55, %v798_v57  ;;  %v537_v59 = vpop.xlane.xlu1 %536  ;;  %v793_v23 = vsel %vm792_vm10, %v4673_v36, %v789_v15 }
 0x16f   : > { %4678 = vrsqrt.f32 %v5256_v3  ;;  %v928_v25 = vmul.f32 %v793_v23, %v720_v27  ;;  %v929_v20 = vmul.f32 %v793_v23, %v721_v4  ;;  %v5268_v36 = vmul.f32 %v5109_v9, %v537_v59 }
 0x170   : > { %v540_v38 = vpop.xlane.xlu2 %539  ;;  %v803_v18 = vsel %vm802_vm12, %v4675_v55, %v799_v5  ;;  %vm820_vm1 = vweird.f32 %v5256_v3 }
 0x171   : > { %v930_v0 = vmul.f32 %v803_v18, %v722_v45  ;;  %v965_v7 = vmul.f32 %v5214_v6, %v928_v25  ;;  %v931_v51 = vmul.f32 %v803_v18, %v723_v8  ;;  %v966_v26 = vmul.f32 %v5220_v14, %v929_v20 }
 0x172   : > { %v5274_v16 = vmul.f32 %v5109_v9, %v540_v38  ;;  %v690_v5 = vmul.f32 %v5268_v36, %v5268_v36 }
 0x173   : > { %v4677_v1 = vpop.eup %4676  ;;  %v967_v21 = vmul.f32 %v5214_v6, %v930_v0  ;;  %v968_v55 = vmul.f32 %v5220_v14, %v931_v51  ;;  %v1002_v27 = vadd.f32 %v5225_v24, %v965_v7  ;;  %v1003_v23 = vadd.f32 %v5231_v44, %v966_v26 }
 0x174   : > { %v805_v50 = vmul.f32 %v4677_v1, %v5250_v58  ;;  %v691_v0 = vmul.f32 %v5274_v16, %v5274_v16  ;;  %vm811_vm13 = vweird.f32 %v4677_v1 }
 0x175   : > { %v4679_v39 = vpop.eup %4678  ;;  %v1004_v4 = vadd.f32 %v5225_v24, %v967_v21  ;;  %v1005_v25 = vadd.f32 %v5231_v44, %v968_v55  ;;  %vm812_vm0 = vmor %vm810_vm14, %vm811_vm13 }
 0x176   : > { %v806_v43 = vmul.f32 %v4677_v1, %v805_v50  ;;  %v815_v15 = vmul.f32 %v4679_v39, %v5256_v3  ;;  %v640_v57 = vpop.xlane.xlu1 %639  ;;  %vm821_vm15 = vweird.f32 %v4679_v39 }
 0x177   : > { %v674_v59 = vmul.f32 %v640_v57, %v5109_v9  ;;  %v1032_v18 = vpack.c.bf16 %v1004_v4, %v1002_v27  ;;  %v1033_v51 = vpack.c.bf16 %v1005_v25, %v1003_v23  ;;  %v725_v4 = vsub.f32 %v4865_v48, %v5228_v37  ;;  %vm822_vm2 = vmor %vm820_vm1, %vm821_vm15 }
 0x178   : > { %v807_v45 = vmul.f32 0.5, %v806_v43  ;;  %v816_v8 = vmul.f32 %v4679_v39, %v815_v15  ;;  %v643_v38 = vpop.xlane.xlu2 %642  ;;  %v724_v15 = vsub.f32 %v4861_v46, %v5228_v37  ;;  %v726_v25 = vsub.f32 %v4867_v49, %v5237_v56 }
 0x179   : > { %v706_v20 = vsub.f32 %v674_v59, %v690_v5  ;;  %v675_v7 = vmul.f32 %v643_v38, %v5109_v9  ;;  %1257 = vmatmul.bf16.gmra.mxu0 %v1032_v18  ;;  %1355 = vmatmul.bf16.gmra.mxu2 %v1032_v18 }
 0x17a   : > { %v808_v50 = vsub.f32 1.5, %v807_v45  ;;  %v817_v21 = vmul.f32 0.5, %v816_v8  ;;  %1306 = vmatmul.bf16.gmra.mxu1 %v1033_v51  ;;  %1404 = vmatmul.bf16.gmra.mxu3 %v1033_v51  ;;  %v727_v45 = vsub.f32 %v4863_v47, %v5237_v56 }
 0x17b   : > { %v5288_v57 = vadd.f32 1e-05, %v706_v20  ;;  %v707_v26 = vsub.f32 %v675_v7, %v691_v0 }
 0x17c   : > { %v809_v55 = vmul.f32 %v4677_v1, %v808_v50  ;;  %v818_v43 = vsub.f32 1.5, %v817_v21 }
 0x17d   : > { %4680 = vrsqrt.f32 %v5288_v57  ;;  %v5294_v27 = vadd.f32 1e-05, %v707_v26  ;;  %vm830_vm4 = vweird.f32 %v5288_v57 }
 0x17e   : > { %v819_v5 = vmul.f32 %v4679_v39, %v818_v43  ;;  %v543_v59 = vpop.xlane.xlu1 %542  ;;  %v813_v23 = vsel %vm812_vm0, %v4677_v1, %v809_v55 }
 0x17f   : > { %4682 = vrsqrt.f32 %v5294_v27  ;;  %v932_v58 = vmul.f32 %v813_v23, %v724_v15  ;;  %v933_v18 = vmul.f32 %v813_v23, %v725_v4  ;;  %v5306_v1 = vmul.f32 %v5109_v9, %v543_v59 }
 0x180   : > { %v546_v8 = vpop.xlane.xlu2 %545  ;;  %v823_v38 = vsel %vm822_vm2, %v4679_v39, %v819_v5  ;;  %vm840_vm7 = vweird.f32 %v5294_v27 }
 0x181   : > { %v934_v20 = vmul.f32 %v823_v38, %v726_v25  ;;  %v969_v37 = vmul.f32 %v5214_v6, %v932_v58  ;;  %v935_v0 = vmul.f32 %v823_v38, %v727_v45  ;;  %v970_v7 = vmul.f32 %v5220_v14, %v933_v18 }
 0x182   : > { %v5312_v56 = vmul.f32 %v5109_v9, %v546_v8  ;;  %v692_v5 = vmul.f32 %v5306_v1, %v5306_v1 }
 0x183   : > { %v4681_v3 = vpop.eup %4680  ;;  %v971_v50 = vmul.f32 %v5214_v6, %v934_v20  ;;  %v972_v39 = vmul.f32 %v5220_v14, %v935_v0  ;;  %v1006_v15 = vadd.f32 %v5225_v24, %v969_v37  ;;  %v1007_v23 = vadd.f32 %v5231_v44, %v970_v7 }
 0x184   : > { %v825_v51 = vmul.f32 %v4681_v3, %v5288_v57  ;;  %v693_v20 = vmul.f32 %v5312_v56, %v5312_v56  ;;  %vm831_vm3 = vweird.f32 %v4681_v3 }
 0x185   : > { %v4683_v21 = vpop.eup %4682  ;;  %v1008_v4 = vadd.f32 %v5225_v24, %v971_v50  ;;  %v1009_v58 = vadd.f32 %v5231_v44, %v972_v39  ;;  %vm832_vm6 = vmor %vm830_vm4, %vm831_vm3 }
 0x186   : > { %v826_v26 = vmul.f32 %v4681_v3, %v825_v51  ;;  %v835_v55 = vmul.f32 %v4683_v21, %v5294_v27  ;;  %v646_v43 = vpop.xlane.xlu1 %645  ;;  %vm841_vm5 = vweird.f32 %v4683_v21 }
 0x187   : > { %v676_v59 = vmul.f32 %v646_v43, %v5109_v9  ;;  %v1034_v38 = vpack.c.bf16 %v1008_v4, %v1006_v15  ;;  %v1035_v0 = vpack.c.bf16 %v1009_v58, %v1007_v23  ;;  %v729_v4 = vsub.f32 %v4885_v62, %v5268_v36  ;;  %vm842_vm8 = vmor %vm840_vm7, %vm841_vm5 }
 0x188   : > { %v827_v25 = vmul.f32 0.5, %v826_v26  ;;  %v836_v45 = vmul.f32 %v4683_v21, %v835_v55  ;;  %v649_v8 = vpop.xlane.xlu2 %648  ;;  %v728_v55 = vsub.f32 %v4881_v60, %v5268_v36  ;;  %v730_v58 = vsub.f32 %v4887_v63, %v5274_v16 }
 0x189   : > { %v708_v18 = vsub.f32 %v676_v59, %v692_v5  ;;  %v677_v37 = vmul.f32 %v649_v8, %v5109_v9  ;;  %1262 = vmatmul.bf16.gmra.mxu0 %v1034_v38  ;;  %1360 = vmatmul.bf16.gmra.mxu2 %v1034_v38 }
 0x18a   : > { %v828_v51 = vsub.f32 1.5, %v827_v25  ;;  %v837_v50 = vmul.f32 0.5, %v836_v45  ;;  %1311 = vmatmul.bf16.gmra.mxu1 %v1035_v0  ;;  %1409 = vmatmul.bf16.gmra.mxu3 %v1035_v0  ;;  %v731_v25 = vsub.f32 %v4883_v61, %v5274_v16 }
 0x18b   : > { %v5326_v43 = vadd.f32 1e-05, %v708_v18  ;;  %v709_v7 = vsub.f32 %v677_v37, %v693_v20 }
 0x18c   : > { %v829_v39 = vmul.f32 %v4681_v3, %v828_v51  ;;  %v838_v26 = vsub.f32 1.5, %v837_v50 }
 0x18d   : > { %4684 = vrsqrt.f32 %v5326_v43  ;;  %v5332_v15 = vadd.f32 1e-05, %v709_v7  ;;  %vm850_vm10 = vweird.f32 %v5326_v43 }
 0x18e   : > { %v839_v5 = vmul.f32 %v4683_v21, %v838_v26  ;;  %v549_v59 = vpop.xlane.xlu1 %548  ;;  %v833_v23 = vsel %vm832_vm6, %v4681_v3, %v829_v39 }
 0x18f   : > { %4686 = vrsqrt.f32 %v5332_v15  ;;  %v936_v57 = vmul.f32 %v833_v23, %v728_v55  ;;  %v937_v38 = vmul.f32 %v833_v23, %v729_v4  ;;  %v5344_v3 = vmul.f32 %v5109_v9, %v549_v59 }
 0x190   : > { %v552_v45 = vpop.xlane.xlu2 %551  ;;  %v843_v8 = vsel %vm842_vm8, %v4683_v21, %v839_v5  ;;  %vm860_vm13 = vweird.f32 %v5332_v15 }
 0x191   : > { %v938_v18 = vmul.f32 %v843_v8, %v730_v58  ;;  %v973_v36 = vmul.f32 %v5214_v6, %v936_v57  ;;  %v939_v20 = vmul.f32 %v843_v8, %v731_v25  ;;  %v974_v37 = vmul.f32 %v5220_v14, %v937_v38 }
 0x192   : > { %v5350_v16 = vmul.f32 %v5109_v9, %v552_v45  ;;  %v694_v5 = vmul.f32 %v5344_v3, %v5344_v3 }
 0x193   : > { %v4685_v27 = vpop.eup %4684  ;;  %v975_v51 = vmul.f32 %v5214_v6, %v938_v18  ;;  %v976_v21 = vmul.f32 %v5220_v14, %v939_v20  ;;  %v1010_v55 = vadd.f32 %v5225_v24, %v973_v36  ;;  %v1011_v23 = vadd.f32 %v5231_v44, %v974_v37 }
 0x194   : > { %v845_v0 = vmul.f32 %v4685_v27, %v5326_v43  ;;  %v695_v18 = vmul.f32 %v5350_v16, %v5350_v16  ;;  %vm851_vm9 = vweird.f32 %v4685_v27 }
 0x195   : > { %v4687_v50 = vpop.eup %4686  ;;  %v1012_v4 = vadd.f32 %v5225_v24, %v975_v51  ;;  %v1013_v57 = vadd.f32 %v5231_v44, %v976_v21  ;;  %vm852_vm12 = vmor %vm850_vm10, %vm851_vm9 }
 0x196   : > { %v846_v7 = vmul.f32 %v4685_v27, %v845_v0  ;;  %v855_v39 = vmul.f32 %v4687_v50, %v5332_v15  ;;  %v652_v26 = vpop.xlane.xlu1 %651  ;;  %vm861_vm11 = vweird.f32 %v4687_v50 }
 0x197   : > { %v678_v59 = vmul.f32 %v652_v26, %v5109_v9  ;;  %v1036_v8 = vpack.c.bf16 %v1012_v4, %v1010_v55  ;;  %v1037_v20 = vpack.c.bf16 %v1013_v57, %v1011_v23  ;;  %v733_v4 = vsub.f32 %v4905_v12, %v5306_v1  ;;  %vm862_vm14 = vmor %vm860_vm13, %vm861_vm11 }
 0x198   : > { %v847_v58 = vmul.f32 0.5, %v846_v7  ;;  %v856_v25 = vmul.f32 %v4687_v50, %v855_v39  ;;  %v655_v45 = vpop.xlane.xlu2 %654  ;;  %v732_v39 = vsub.f32 %v4901_v10, %v5306_v1  ;;  %v734_v57 = vsub.f32 %v4907_v13, %v5312_v56 }
 0x199   : > { %v710_v38 = vsub.f32 %v678_v59, %v694_v5  ;;  %v679_v36 = vmul.f32 %v655_v45, %v5109_v9  ;;  %1267 = vmatmul.bf16.gmra.mxu0 %v1036_v8  ;;  %1365 = vmatmul.bf16.gmra.mxu2 %v1036_v8 }
 0x19a   : > { %v848_v0 = vsub.f32 1.5, %v847_v58  ;;  %v857_v51 = vmul.f32 0.5, %v856_v25  ;;  %1316 = vmatmul.bf16.gmra.mxu1 %v1037_v20  ;;  %1414 = vmatmul.bf16.gmra.mxu3 %v1037_v20  ;;  %v735_v58 = vsub.f32 %v4903_v11, %v5312_v56 }
 0x19b   : > { %v5364_v26 = vadd.f32 1e-05, %v710_v38  ;;  %v711_v37 = vsub.f32 %v679_v36, %v695_v18 }
 0x19c   : > { %v849_v21 = vmul.f32 %v4685_v27, %v848_v0  ;;  %v858_v7 = vsub.f32 1.5, %v857_v51 }
 0x19d   : > { %4688 = vrsqrt.f32 %v5364_v26  ;;  %v5370_v55 = vadd.f32 1e-05, %v711_v37  ;;  %vm870_vm0 = vweird.f32 %v5364_v26 }
 0x19e   : > { %v859_v5 = vmul.f32 %v4687_v50, %v858_v7  ;;  %v555_v59 = vpop.xlane.xlu1 %554  ;;  %v853_v23 = vsel %vm852_vm12, %v4685_v27, %v849_v21 }
 0x19f   : > { %4690 = vrsqrt.f32 %v5370_v55  ;;  %v940_v43 = vmul.f32 %v853_v23, %v732_v39  ;;  %v941_v8 = vmul.f32 %v853_v23, %v733_v4  ;;  %v5382_v27 = vmul.f32 %v5109_v9, %v555_v59 }
 0x1a0   : > { %v558_v25 = vpop.xlane.xlu2 %557  ;;  %v863_v45 = vsel %vm862_vm14, %v4687_v50, %v859_v5  ;;  %vm880_vm3 = vweird.f32 %v5370_v55 }
 0x1a1   : > { %v942_v38 = vmul.f32 %v863_v45, %v734_v57  ;;  %v977_v1 = vmul.f32 %v5214_v6, %v940_v43  ;;  %v943_v18 = vmul.f32 %v863_v45, %v735_v58  ;;  %v978_v36 = vmul.f32 %v5220_v14, %v941_v8 }
 0x1a2   : > { %v5388_v56 = vmul.f32 %v5109_v9, %v558_v25  ;;  %v696_v5 = vmul.f32 %v5382_v27, %v5382_v27 }
 0x1a3   : > { %v4689_v15 = vpop.eup %4688  ;;  %v979_v0 = vmul.f32 %v5214_v6, %v942_v38  ;;  %v980_v50 = vmul.f32 %v5220_v14, %v943_v18  ;;  %v1014_v39 = vadd.f32 %v5225_v24, %v977_v1  ;;  %v1015_v23 = vadd.f32 %v5231_v44, %v978_v36 }
 0x1a4   : > { %v865_v20 = vmul.f32 %v4689_v15, %v5364_v26  ;;  %v697_v38 = vmul.f32 %v5388_v56, %v5388_v56  ;;  %vm871_vm15 = vweird.f32 %v4689_v15  ;;  %v3901_v26 = vld [vmem:[%s6971_s5 + $0x70] sm:$0xf] }
 0x1a5   : > { %v4691_v51 = vpop.eup %4690  ;;  %v1016_v4 = vadd.f32 %v5225_v24, %v979_v0  ;;  %v1017_v43 = vadd.f32 %v5231_v44, %v980_v50  ;;  %vm872_vm2 = vmor %vm870_vm0, %vm871_vm15 }
 0x1a6   : > { %v866_v37 = vmul.f32 %v4689_v15, %v865_v20  ;;  %v875_v21 = vmul.f32 %v4691_v51, %v5370_v55  ;;  %v658_v7 = vpop.xlane.xlu1 %657  ;;  %vm881_vm1 = vweird.f32 %v4691_v51  ;;  %v739_v55 = vsub.f32 %v4923_v29, %v5350_v16 }
 0x1a7   : > { %v680_v59 = vmul.f32 %v658_v7, %v5109_v9  ;;  %v1038_v45 = vpack.c.bf16 %v1016_v4, %v1014_v39  ;;  %v1039_v18 = vpack.c.bf16 %v1017_v43, %v1015_v23  ;;  %v737_v4 = vsub.f32 %v4925_v30, %v5344_v3  ;;  %v4414_v43 = vld [vmem:[%s6971_s5 + $0x74] sm:$0xf0]  ;;  %vm882_vm4 = vmor %vm880_vm3, %vm881_vm1 }
 0x1a8   : > { %v867_v57 = vmul.f32 0.5, %v866_v37  ;;  %v876_v58 = vmul.f32 %v4691_v51, %v875_v21  ;;  %v661_v25 = vpop.xlane.xlu2 %660  ;;  %v736_v21 = vsub.f32 %v4921_v28, %v5344_v3  ;;  %v738_v3 = vsub.f32 %v4927_v31, %v5350_v16 }
 0x1a9   : > { %v712_v8 = vsub.f32 %v680_v59, %v696_v5  ;;  %v681_v1 = vmul.f32 %v661_v25, %v5109_v9  ;;  %1272 = vmatmul.bf16.gmra.mxu0 %v1038_v45  ;;  %1370 = vmatmul.bf16.gmra.mxu2 %v1038_v45 }
 0x1aa   : > { %v868_v20 = vsub.f32 1.5, %v867_v57  ;;  %v877_v0 = vmul.f32 0.5, %v876_v58  ;;  %1321 = vmatmul.bf16.gmra.mxu1 %v1039_v18  ;;  %1419 = vmatmul.bf16.gmra.mxu3 %v1039_v18  ;;  %v4413_v57 = vld [vmem:[%s6971_s5 + $0x74] sm:$0xf]  ;;  %v3903_v58 = vld [vmem:[%s6971_s5 + $0x78] sm:$0xf0] }
 0x1ab   : > { %v5402_v7 = vadd.f32 1e-05, %v712_v8  ;;  %v713_v36 = vsub.f32 %v681_v1, %v697_v38  ;;  %v3902_v38 = vor.u32 %v4414_v43, %v3901_v26  ;;  %v3906_v1 = vor.u32 %v4413_v57, %v3903_v58 }
 0x1ac   : > { %v869_v50 = vmul.f32 %v4689_v15, %v868_v20  ;;  %v878_v37 = vsub.f32 1.5, %v877_v0 }
 0x1ad   : > { %4692 = vrsqrt.f32 %v5402_v7  ;;  %v5408_v39 = vadd.f32 1e-05, %v713_v36  ;;  %1680 = vmatpush.bf16.msrb.mxu0 %v3902_v38  ;;  %1778 = vmatpush.bf16.msrb.mxu2 %v3906_v1  ;;  %vm890_vm7 = vweird.f32 %v5402_v7 }
 0x1ae   : > { %v879_v5 = vmul.f32 %v4691_v51, %v878_v37  ;;  %v561_v59 = vpop.xlane.xlu1 %560  ;;  %v873_v23 = vsel %vm872_vm2, %v4689_v15, %v869_v50 }
 0x1af   : > { %4694 = vrsqrt.f32 %v5408_v39  ;;  %v944_v15 = vmul.f32 %v873_v23, %v736_v21  ;;  %v945_v8 = vmul.f32 %v873_v23, %v737_v4  ;;  %v5433_v36 = vmul.f32 %v5109_v9, %v561_v59 }
 0x1b0   : > { %v564_v25 = vpop.xlane.xlu2 %563  ;;  %v883_v45 = vsel %vm882_vm4, %v4691_v51, %v879_v5  ;;  %vm900_vm9 = vweird.f32 %v5408_v39 }
 0x1b1   : > { %v946_v18 = vmul.f32 %v883_v45, %v738_v3  ;;  %v981_v20 = vmul.f32 %v5214_v6, %v944_v15  ;;  %v947_v0 = vmul.f32 %v883_v45, %v739_v55  ;;  %v982_v50 = vmul.f32 %v5220_v14, %v945_v8 }
 0x1b2   : > { %v5438_v21 = vmul.f32 %v5109_v9, %v564_v25  ;;  %v698_v3 = vmul.f32 %v5433_v36, %v5433_v36 }
 0x1b3   : > { %v4693_v16 = vpop.eup %4692  ;;  %v983_v51 = vmul.f32 %v5214_v6, %v946_v18  ;;  %v984_v5 = vmul.f32 %v5220_v14, %v947_v0  ;;  %v1018_v43 = vadd.f32 %v5225_v24, %v981_v20  ;;  %v1019_v15 = vadd.f32 %v5231_v44, %v982_v50 }
 0x1b4   : > { %v885_v37 = vmul.f32 %v4693_v16, %v5402_v7  ;;  %v699_v8 = vmul.f32 %v5438_v21, %v5438_v21  ;;  %vm891_vm5 = vweird.f32 %v4693_v16  ;;  %v740_v50 = vsub.f32 %v4943_v52, %v5382_v27 }
 0x1b5   : > { %v5441_v4 = vpop.eup %4694  ;;  %v1020_v57 = vadd.f32 %v5225_v24, %v983_v51  ;;  %v1021_v58 = vadd.f32 %v5231_v44, %v984_v5  ;;  %vm892_vm8 = vmor %vm890_vm7, %vm891_vm5 }
 0x1b6   : > { %v886_v23 = vmul.f32 %v4693_v16, %v885_v37  ;;  %v895_v26 = vmul.f32 %v5441_v4, %v5408_v39  ;;  %v664_v59 = vpop.xlane.xlu1 %663  ;;  %vm901_vm6 = vweird.f32 %v5441_v4 }
 0x1b7   : > { %v682_v55 = vmul.f32 %v664_v59, %v5109_v9  ;;  %v1040_v1 = vpack.c.bf16 %v1020_v57, %v1018_v43  ;;  %v1041_v0 = vpack.c.bf16 %v1021_v58, %v1019_v15  ;;  %v4412_v59 = vld [vmem:[%s6971_s5 + $0x64] sm:$0xf0]  ;;  %v741_v15 = vsub.f32 %v4947_v54, %v5382_v27  ;;  %vm5481_vm10 = vmor %vm900_vm9, %vm901_vm6 }
 0x1b8   : > { %v887_v25 = vmul.f32 0.5, %v886_v23  ;;  %v896_v45 = vmul.f32 %v5441_v4, %v895_v26  ;;  %v667_v38 = vpop.xlane.xlu2 %666  ;;  %v3893_v26 = vld [vmem:[%s6971_s5 + $0x60] sm:$0xf]  ;;  %v742_v27 = vsub.f32 %v4967_v2, %v5388_v56 }
 0x1b9   : > { %v714_v18 = vsub.f32 %v682_v55, %v698_v3  ;;  %v683_v20 = vmul.f32 %v667_v38, %v5109_v9  ;;  %1277 = vmatmul.bf16.gmra.mxu0 %v1040_v1  ;;  %1375 = vmatmul.bf16.gmra.mxu2 %v1040_v1  ;;  %v3894_v7 = vor.u32 %v4412_v59, %v3893_v26  ;;  %v4411_v3 = vld [vmem:[%s6971_s5 + $0x64] sm:$0xf]  ;;  %v3895_v55 = vld [vmem:[%s6971_s5 + $0x68] sm:$0xf0]  ;;  %v4410_v26 = vld [vmem:[%s6971_s5 + $0x54] sm:$0xf0] }
 0x1ba   : > { %v888_v37 = vsub.f32 1.5, %v887_v25  ;;  %v897_v51 = vmul.f32 0.5, %v896_v45  ;;  %1326 = vmatmul.bf16.gmra.mxu1 %v1041_v0  ;;  %1424 = vmatmul.bf16.gmra.mxu3 %v1041_v0  ;;  %v3898_v25 = vor.u32 %v4411_v3, %v3895_v55  ;;  %v3965_v45 = vld [vmem:[%s6971_s5 + $0xf0] sm:$0xf]  ;;  %v3967_v0 = vld [vmem:[%s6971_s5 + $0xf8] sm:$0xf0] }
 0x1bb   : > { %v5461_v5 = vadd.f32 1e-05, %v714_v18  ;;  %v715_v23 = vsub.f32 %v683_v20, %v699_v8  ;;  %v4430_v8 = vld [vmem:[%s6971_s5 + $0xf4] sm:$0xf0]  ;;  %1681 = vmatpush.bf16.msrb.mxu0 %v3894_v7  ;;  %v4429_v20 = vld [vmem:[%s6971_s5 + $0xf4] sm:$0xf] }
 0x1bc   : > { %v889_v43 = vmul.f32 %v4693_v16, %v888_v37  ;;  %v898_v57 = vsub.f32 1.5, %v897_v51  ;;  %v3966_v18 = vor.u32 %v4430_v8, %v3965_v45  ;;  %v3885_v37 = vld [vmem:[%s6971_s5 + $0x50] sm:$0xf]  ;;  %v743_v51 = vsub.f32 %v4945_v53, %v5388_v56  ;;  %1779 = vmatpush.bf16.msrb.mxu2 %v3898_v25  ;;  %v4409_v59 = vld [vmem:[%s6971_s5 + $0x54] sm:$0xf] }
 0x1bd   : > { %4696 = vrsqrt.f32 %v5461_v5  ;;  %v5486_v39 = vadd.f32 1e-05, %v715_v23  ;;  %v3957_v3 = vld [vmem:[%s6971_s5 + $0xe0] sm:$0xf]  ;;  %v4428_v55 = vld [vmem:[%s6971_s5 + $0xe4] sm:$0xf0]  ;;  %vm910_vm12 = vweird.f32 %v5461_v5 }
 0x1be   : > { %v899_v38 = vmul.f32 %v5441_v4, %v898_v57  ;;  %v893_v1 = vsel %vm892_vm8, %v4693_v16, %v889_v43  ;;  %v3887_v43 = vld [vmem:[%s6971_s5 + $0x58] sm:$0xf0]  ;;  %1729 = vmatpush.bf16.msrb.mxu1 %v3966_v18  ;;  %v3886_v57 = vor.u32 %v4410_v26, %v3885_v37  ;;  %v3959_v8 = vld [vmem:[%s6971_s5 + $0xe8] sm:$0xf0] }
 0x1bf   : > { %4698 = vrsqrt.f32 %v5486_v39  ;;  %v948_v16 = vmul.f32 %v893_v1, %v740_v50  ;;  %v949_v23 = vmul.f32 %v893_v1, %v741_v15  ;;  %v3970_v50 = vor.u32 %v4429_v20, %v3967_v0  ;;  %v4427_v15 = vld [vmem:[%s6971_s5 + $0xe4] sm:$0xf]  ;;  %v4408_v1 = vld [vmem:[%s6971_s5 + $0x44] sm:$0xf0]  ;;  %v3879_v37 = vld [vmem:[%s6971_s5 + $0x48] sm:$0xf0] }
 0x1c0   : > { %v903_v56 = vsel %vm5481_vm10, %v5441_v4, %v899_v38  ;;  %v3890_v7 = vor.u32 %v4409_v59, %v3887_v43  ;;  %v3877_v38 = vld [vmem:[%s6971_s5 + $0x40] sm:$0xf]  ;;  %1682 = vmatpush.bf16.msrb.mxu0 %v3886_v57  ;;  %v3962_v18 = vor.u32 %v4427_v15, %v3959_v8  ;;  %v4407_v0 = vld [vmem:[%s6971_s5 + $0x44] sm:$0xf]  ;;  %vm920_vm15 = vweird.f32 %v5486_v39 }
 0x1c1   : > { %v950_v25 = vmul.f32 %v903_v56, %v742_v27  ;;  %v985_v58 = vmul.f32 %v5214_v6, %v948_v16  ;;  %v951_v4 = vmul.f32 %v903_v56, %v743_v51  ;;  %v986_v45 = vmul.f32 %v5220_v14, %v949_v23  ;;  %1827 = vmatpush.bf16.msrb.mxu3 %v3970_v50 }
 0x1c2   : > { %v3958_v27 = vor.u32 %v4428_v55, %v3957_v3  ;;  %v3878_v20 = vor.u32 %v4408_v1, %v3877_v38  ;;  %1780 = vmatpush.bf16.msrb.mxu2 %v3890_v7  ;;  %v3882_v59 = vor.u32 %v4407_v0, %v3879_v37  ;;  %v3949_v55 = vld [vmem:[%s6971_s5 + $0xd0] sm:$0xf]  ;;  %v4426_v7 = vld [vmem:[%s6971_s5 + $0xd4] sm:$0xf0] }
 0x1c3   : > { %v5547_v51 = vpop.eup %4696  ;;  %v987_v16 = vmul.f32 %v5214_v6, %v950_v25  ;;  %v988_v23 = vmul.f32 %v5220_v14, %v951_v4  ;;  %v1022_v56 = vadd.f32 %v5225_v24, %v985_v58  ;;  %v1023_v57 = vadd.f32 %v5231_v44, %v986_v45  ;;  %v4425_v4 = vld [vmem:[%s6971_s5 + $0xd4] sm:$0xf]  ;;  %v3951_v45 = vld [vmem:[%s6971_s5 + $0xd8] sm:$0xf0]  ;;  %v3869_v1 = vld [vmem:[%s6971_s5 + $0x30] sm:$0xf] }
 0x1c4   : > { %v905_v26 = vmul.f32 %v5547_v51, %v5461_v5  ;;  %1730 = vmatpush.bf16.msrb.mxu1 %v3958_v27  ;;  %1683 = vmatpush.bf16.msrb.mxu0 %v3878_v20  ;;  %v3950_v58 = vor.u32 %v4426_v7, %v3949_v55  ;;  %v4406_v27 = vld [vmem:[%s6971_s5 + $0x34] sm:$0xf0]  ;;  %v3954_v0 = vor.u32 %v4425_v4, %v3951_v45  ;;  %vm911_vm11 = vweird.f32 %v5547_v51  ;;  %v3943_v7 = vld [vmem:[%s6971_s5 + $0xc8] sm:$0xf0] }
 0x1c5   : > { %v5553_v43 = vpop.eup %4698  ;;  %v1024_v50 = vadd.f32 %v5225_v24, %v987_v16  ;;  %v1025_v3 = vadd.f32 %v5231_v44, %v988_v23  ;;  %1828 = vmatpush.bf16.msrb.mxu3 %v3962_v18  ;;  %v3870_v37 = vor.u32 %v4406_v27, %v3869_v1  ;;  %v4405_v16 = vld [vmem:[%s6971_s5 + $0x34] sm:$0xf]  ;;  %v3871_v23 = vld [vmem:[%s6971_s5 + $0x38] sm:$0xf0]  ;;  %vm5614_vm14 = vmor %vm910_vm12, %vm911_vm11  ;;  %v744_v27 = vsub.f32 %v5055_v22, %v5433_v36 }
 0x1c6   : > { %v906_v15 = vmul.f32 %v5547_v51, %v905_v26  ;;  %v915_v25 = vmul.f32 %v5553_v43, %v5486_v39  ;;  %1781 = vmatpush.bf16.msrb.mxu2 %v3882_v59  ;;  %v3874_v26 = vor.u32 %v4405_v16, %v3871_v23  ;;  %v3941_v59 = vld [vmem:[%s6971_s5 + $0xc0] sm:$0xf]  ;;  %vm921_vm13 = vweird.f32 %v5553_v43  ;;  %v3863_v1 = vld [vmem:[%s6971_s5 + $0x28] sm:$0xf0]  ;;  %v4421_v16 = vld [vmem:[%s6971_s5 + $0xb4] sm:$0xf] }
 0x1c7   : > { %v1042_v8 = vpack.c.bf16 %v1024_v50, %v1022_v56  ;;  %v1043_v38 = vpack.c.bf16 %v1025_v3, %v1023_v57  ;;  %v4424_v56 = vld [vmem:[%s6971_s5 + $0xc4] sm:$0xf0]  ;;  %v4423_v50 = vld [vmem:[%s6971_s5 + $0xc4] sm:$0xf]  ;;  %vm922_vm0 = vmor %vm920_vm15, %vm921_vm13 }
 0x1c8   : > { %v907_v18 = vmul.f32 0.5, %v906_v15  ;;  %v916_v20 = vmul.f32 %v5553_v43, %v915_v25  ;;  %1731 = vmatpush.bf16.msrb.mxu1 %v3950_v58  ;;  %v3942_v55 = vor.u32 %v4424_v56, %v3941_v59  ;;  %v3861_v15 = vld [vmem:[%s6971_s5 + $0x20] sm:$0xf]  ;;  %v4404_v25 = vld [vmem:[%s6971_s5 + $0x24] sm:$0xf0]  ;;  %1684 = vmatpush.bf16.msrb.mxu0 %v3870_v37  ;;  %v746_v59 = vsub.f32 %v5063_v40, %v5438_v21 }
 0x1c9   : > { %1282 = vmatmul.bf16.gmra.mxu0 %v1042_v8  ;;  %1380 = vmatmul.bf16.gmra.mxu2 %v1042_v8  ;;  %v4403_v58 = vld [vmem:[%s6971_s5 + $0x24] sm:$0xf]  ;;  %v3946_v8 = vor.u32 %v4423_v50, %v3943_v7  ;;  %v4422_v37 = vld [vmem:[%s6971_s5 + $0xb4] sm:$0xf0]  ;;  %v747_v56 = vsub.f32 %v5065_v41, %v5438_v21 }
 0x1ca   : > { %v908_v57 = vsub.f32 1.5, %v907_v18  ;;  %v917_v3 = vmul.f32 0.5, %v916_v20  ;;  %1331 = vmatmul.bf16.gmra.mxu1 %v1043_v38  ;;  %1429 = vmatmul.bf16.gmra.mxu3 %v1043_v38  ;;  %v3862_v38 = vor.u32 %v4404_v25, %v3861_v15  ;;  %v745_v18 = vsub.f32 %v5067_v42, %v5433_v36  ;;  %v3855_v25 = vld [vmem:[%s6971_s5 + $0x18] sm:$0xf0] }
 0x1cb   : > { %1829 = vmatpush.bf16.msrb.mxu3 %v3954_v0  ;;  %1782 = vmatpush.bf16.msrb.mxu2 %v3874_v26  ;;  %v3866_v20 = vor.u32 %v4403_v58, %v3863_v1  ;;  %v3933_v0 = vld [vmem:[%s6971_s5 + $0xb0] sm:$0xf]  ;;  %v3935_v26 = vld [vmem:[%s6971_s5 + $0xb8] sm:$0xf0]  ;;  %v3925_v1 = vld [vmem:[%s6971_s5 + $0xa0] sm:$0xf] }
 0x1cc   : > { %v909_v4 = vmul.f32 %v5547_v51, %v908_v57  ;;  %v918_v45 = vsub.f32 1.5, %v917_v3  ;;  %1732 = vmatpush.bf16.msrb.mxu1 %v3942_v55  ;;  %v3934_v39 = vor.u32 %v4422_v37, %v3933_v0  ;;  %v3853_v3 = vld [vmem:[%s6971_s5 + $0x10] sm:$0xf]  ;;  %v4401_v55 = vld [vmem:[%s6971_s5 + $0x14] sm:$0xf]  ;;  %1685 = vmatpush.bf16.msrb.mxu0 %v3862_v38  ;;  %v3938_v15 = vor.u32 %v4421_v16, %v3935_v26 }
 0x1cd   : > { %v3858_v38 = vor.u32 %v4401_v55, %v3855_v25  ;;  %v3845_v37 = vld [vmem:[%s6971_s5] sm:$0xf]  ;;  %v4400_v16 = vld [vmem:[%s6971_s5 + $0x4] sm:$0xf0] }
 0x1ce   : > { %v919_v23 = vmul.f32 %v5553_v43, %v918_v45  ;;  %v913_v36 = vsel %vm5614_vm14, %v5547_v51, %v909_v4  ;;  %v4402_v51 = vld [vmem:[%s6971_s5 + $0x14] sm:$0xf0]  ;;  %v4416_v25 = vld [vmem:[%s6971_s5 + $0x84] sm:$0xf0] }
 0x1cf   : > { %v952_v50 = vmul.f32 %v913_v36, %v744_v27  ;;  %v953_v57 = vmul.f32 %v913_v36, %v745_v18  ;;  %1830 = vmatpush.bf16.msrb.mxu3 %v3946_v8  ;;  %v3854_v21 = vor.u32 %v4402_v51, %v3853_v3  ;;  %1783 = vmatpush.bf16.msrb.mxu2 %v3866_v20  ;;  %v4419_v8 = vld [vmem:[%s6971_s5 + $0xa4] sm:$0xf]  ;;  %v3927_v18 = vld [vmem:[%s6971_s5 + $0xa8] sm:$0xf0]  ;;  %v4418_v3 = vld [vmem:[%s6971_s5 + $0x94] sm:$0xf0] }
 0x1d0   : > { %v923_v7 = vsel %vm922_vm0, %v5553_v43, %v919_v23  ;;  %v4420_v43 = vld [vmem:[%s6971_s5 + $0xa4] sm:$0xf0]  ;;  %1733 = vmatpush.bf16.msrb.mxu1 %v3934_v39  ;;  %v4399_v23 = vld [vmem:[%s6971_s5 + $0x4] sm:$0xf]  ;;  %v3930_v39 = vor.u32 %v4419_v8, %v3927_v18  ;;  %v4417_v51 = vld [vmem:[%s6971_s5 + $0x94] sm:$0xf] }
 0x1d1   : > { %v954_v58 = vmul.f32 %v923_v7, %v746_v59  ;;  %v989_v4 = vmul.f32 %v5214_v6, %v952_v50  ;;  %v955_v5 = vmul.f32 %v923_v7, %v747_v56  ;;  %v990_v45 = vmul.f32 %v5220_v14, %v953_v57  ;;  %1686 = vmatpush.bf16.msrb.mxu0 %v3854_v21  ;;  %v3917_v57 = vld [vmem:[%s6971_s5 + $0x90] sm:$0xf]  ;;  %v3909_v21 = vld [vmem:[%s6971_s5 + $0x80] sm:$0xf] }
 0x1d2   : > { %v3926_v27 = vor.u32 %v4420_v43, %v3925_v1  ;;  %v3918_v7 = vor.u32 %v4418_v3, %v3917_v57  ;;  %v1078_v1 = vld [vmem:[%s6970_s4] ss:$2 sm:$0x3] }
 0x1d3   : > { %v991_v20 = vmul.f32 %v5214_v6, %v954_v58  ;;  %v992_v0 = vmul.f32 %v5220_v14, %v955_v5  ;;  %v1026_v36 = vadd.f32 %v5225_v24, %v989_v4  ;;  %1831 = vmatpush.bf16.msrb.mxu3 %v3938_v15  ;;  %v3846_v6 = vor.u32 %v4400_v16, %v3845_v37  ;;  %v3847_v14 = vld [vmem:[%s6971_s5 + $0x8] sm:$0xf0]  ;;  %v4415_v58 = vld [vmem:[%s6971_s5 + $0x84] sm:$0xf] }
 0x1d4   : > { %v1027_v59 = vadd.f32 %v5231_v44, %v990_v45  ;;  %1784 = vmatpush.bf16.msrb.mxu2 %v3858_v38  ;;  %v3850_v50 = vor.u32 %v4399_v23, %v3847_v14  ;;  %1734 = vmatpush.bf16.msrb.mxu1 %v3926_v27  ;;  %v3911_v4 = vld [vmem:[%s6971_s5 + $0x88] sm:$0xf0]  ;;  %v3910_v5 = vor.u32 %v4416_v25, %v3909_v21  ;;  %v5720_v8 = vperm.slane %v1078_v1, 0 }
 0x1d5   : > { %v1028_v26 = vadd.f32 %v5225_v24, %v991_v20  ;;  %v1029_v56 = vadd.f32 %v5231_v44, %v992_v0  ;;  %v3919_v24 = vld [vmem:[%s6971_s5 + $0x98] sm:$0xf0]  ;;  %1687 = vmatpush.bf16.msrb.mxu0 %v3846_v6  ;;  %v3914_v45 = vor.u32 %v4415_v58, %v3911_v4  ;;  %v5723_v20 = vperm.slane %v1078_v1, 1 }
 0x1d6   : > { %v3922_v15 = vor.u32 %v4417_v51, %v3919_v24 }
 0x1d7   : > { %v1044_v44 = vpack.c.bf16 %v1028_v26, %v1026_v36  ;;  %v1045_v55 = vpack.c.bf16 %v1029_v56, %v1027_v59  ;;  %1832 = vmatpush.bf16.msrb.mxu3 %v3930_v39 }
 0x1d8   : > { %1785 = vmatpush.bf16.msrb.mxu2 %v3850_v50  ;;  %1735 = vmatpush.bf16.msrb.mxu1 %v3918_v7 }
 0x1d9   : > { %1287 = vmatmul.bf16.gmra.mxu0 %v1044_v44  ;;  %1385 = vmatmul.bf16.gmra.mxu2 %v1044_v44 }
 0x1da   : > { %1336 = vmatmul.bf16.gmra.mxu1 %v1045_v55  ;;  %1434 = vmatmul.bf16.gmra.mxu3 %v1045_v55 }
 0x1db   : > { %1833 = vmatpush.bf16.msrb.mxu3 %v3922_v15 }
 0x1dc   : > { %1736 = vmatpush.bf16.msrb.mxu1 %v3910_v5 }
 0x1df   : > { %1834 = vmatpush.bf16.msrb.mxu3 %v3914_v45 }
 0x1e6   : > { %v1253_v43 = vpop.f32.mrf.mxu0 }
 0x1e7   : > { %v1302_v38 = vpop.f32.mrf.mxu1  ;;  %v1254_v27 = vadd.f32 %v1253_v43, %v5720_v8 }
 0x1e9   : > { %v1303_v16 = vadd.f32 %v1302_v38, %v1254_v27 }
 0x1eb   : > { %v1440_v14 = vmax.f32 %v1303_v16, 0.0 }
 0x1ec   : > { %v1351_v18 = vpop.f32.mrf.mxu2 }
 0x1ed   : > { %v1400_v0 = vpop.f32.mrf.mxu3  ;;  %v1352_v39 = vadd.f32 %v1351_v18, %v5723_v20 }
 0x1ee   : > { %v1255_v37 = vpop.f32.mrf.mxu0 }
 0x1ef   : > { %v1256_v23 = vadd.f32 %v1255_v37, %v5720_v8  ;;  %v1304_v36 = vpop.f32.mrf.mxu1  ;;  %v1401_v56 = vadd.f32 %v1400_v0, %v1352_v39 }
 0x1f1   : > { %v1305_v6 = vadd.f32 %v1304_v36, %v1256_v23  ;;  %v1441_v55 = vmax.f32 %v1401_v56, 0.0 }
 0x1f3   : > { %v1442_v26 = vmax.f32 %v1305_v6, 0.0 }
 0x1f4   : > { %v1353_v59 = vpop.f32.mrf.mxu2 }
 0x1f5   : > { %v1354_v50 = vadd.f32 %v1353_v59, %v5723_v20  ;;  %v1402_v57 = vpop.f32.mrf.mxu3  ;;  %v1472_v3 = vpack.c.bf16 %v1442_v26, %v1440_v14 }
 0x1f6   : > { %v1258_v51 = vpop.f32.mrf.mxu0 }
 0x1f7   : > { %v1403_v24 = vadd.f32 %v1402_v57, %v1354_v50  ;;  %v1307_v44 = vpop.f32.mrf.mxu1  ;;  %1688 = vmatmul.bf16.vlgmr.msrb.gmra.mxu0 %v1472_v3  ;;  %1786 = vmatmul.bf16.vlgmr.msrb.gmra.mxu2 %v1472_v3  ;;  %v1259_v15 = vadd.f32 %v1258_v51, %v5720_v8 }
 0x1f9   : > { %v1443_v7 = vmax.f32 %v1403_v24, 0.0  ;;  %v1308_v5 = vadd.f32 %v1307_v44, %v1259_v15 }
 0x1fb   : > { %v1473_v21 = vpack.c.bf16 %v1443_v7, %v1441_v55  ;;  %v1444_v27 = vmax.f32 %v1308_v5, 0.0 }
 0x1fc   : > { %v1356_v25 = vpop.f32.mrf.mxu2 }
 0x1fd   : > { %v1405_v58 = vpop.f32.mrf.mxu3  ;;  %1737 = vmatmul.bf16.vlgmr.msrb.gmra.mxu1 %v1473_v21  ;;  %1835 = vmatmul.bf16.vlgmr.msrb.gmra.mxu3 %v1473_v21  ;;  %v1357_v43 = vadd.f32 %v1356_v25, %v5723_v20 }
 0x1fe   : > { %v1260_v4 = vpop.f32.mrf.mxu0 }
 0x1ff   : > { %v1261_v45 = vadd.f32 %v1260_v4, %v5720_v8  ;;  %v1309_v1 = vpop.f32.mrf.mxu1  ;;  %v1406_v37 = vadd.f32 %v1405_v58, %v1357_v43 }
 0x201   : > { %v1310_v38 = vadd.f32 %v1309_v1, %v1261_v45  ;;  %v1445_v26 = vmax.f32 %v1406_v37, 0.0 }
 0x203   : > { %v1446_v18 = vmax.f32 %v1310_v38, 0.0 }
 0x204   : > { %v1358_v0 = vpop.f32.mrf.mxu2 }
 0x205   : > { %v1359_v16 = vadd.f32 %v1358_v0, %v5723_v20  ;;  %v1407_v23 = vpop.f32.mrf.mxu3  ;;  %v1474_v36 = vpack.c.bf16 %v1446_v18, %v1444_v27 }
 0x206   : > { %v1263_v39 = vpop.f32.mrf.mxu0 }
 0x207   : > { %v1408_v6 = vadd.f32 %v1407_v23, %v1359_v16  ;;  %v1312_v14 = vpop.f32.mrf.mxu1  ;;  %1693 = vmatmul.bf16.gmra.mxu0 %v1474_v36  ;;  %1791 = vmatmul.bf16.gmra.mxu2 %v1474_v36  ;;  %v1264_v56 = vadd.f32 %v1263_v39, %v5720_v8 }
 0x209   : > { %v1447_v59 = vmax.f32 %v1408_v6, 0.0  ;;  %v1313_v24 = vadd.f32 %v1312_v14, %v1264_v56 }
 0x20b   : > { %v1475_v50 = vpack.c.bf16 %v1447_v59, %v1445_v26  ;;  %v1448_v21 = vmax.f32 %v1313_v24, 0.0 }
 0x20c   : > { %v1361_v57 = vpop.f32.mrf.mxu2 }
 0x20d   : > { %v1410_v3 = vpop.f32.mrf.mxu3  ;;  %1742 = vmatmul.bf16.gmra.mxu1 %v1475_v50  ;;  %1840 = vmatmul.bf16.gmra.mxu3 %v1475_v50  ;;  %v1362_v7 = vadd.f32 %v1361_v57, %v5723_v20 }
 0x20e   : > { %v1265_v51 = vpop.f32.mrf.mxu0 }
 0x20f   : > { %v1266_v44 = vadd.f32 %v1265_v51, %v5720_v8  ;;  %v1314_v55 = vpop.f32.mrf.mxu1  ;;  %v1411_v4 = vadd.f32 %v1410_v3, %v1362_v7 }
 0x211   : > { %v1315_v15 = vadd.f32 %v1314_v55, %v1266_v44  ;;  %v1449_v18 = vmax.f32 %v1411_v4, 0.0 }
 0x213   : > { %v1450_v25 = vmax.f32 %v1315_v15, 0.0 }
 0x214   : > { %v1363_v58 = vpop.f32.mrf.mxu2 }
 0x215   : > { %v1364_v5 = vadd.f32 %v1363_v58, %v5723_v20  ;;  %v1412_v45 = vpop.f32.mrf.mxu3  ;;  %v1476_v1 = vpack.c.bf16 %v1450_v25, %v1448_v21 }
 0x216   : > { %v1268_v43 = vpop.f32.mrf.mxu0 }
 0x217   : > { %v1413_v38 = vadd.f32 %v1412_v45, %v1364_v5  ;;  %v1317_v27 = vpop.f32.mrf.mxu1  ;;  %1698 = vmatmul.bf16.gmra.mxu0 %v1476_v1  ;;  %1796 = vmatmul.bf16.gmra.mxu2 %v1476_v1  ;;  %v1269_v37 = vadd.f32 %v1268_v43, %v5720_v8 }
 0x219   : > { %v1451_v0 = vmax.f32 %v1413_v38, 0.0  ;;  %v1318_v6 = vadd.f32 %v1317_v27, %v1269_v37 }
 0x21b   : > { %v1477_v16 = vpack.c.bf16 %v1451_v0, %v1449_v18  ;;  %v1452_v50 = vmax.f32 %v1318_v6, 0.0 }
 0x21c   : > { %v1366_v23 = vpop.f32.mrf.mxu2 }
 0x21d   : > { %v1415_v36 = vpop.f32.mrf.mxu3  ;;  %1747 = vmatmul.bf16.gmra.mxu1 %v1477_v16  ;;  %1845 = vmatmul.bf16.gmra.mxu3 %v1477_v16  ;;  %v1367_v59 = vadd.f32 %v1366_v23, %v5723_v20 }
 0x21e   : > { %v1270_v39 = vpop.f32.mrf.mxu0 }
 0x21f   : > { %v1271_v14 = vadd.f32 %v1270_v39, %v5720_v8  ;;  %v1319_v26 = vpop.f32.mrf.mxu1  ;;  %v1416_v51 = vadd.f32 %v1415_v36, %v1367_v59 }
 0x221   : > { %v1320_v56 = vadd.f32 %v1319_v26, %v1271_v14  ;;  %v1453_v25 = vmax.f32 %v1416_v51, 0.0 }
 0x223   : > { %v1454_v57 = vmax.f32 %v1320_v56, 0.0 }
 0x224   : > { %v1368_v3 = vpop.f32.mrf.mxu2 }
 0x225   : > { %v1369_v24 = vadd.f32 %v1368_v3, %v5723_v20  ;;  %v1417_v44 = vpop.f32.mrf.mxu3  ;;  %v1478_v55 = vpack.c.bf16 %v1454_v57, %v1452_v50 }
 0x226   : > { %v1273_v7 = vpop.f32.mrf.mxu0 }
 0x227   : > { %v1418_v15 = vadd.f32 %v1417_v44, %v1369_v24  ;;  %v1322_v21 = vpop.f32.mrf.mxu1  ;;  %1703 = vmatmul.bf16.gmra.mxu0 %v1478_v55  ;;  %1801 = vmatmul.bf16.gmra.mxu2 %v1478_v55  ;;  %v1274_v4 = vadd.f32 %v1273_v7, %v5720_v8 }
 0x229   : > { %v1455_v58 = vmax.f32 %v1418_v15, 0.0  ;;  %v1323_v38 = vadd.f32 %v1322_v21, %v1274_v4 }
 0x22b   : > { %v1479_v5 = vpack.c.bf16 %v1455_v58, %v1453_v25  ;;  %v1456_v16 = vmax.f32 %v1323_v38, 0.0 }
 0x22c   : > { %v1371_v45 = vpop.f32.mrf.mxu2 }
 0x22d   : > { %v1420_v1 = vpop.f32.mrf.mxu3  ;;  %1752 = vmatmul.bf16.gmra.mxu1 %v1479_v5  ;;  %1850 = vmatmul.bf16.gmra.mxu3 %v1479_v5  ;;  %v1372_v0 = vadd.f32 %v1371_v45, %v5723_v20 }
 0x22e   : > { %v1275_v43 = vpop.f32.mrf.mxu0 }
 0x22f   : > { %v1276_v27 = vadd.f32 %v1275_v43, %v5720_v8  ;;  %v1324_v18 = vpop.f32.mrf.mxu1  ;;  %v1421_v39 = vadd.f32 %v1420_v1, %v1372_v0 }
 0x231   : > { %v1325_v37 = vadd.f32 %v1324_v18, %v1276_v27  ;;  %v1457_v57 = vmax.f32 %v1421_v39, 0.0 }
 0x233   : > { %v1458_v23 = vmax.f32 %v1325_v37, 0.0 }
 0x234   : > { %v1373_v36 = vpop.f32.mrf.mxu2 }
 0x235   : > { %v1374_v6 = vadd.f32 %v1373_v36, %v5723_v20  ;;  %v1422_v14 = vpop.f32.mrf.mxu3  ;;  %v1480_v26 = vpack.c.bf16 %v1458_v23, %v1456_v16 }
 0x236   : > { %v1278_v59 = vpop.f32.mrf.mxu0 }
 0x237   : > { %v1423_v56 = vadd.f32 %v1422_v14, %v1374_v6  ;;  %v1327_v50 = vpop.f32.mrf.mxu1  ;;  %1708 = vmatmul.bf16.gmra.mxu0 %v1480_v26  ;;  %1806 = vmatmul.bf16.gmra.mxu2 %v1480_v26  ;;  %v1279_v51 = vadd.f32 %v1278_v59, %v5720_v8 }
 0x239   : > { %v1459_v3 = vmax.f32 %v1423_v56, 0.0  ;;  %v1328_v15 = vadd.f32 %v1327_v50, %v1279_v51 }
 0x23b   : > { %v1481_v24 = vpack.c.bf16 %v1459_v3, %v1457_v57  ;;  %v1460_v5 = vmax.f32 %v1328_v15, 0.0 }
 0x23c   : > { %v1376_v44 = vpop.f32.mrf.mxu2 }
 0x23d   : > { %v1425_v55 = vpop.f32.mrf.mxu3  ;;  %1757 = vmatmul.bf16.gmra.mxu1 %v1481_v24  ;;  %1855 = vmatmul.bf16.gmra.mxu3 %v1481_v24  ;;  %v1377_v58 = vadd.f32 %v1376_v44, %v5723_v20 }
 0x23e   : > { %v1280_v7 = vpop.f32.mrf.mxu0 }
 0x23f   : > { %v1281_v21 = vadd.f32 %v1280_v7, %v5720_v8  ;;  %v1329_v25 = vpop.f32.mrf.mxu1  ;;  %v1426_v43 = vadd.f32 %v1425_v55, %v1377_v58 }
 0x241   : > { %v1330_v4 = vadd.f32 %v1329_v25, %v1281_v21  ;;  %v1461_v23 = vmax.f32 %v1426_v43, 0.0 }
 0x243   : > { %v1462_v45 = vmax.f32 %v1330_v4, 0.0 }
 0x244   : > { %v1378_v1 = vpop.f32.mrf.mxu2 }
 0x245   : > { %v1379_v38 = vadd.f32 %v1378_v1, %v5723_v20  ;;  %v1427_v27 = vpop.f32.mrf.mxu3  ;;  %v1482_v18 = vpack.c.bf16 %v1462_v45, %v1460_v5 }
 0x246   : > { %v1283_v0 = vpop.f32.mrf.mxu0 }
 0x247   : > { %v1428_v37 = vadd.f32 %v1427_v27, %v1379_v38  ;;  %v1332_v16 = vpop.f32.mrf.mxu1  ;;  %1713 = vmatmul.bf16.gmra.mxu0 %v1482_v18  ;;  %1811 = vmatmul.bf16.gmra.mxu2 %v1482_v18  ;;  %v1284_v39 = vadd.f32 %v1283_v0, %v5720_v8 }
 0x249   : > { %v1463_v36 = vmax.f32 %v1428_v37, 0.0  ;;  %v1333_v56 = vadd.f32 %v1332_v16, %v1284_v39 }
 0x24b   : > { %v1483_v6 = vpack.c.bf16 %v1463_v36, %v1461_v23  ;;  %v1464_v24 = vmax.f32 %v1333_v56, 0.0 }
 0x24c   : > { %v1381_v14 = vpop.f32.mrf.mxu2 }
 0x24d   : > { %v1430_v26 = vpop.f32.mrf.mxu3  ;;  %1762 = vmatmul.bf16.gmra.mxu1 %v1483_v6  ;;  %1860 = vmatmul.bf16.gmra.mxu3 %v1483_v6  ;;  %v1382_v3 = vadd.f32 %v1381_v14, %v5723_v20 }
 0x24e   : > { %v1285_v59 = vpop.f32.mrf.mxu0 }
 0x24f   : > { %v1286_v50 = vadd.f32 %v1285_v59, %v5720_v8  ;;  %v1334_v57 = vpop.f32.mrf.mxu1  ;;  %v1431_v7 = vadd.f32 %v1430_v26, %v1382_v3 }
 0x251   : > { %v1335_v51 = vadd.f32 %v1334_v57, %v1286_v50  ;;  %v1465_v45 = vmax.f32 %v1431_v7, 0.0 }
 0x253   : > { %v1466_v44 = vmax.f32 %v1335_v51, 0.0 }
 0x254   : > { %v1383_v55 = vpop.f32.mrf.mxu2 }
 0x255   : > { %v1384_v15 = vadd.f32 %v1383_v55, %v5723_v20  ;;  %v1432_v21 = vpop.f32.mrf.mxu3  ;;  %v1484_v25 = vpack.c.bf16 %v1466_v44, %v1464_v24 }
 0x256   : > { %v1288_v58 = vpop.f32.mrf.mxu0 }
 0x257   : > { %v1433_v4 = vadd.f32 %v1432_v21, %v1384_v15  ;;  %v1337_v5 = vpop.f32.mrf.mxu1  ;;  %1718 = vmatmul.bf16.gmra.mxu0 %v1484_v25  ;;  %1816 = vmatmul.bf16.gmra.mxu2 %v1484_v25  ;;  %v1289_v43 = vadd.f32 %v1288_v58, %v5720_v8  ;;  %v1908_v21 = vld [vmem:[%s6972_s6] ss:$2 sm:$0x3] }
 0x258   : > { %v5760_v58 = vperm.slane %v1908_v21, 0 }
 0x259   : > { %v1467_v1 = vmax.f32 %v1433_v4, 0.0  ;;  %v1338_v37 = vadd.f32 %v1337_v5, %v1289_v43 }
 0x25b   : > { %v1485_v38 = vpack.c.bf16 %v1467_v1, %v1465_v45  ;;  %v1468_v6 = vmax.f32 %v1338_v37, 0.0  ;;  %v5762_v45 = vperm.slane %v1908_v21, 1 }
 0x25c   : > { %v1386_v27 = vpop.f32.mrf.mxu2 }
 0x25d   : > { %v1435_v18 = vpop.f32.mrf.mxu3  ;;  %1767 = vmatmul.bf16.gmra.mxu1 %v1485_v38  ;;  %1865 = vmatmul.bf16.gmra.mxu3 %v1485_v38  ;;  %v1387_v36 = vadd.f32 %v1386_v27, %v5723_v20 }
 0x25e   : > { %v1290_v0 = vpop.f32.mrf.mxu0 }
 0x25f   : > { %v1291_v16 = vadd.f32 %v1290_v0, %v5720_v8  ;;  %v1339_v23 = vpop.f32.mrf.mxu1  ;;  %v1436_v59 = vadd.f32 %v1435_v18, %v1387_v36 }
 0x261   : > { %v1340_v39 = vadd.f32 %v1339_v23, %v1291_v16  ;;  %v1469_v51 = vmax.f32 %v1436_v59, 0.0 }
 0x263   : > { %v1470_v14 = vmax.f32 %v1340_v39, 0.0  ;;  %v6997_v39 = vld [vmem:[#allocation3_spill] sm:$0xff] }
 0x264   : > { %v1388_v26 = vpop.f32.mrf.mxu2 }
 0x265   : > { %v1389_v56 = vadd.f32 %v1388_v26, %v5723_v20  ;;  %v1486_v50 = vpack.c.bf16 %v1470_v14, %v1468_v6  ;;  %v1437_v57 = vpop.f32.mrf.mxu3 }
 0x267   : > { %v1438_v3 = vadd.f32 %v1437_v57, %v1389_v56  ;;  %1723 = vmatmul.bf16.gmra.mxu0 %v1486_v50  ;;  %1821 = vmatmul.bf16.gmra.mxu2 %v1486_v50  ;;  %v6998_v56 = vld [vmem:[#allocation2_spill] sm:$0xff] }
 0x269   : > { %v1471_v24 = vmax.f32 %v1438_v3, 0.0 }
 0x26b   : > { %v1487_v44 = vpack.c.bf16 %v1471_v24, %v1469_v51 }
 0x26d   : > { %1772 = vmatmul.bf16.gmra.mxu1 %v1487_v44  ;;  %1870 = vmatmul.bf16.gmra.mxu3 %v1487_v44 }
 0x274   : > { %v1689_v8 = vpop.f32.mrf.mxu0 }
 0x27a   : > { %v1738_v55 = vpop.f32.mrf.mxu1  ;;  %v1787_v7 = vpop.f32.mrf.mxu2 }
 0x27b   : > { %v1739_v15 = vadd.f32 %v1738_v55, %v1689_v8 }
 0x27c   : > { %v1691_v25 = vpop.f32.mrf.mxu0 }
 0x27d   : > { %v1876_v20 = vadd.f32 %v4821_v17, %v1739_v15 }
 0x27f   : > { %v5765_v38 = vadd.f32 %v5760_v58, %v1876_v20 }
 0x280   : > { %v1836_v4 = vpop.f32.mrf.mxu3 }
 0x281   : > { %v1837_v5 = vadd.f32 %v1836_v4, %v1787_v7  ;;  %v2014_v16 = vmul.f32 %v5765_v38, %v5765_v38 }
 0x282   : > { %v1740_v1 = vpop.f32.mrf.mxu1  ;;  %v1789_v43 = vpop.f32.mrf.mxu2 }
 0x283   : > { %v1877_v27 = vadd.f32 %v4823_v19, %v1837_v5  ;;  %v1741_v37 = vadd.f32 %v1740_v1, %v1691_v25 }
 0x284   : > { %v1694_v18 = vpop.f32.mrf.mxu0 }
 0x285   : > { %v5769_v0 = vadd.f32 %v5762_v45, %v1877_v27  ;;  %v1878_v6 = vadd.f32 %v6997_v39, %v1741_v37 }
 0x287   : > { %v1950_v17 = vadd.f32 %v5769_v0, %v5765_v38  ;;  %v2015_v23 = vmul.f32 %v5769_v0, %v5769_v0  ;;  %v5780_v3 = vadd.f32 %v5760_v58, %v1878_v6 }
 0x288   : > { %v1838_v36 = vpop.f32.mrf.mxu3 }
 0x289   : > { %v1839_v14 = vadd.f32 %v1838_v36, %v1789_v43  ;;  %1951 = vadd.xlane.f32.xlu0 %v1950_v17  ;;  %v2046_v19 = vadd.f32 %v2015_v23, %v2014_v16 }
 0x28a   : > { %v1743_v26 = vpop.f32.mrf.mxu1  ;;  %v1792_v59 = vpop.f32.mrf.mxu2 }
 0x28b   : > { %v1879_v50 = vadd.f32 %v6998_v56, %v1839_v14  ;;  %2047 = vadd.xlane.f32.xlu2 %v2046_v19  ;;  %v1744_v24 = vadd.f32 %v1743_v26, %v1694_v18 }
 0x28c   : > { %v1696_v57 = vpop.f32.mrf.mxu0 }
 0x28d   : > { %v5783_v51 = vadd.f32 %v5762_v45, %v1879_v50  ;;  %v1880_v55 = vadd.f32 %v4841_v32, %v1744_v24  ;;  %v2016_v32 = vmul.f32 %v5780_v3, %v5780_v3 }
 0x28f   : > { %v1953_v44 = vadd.f32 %v5783_v51, %v5780_v3  ;;  %v2017_v20 = vmul.f32 %v5783_v51, %v5783_v51  ;;  %v5792_v5 = vadd.f32 %v5760_v58, %v1880_v55 }
 0x290   : > { %v1841_v8 = vpop.f32.mrf.mxu3 }
 0x291   : > { %v1842_v7 = vadd.f32 %v1841_v8, %v1792_v59  ;;  %1954 = vadd.xlane.f32.xlu1 %v1953_v44  ;;  %v2049_v27 = vadd.f32 %v2017_v20, %v2016_v32 }
 0x292   : > { %v1745_v15 = vpop.f32.mrf.mxu1  ;;  %v1794_v21 = vpop.f32.mrf.mxu2 }
 0x293   : > { %v1881_v25 = vadd.f32 %v4845_v34, %v1842_v7  ;;  %v1746_v43 = vadd.f32 %v1745_v15, %v1696_v57 }
 0x294   : > { %v1699_v4 = vpop.f32.mrf.mxu0 }
 0x295   : > { %v5795_v1 = vadd.f32 %v5762_v45, %v1881_v25  ;;  %v1882_v34 = vadd.f32 %v4847_v35, %v1746_v43  ;;  %v2018_v35 = vmul.f32 %v5792_v5, %v5792_v5 }
 0x297   : > { %v1956_v18 = vadd.f32 %v5795_v1, %v5792_v5  ;;  %v2019_v39 = vmul.f32 %v5795_v1, %v5795_v1  ;;  %v5806_v14 = vadd.f32 %v5760_v58, %v1882_v34 }
 0x298   : > { %v1843_v37 = vpop.f32.mrf.mxu3 }
 0x299   : > { %v1844_v17 = vadd.f32 %v1843_v37, %v1794_v21  ;;  %2050 = vadd.xlane.f32.xlu1 %v2049_v27  ;;  %1957 = vadd.xlane.f32.xlu2 %v1956_v18  ;;  %v2052_v59 = vadd.f32 %v2019_v39, %v2018_v35 }
 0x29a   : > { %v1748_v16 = vpop.f32.mrf.mxu1  ;;  %v1797_v23 = vpop.f32.mrf.mxu2 }
 0x29b   : > { %v1883_v36 = vadd.f32 %v4843_v33, %v1844_v17  ;;  %v1749_v26 = vadd.f32 %v1748_v16, %v1699_v4 }
 0x29c   : > { %v1701_v6 = vpop.f32.mrf.mxu0 }
 0x29d   : > { %v5809_v19 = vadd.f32 %v5762_v45, %v1883_v36  ;;  %v1884_v33 = vadd.f32 %v4861_v46, %v1749_v26  ;;  %v2020_v46 = vmul.f32 %v5806_v14, %v5806_v14 }
 0x29f   : > { %6999 = vst [vmem:[#allocation3_spill] sm:$0xff] %v5809_v19  ;;  %v1959_v56 = vadd.f32 %v5809_v19, %v5806_v14  ;;  %v2021_v55 = vmul.f32 %v5809_v19, %v5809_v19  ;;  %v5820_v15 = vadd.f32 %v5760_v58, %v1884_v33 }
 0x2a0   : > { %v1846_v50 = vpop.f32.mrf.mxu3 }
 0x2a1   : > { %v1847_v57 = vadd.f32 %v1846_v50, %v1797_v23  ;;  %2053 = vadd.xlane.f32.xlu2 %v2052_v59  ;;  %1960 = vadd.xlane.f32.xlu1 %v1959_v56  ;;  %v2055_v20 = vadd.f32 %v2021_v55, %v2020_v46 }
 0x2a2   : > { %v1750_v24 = vpop.f32.mrf.mxu1  ;;  %v1799_v44 = vpop.f32.mrf.mxu2 }
 0x2a3   : > { %v1885_v8 = vadd.f32 %v4865_v48, %v1847_v57  ;;  %v1751_v25 = vadd.f32 %v1750_v24, %v1701_v6 }
 0x2a4   : > { %v1704_v7 = vpop.f32.mrf.mxu0 }
 0x2a5   : > { %v5823_v21 = vadd.f32 %v5762_v45, %v1885_v8  ;;  %v1886_v48 = vadd.f32 %v4867_v49, %v1751_v25  ;;  %v2022_v49 = vmul.f32 %v5820_v15, %v5820_v15 }
 0x2a7   : > { %v1962_v4 = vadd.f32 %v5823_v21, %v5820_v15  ;;  %v2023_v34 = vmul.f32 %v5823_v21, %v5823_v21  ;;  %v5834_v16 = vadd.f32 %v5760_v58, %v1886_v48 }
 0x2a8   : > { %v1848_v43 = vpop.f32.mrf.mxu3 }
 0x2a9   : > { %v1849_v32 = vadd.f32 %v1848_v43, %v1799_v44  ;;  %2056 = vadd.xlane.f32.xlu1 %v2055_v20  ;;  %1963 = vadd.xlane.f32.xlu2 %v1962_v4  ;;  %v2058_v39 = vadd.f32 %v2023_v34, %v2022_v49 }
 0x2aa   : > { %v1753_v27 = vpop.f32.mrf.mxu1  ;;  %v1802_v18 = vpop.f32.mrf.mxu2 }
 0x2ab   : > { %v1887_v37 = vadd.f32 %v4863_v47, %v1849_v32  ;;  %v1754_v36 = vadd.f32 %v1753_v27, %v1704_v7 }
 0x2ac   : > { %v1706_v17 = vpop.f32.mrf.mxu0 }
 0x2ad   : > { %v5837_v23 = vadd.f32 %v5762_v45, %v1887_v37  ;;  %v1888_v47 = vadd.f32 %v4881_v60, %v1754_v36  ;;  %v2024_v60 = vmul.f32 %v5834_v16, %v5834_v16 }
 0x2af   : > { %v1965_v6 = vadd.f32 %v5837_v23, %v5834_v16  ;;  %v2025_v33 = vmul.f32 %v5837_v23, %v5837_v23  ;;  %v5848_v24 = vadd.f32 %v5760_v58, %v1888_v47 }
 0x2b0   : > { %v1851_v26 = vpop.f32.mrf.mxu3 }
 0x2b1   : > { %v1852_v35 = vadd.f32 %v1851_v26, %v1802_v18  ;;  %2059 = vadd.xlane.f32.xlu2 %v2058_v39  ;;  %1966 = vadd.xlane.f32.xlu1 %v1965_v6  ;;  %v2061_v55 = vadd.f32 %v2025_v33, %v2024_v60 }
 0x2b2   : > { %v1755_v59 = vpop.f32.mrf.mxu1  ;;  %v1804_v56 = vpop.f32.mrf.mxu2 }
 0x2b3   : > { %v1889_v50 = vadd.f32 %v4885_v62, %v1852_v35  ;;  %v1756_v8 = vadd.f32 %v1755_v59, %v1706_v17 }
 0x2b4   : > { %v1709_v57 = vpop.f32.mrf.mxu0 }
 0x2b5   : > { %v5851_v44 = vadd.f32 %v5762_v45, %v1889_v50  ;;  %v1890_v62 = vadd.f32 %v4887_v63, %v1756_v8  ;;  %v2026_v63 = vmul.f32 %v5848_v24, %v5848_v24 }
 0x2b7   : > { %v1968_v7 = vadd.f32 %v5851_v44, %v5848_v24  ;;  %v2027_v48 = vmul.f32 %v5851_v44, %v5851_v44  ;;  %v5862_v27 = vadd.f32 %v5760_v58, %v1890_v62 }
 0x2b8   : > { %v1853_v25 = vpop.f32.mrf.mxu3 }
 0x2b9   : > { %v1854_v46 = vadd.f32 %v1853_v25, %v1804_v56  ;;  %2062 = vadd.xlane.f32.xlu1 %v2061_v55  ;;  %1969 = vadd.xlane.f32.xlu2 %v1968_v7  ;;  %v2064_v34 = vadd.f32 %v2027_v48, %v2026_v63 }
 0x2ba   : > { %v1758_v20 = vpop.f32.mrf.mxu1  ;;  %v1807_v4 = vpop.f32.mrf.mxu2 }
 0x2bb   : > { %v1891_v43 = vadd.f32 %v4883_v61, %v1854_v46  ;;  %v1759_v37 = vadd.f32 %v1758_v20, %v1709_v57 }
 0x2bc   : > { %v1711_v32 = vpop.f32.mrf.mxu0 }
 0x2bd   : > { %v5865_v18 = vadd.f32 %v5762_v45, %v1891_v43  ;;  %v1892_v61 = vadd.f32 %v4901_v10, %v1759_v37  ;;  %v2028_v10 = vmul.f32 %v5862_v27, %v5862_v27 }
 0x2bf   : > { %v1971_v17 = vadd.f32 %v5865_v18, %v5862_v27  ;;  %v2029_v47 = vmul.f32 %v5865_v18, %v5865_v18  ;;  %v5876_v59 = vadd.f32 %v5760_v58, %v1892_v61 }
 0x2c0   : > { %v1856_v36 = vpop.f32.mrf.mxu3 }
 0x2c1   : > { %v1857_v49 = vadd.f32 %v1856_v36, %v1807_v4  ;;  %2065 = vadd.xlane.f32.xlu2 %v2064_v34  ;;  %1972 = vadd.xlane.f32.xlu1 %v1971_v17  ;;  %v2067_v33 = vadd.f32 %v2029_v47, %v2028_v10 }
 0x2c2   : > { %v1760_v39 = vpop.f32.mrf.mxu1  ;;  %v1809_v6 = vpop.f32.mrf.mxu2 }
 0x2c3   : > { %v1893_v26 = vadd.f32 %v4905_v12, %v1857_v49  ;;  %v1761_v50 = vadd.f32 %v1760_v39, %v1711_v32 }
 0x2c4   : > { %v1714_v35 = vpop.f32.mrf.mxu0 }
 0x2c5   : > { %v5879_v56 = vadd.f32 %v5762_v45, %v1893_v26  ;;  %v1894_v12 = vadd.f32 %v4907_v13, %v1761_v50  ;;  %v2030_v13 = vmul.f32 %v5876_v59, %v5876_v59 }
 0x2c7   : > { %v1974_v57 = vadd.f32 %v5879_v56, %v5876_v59  ;;  %v2031_v62 = vmul.f32 %v5879_v56, %v5879_v56  ;;  %v5890_v20 = vadd.f32 %v5760_v58, %v1894_v12 }
 0x2c8   : > { %v1858_v8 = vpop.f32.mrf.mxu3 }
 0x2c9   : > { %v1859_v60 = vadd.f32 %v1858_v8, %v1809_v6  ;;  %2068 = vadd.xlane.f32.xlu1 %v2067_v33  ;;  %1975 = vadd.xlane.f32.xlu2 %v1974_v57  ;;  %v2070_v48 = vadd.f32 %v2031_v62, %v2030_v13 }
 0x2ca   : > { %v1763_v55 = vpop.f32.mrf.mxu1  ;;  %v1812_v7 = vpop.f32.mrf.mxu2 }
 0x2cb   : > { %v1895_v25 = vadd.f32 %v4903_v11, %v1859_v60  ;;  %v1764_v43 = vadd.f32 %v1763_v55, %v1714_v35 }
 0x2cc   : > { %v1716_v46 = vpop.f32.mrf.mxu0 }
 0x2cd   : > { %v5893_v4 = vadd.f32 %v5762_v45, %v1895_v25  ;;  %v1896_v11 = vadd.f32 %v4921_v28, %v1764_v43  ;;  %v2032_v28 = vmul.f32 %v5890_v20, %v5890_v20 }
 0x2cf   : > { %v1977_v32 = vadd.f32 %v5893_v4, %v5890_v20  ;;  %v2033_v61 = vmul.f32 %v5893_v4, %v5893_v4  ;;  %v5904_v39 = vadd.f32 %v5760_v58, %v1896_v11 }
 0x2d0   : > { %v1861_v37 = vpop.f32.mrf.mxu3 }
 0x2d1   : > { %v1862_v63 = vadd.f32 %v1861_v37, %v1812_v7  ;;  %2071 = vadd.xlane.f32.xlu2 %v2070_v48  ;;  %1978 = vadd.xlane.f32.xlu1 %v1977_v32  ;;  %v2073_v47 = vadd.f32 %v2033_v61, %v2032_v28 }
 0x2d2   : > { %v1765_v34 = vpop.f32.mrf.mxu1  ;;  %v1814_v17 = vpop.f32.mrf.mxu2 }
 0x2d3   : > { %v1897_v36 = vadd.f32 %v4925_v30, %v1862_v63  ;;  %v1766_v26 = vadd.f32 %v1765_v34, %v1716_v46 }
 0x2d4   : > { %v1719_v49 = vpop.f32.mrf.mxu0 }
 0x2d5   : > { %v5907_v6 = vadd.f32 %v5762_v45, %v1897_v36  ;;  %v1898_v30 = vadd.f32 %v4927_v31, %v1766_v26  ;;  %v2034_v31 = vmul.f32 %v5904_v39, %v5904_v39 }
 0x2d7   : > { %v1980_v35 = vadd.f32 %v5907_v6, %v5904_v39  ;;  %v2035_v12 = vmul.f32 %v5907_v6, %v5907_v6  ;;  %v5918_v60 = vadd.f32 %v5760_v58, %v1898_v30 }
 0x2d8   : > { %v1863_v50 = vpop.f32.mrf.mxu3 }
 0x2d9   : > { %v1864_v10 = vadd.f32 %v1863_v50, %v1814_v17  ;;  %2074 = vadd.xlane.f32.xlu1 %v2073_v47  ;;  %1981 = vadd.xlane.f32.xlu2 %v1980_v35  ;;  %v2076_v62 = vadd.f32 %v2035_v12, %v2034_v31  ;;  %v4445_v31 = vld [vmem:[%s6969_s3 + $0x174] sm:$0xf] }
 0x2da   : > { %v1768_v33 = vpop.f32.mrf.mxu1  ;;  %v1817_v57 = vpop.f32.mrf.mxu2 }
 0x2db   : > { %v1899_v8 = vadd.f32 %v4923_v29, %v1864_v10  ;;  %v1769_v7 = vadd.f32 %v1768_v33, %v1719_v49  ;;  %v4064_v10 = vld [vmem:[%s6969_s3 + $0x170] sm:$0xf] }
 0x2dc   : > { %v1721_v25 = vpop.f32.mrf.mxu0  ;;  %v4128_v33 = vld [vmem:[%s6969_s3 + $0x1f0] sm:$0xf] }
 0x2dd   : > { %v5921_v55 = vadd.f32 %v5762_v45, %v1899_v8  ;;  %v1900_v29 = vadd.f32 %v4943_v52, %v1769_v7  ;;  %v2036_v52 = vmul.f32 %v5918_v60, %v5918_v60  ;;  %v4462_v7 = vld [vmem:[%s6969_s3 + $0x1f4] sm:$0xf0] }
 0x2df   : > { %v1983_v46 = vadd.f32 %v5921_v55, %v5918_v60  ;;  %v2037_v37 = vmul.f32 %v5921_v55, %v5921_v55  ;;  %v5932_v63 = vadd.f32 %v5760_v58, %v1900_v29  ;;  %v4461_v29 = vld [vmem:[%s6969_s3 + $0x1f4] sm:$0xf] }
 0x2e0   : > { %v1866_v43 = vpop.f32.mrf.mxu3 }
 0x2e1   : > { %v1867_v13 = vadd.f32 %v1866_v43, %v1817_v57  ;;  %2077 = vadd.xlane.f32.xlu2 %v2076_v62  ;;  %1984 = vadd.xlane.f32.xlu1 %v1983_v46  ;;  %v2079_v36 = vadd.f32 %v2037_v37, %v2036_v52  ;;  %v2038_v30 = vmul.f32 %v5932_v63, %v5932_v63  ;;  %v4444_v52 = vld [vmem:[%s6969_s3 + $0x164] sm:$0xf0] }
 0x2e2   : > { %v1770_v48 = vpop.f32.mrf.mxu1  ;;  %v1819_v11 = vpop.f32.mrf.mxu2  ;;  %v4129_v46 = vor.u32 %v4462_v7, %v4128_v33 }
 0x2e3   : > { %v1901_v32 = vadd.f32 %v4947_v54, %v1867_v13  ;;  %v1771_v17 = vadd.f32 %v1770_v48, %v1721_v25  ;;  %v4066_v25 = vld [vmem:[%s6969_s3 + $0x178] sm:$0xf0] }
 0x2e4   : > { %v1724_v49 = vpop.f32.mrf.mxu0  ;;  %v4069_v43 = vor.u32 %v4445_v31, %v4066_v25  ;;  %v4130_v13 = vld [vmem:[%s6969_s3 + $0x1f8] sm:$0xf0]  ;;  %2721 = vmatpush.bf16.msra.mxu1 %v4129_v46  ;;  %v4048_v31 = vld [vmem:[%s6969_s3 + $0x150] sm:$0xf]  ;;  %v4442_v25 = vld [vmem:[%s6969_s3 + $0x154] sm:$0xf0] }
 0x2e5   : > { %v5935_v34 = vadd.f32 %v5762_v45, %v1901_v32  ;;  %v1902_v26 = vadd.f32 %v4967_v2, %v1771_v17  ;;  %v4446_v2 = vld [vmem:[%s6969_s3 + $0x174] sm:$0xf0]  ;;  %v4133_v37 = vor.u32 %v4461_v29, %v4130_v13  ;;  %v4056_v17 = vld [vmem:[%s6969_s3 + $0x160] sm:$0xf]  ;;  %v4049_v29 = vor.u32 %v4442_v25, %v4048_v31 }
 0x2e6   : > { %v4065_v12 = vor.u32 %v4446_v2, %v4064_v10  ;;  %2770 = vmatpush.bf16.msra.mxu2 %v4069_v43  ;;  %v4459_v10 = vld [vmem:[%s6969_s3 + $0x1e4] sm:$0xf]  ;;  %v4122_v2 = vld [vmem:[%s6969_s3 + $0x1e8] sm:$0xf0]  ;;  %v4458_v13 = vld [vmem:[%s6969_s3 + $0x1d4] sm:$0xf0] }
 0x2e7   : > { %v1986_v61 = vadd.f32 %v5935_v34, %v5932_v63  ;;  %v2039_v50 = vmul.f32 %v5935_v34, %v5935_v34  ;;  %2819 = vmatpush.bf16.msra.mxu3 %v4133_v37  ;;  %v4125_v7 = vor.u32 %v4459_v10, %v4122_v2  ;;  %v4042_v10 = vld [vmem:[%s6969_s3 + $0x148] sm:$0xf0] }
 0x2e8   : > { %v1868_v54 = vpop.f32.mrf.mxu3  ;;  %2672 = vmatpush.bf16.msra.mxu0 %v4065_v12 }
 0x2e9   : > { %v1869_v28 = vadd.f32 %v1868_v54, %v1819_v11  ;;  %2080 = vadd.xlane.f32.xlu1 %v2079_v36  ;;  %1987 = vadd.xlane.f32.xlu2 %v1986_v61  ;;  %v2082_v48 = vadd.f32 %v2039_v50, %v2038_v30  ;;  %v4120_v36 = vld [vmem:[%s6969_s3 + $0x1e0] sm:$0xf]  ;;  %v4460_v54 = vld [vmem:[%s6969_s3 + $0x1e4] sm:$0xf0]  ;;  %v4057_v50 = vor.u32 %v4444_v52, %v4056_v17  ;;  %v4457_v17 = vld [vmem:[%s6969_s3 + $0x1d4] sm:$0xf] }
 0x2ea   : > { %v1773_v47 = vpop.f32.mrf.mxu1  ;;  %v1822_v62 = vpop.f32.mrf.mxu2  ;;  %v4114_v52 = vld [vmem:[%s6969_s3 + $0x1d8] sm:$0xf0] }
 0x2eb   : > { %v1903_v35 = vadd.f32 %v4945_v53, %v1869_v28  ;;  %v5957_v53 = vadd.f32 %v5760_v58, %v1902_v26  ;;  %v1774_v8 = vadd.f32 %v1773_v47, %v1724_v49  ;;  %v4443_v26 = vld [vmem:[%s6969_s3 + $0x164] sm:$0xf]  ;;  %v4058_v28 = vld [vmem:[%s6969_s3 + $0x168] sm:$0xf0]  ;;  %2820 = vmatpush.bf16.msra.mxu3 %v4125_v7 }
 0x2ec   : > { %v1726_v47 = vpop.f32.mrf.mxu0  ;;  %v4061_v30 = vor.u32 %v4443_v26, %v4058_v28  ;;  %2673 = vmatpush.bf16.msra.mxu0 %v4057_v50  ;;  %v4106_v7 = vld [vmem:[%s6969_s3 + $0x1c8] sm:$0xf0] }
 0x2ed   : > { %v5960_v57 = vadd.f32 %v5762_v45, %v1903_v35  ;;  %v1904_v61 = vadd.f32 %v5055_v22, %v1774_v8  ;;  %v4121_v22 = vor.u32 %v4460_v54, %v4120_v36  ;;  %v2040_v43 = vmul.f32 %v5957_v53, %v5957_v53 }
 0x2ee   : > { %2771 = vmatpush.bf16.msra.mxu2 %v4061_v30  ;;  %v4117_v54 = vor.u32 %v4457_v17, %v4114_v52  ;;  %v4439_v30 = vld [vmem:[%s6969_s3 + $0x144] sm:$0xf]  ;;  %v4454_v17 = vld [vmem:[%s6969_s3 + $0x1b4] sm:$0xf0]  ;;  %v4437_v52 = vld [vmem:[%s6969_s3 + $0x134] sm:$0xf] }
 0x2ef   : > { %v1989_v32 = vadd.f32 %v5960_v57, %v5957_v53  ;;  %v2041_v12 = vmul.f32 %v5960_v57, %v5960_v57  ;;  %2722 = vmatpush.bf16.msra.mxu1 %v4121_v22  ;;  %v4456_v22 = vld [vmem:[%s6969_s3 + $0x1c4] sm:$0xf0] }
 0x2f0   : > { %v1871_v11 = vpop.f32.mrf.mxu3  ;;  %2674 = vmatpush.bf16.msra.mxu0 %v4049_v29  ;;  %2821 = vmatpush.bf16.msra.mxu3 %v4117_v54  ;;  %v4453_v54 = vld [vmem:[%s6969_s3 + $0x1b4] sm:$0xf] }
 0x2f1   : > { %v1872_v49 = vadd.f32 %v1871_v11, %v1822_v62  ;;  %2083 = vadd.xlane.f32.xlu2 %v2082_v48  ;;  %1990 = vadd.xlane.f32.xlu1 %v1989_v32  ;;  %v4112_v62 = vld [vmem:[%s6969_s3 + $0x1d0] sm:$0xf]  ;;  %v4441_v48 = vld [vmem:[%s6969_s3 + $0x154] sm:$0xf]  ;;  %v4050_v32 = vld [vmem:[%s6969_s3 + $0x158] sm:$0xf0] }
 0x2f2   : > { %v1775_v35 = vpop.f32.mrf.mxu1  ;;  %v4113_v37 = vor.u32 %v4458_v13, %v4112_v62  ;;  %v4053_v11 = vor.u32 %v4441_v48, %v4050_v32  ;;  %v1824_v26 = vpop.f32.mrf.mxu2  ;;  %v4032_v13 = vld [vmem:[%s6969_s3 + $0x130] sm:$0xf]  ;;  %v4438_v48 = vld [vmem:[%s6969_s3 + $0x134] sm:$0xf0] }
 0x2f3   : > { %v1905_v33 = vadd.f32 %v5067_v42, %v1872_v49  ;;  %v1776_v8 = vadd.f32 %v1775_v35, %v1726_v47  ;;  %v6017_v42 = vadd.f32 %v5760_v58, %v1904_v61  ;;  %v2085_v61 = vadd.f32 %v2041_v12, %v2040_v43  ;;  %v4040_v47 = vld [vmem:[%s6969_s3 + $0x140] sm:$0xf]  ;;  %v4440_v35 = vld [vmem:[%s6969_s3 + $0x144] sm:$0xf0]  ;;  %v4455_v12 = vld [vmem:[%s6969_s3 + $0x1c4] sm:$0xf] }
 0x2f4   : > { %2723 = vmatpush.bf16.msra.mxu1 %v4113_v37  ;;  %2772 = vmatpush.bf16.msra.mxu2 %v4053_v11  ;;  %v4041_v2 = vor.u32 %v4440_v35, %v4040_v47  ;;  %v4109_v43 = vor.u32 %v4455_v12, %v4106_v7  ;;  %v4033_v11 = vor.u32 %v4438_v48, %v4032_v13  ;;  %v4452_v7 = vld [vmem:[%s6969_s3 + $0x1a4] sm:$0xf0]  ;;  %v4451_v48 = vld [vmem:[%s6969_s3 + $0x1a4] sm:$0xf] }
 0x2f5   : > { %v6020_v46 = vadd.f32 %v5762_v45, %v1905_v33  ;;  %v1906_v36 = vadd.f32 %v5063_v40, %v1776_v8  ;;  %v4104_v40 = vld [vmem:[%s6969_s3 + $0x1c0] sm:$0xf]  ;;  %v4045_v8 = vor.u32 %v4439_v30, %v4042_v10  ;;  %v2042_v37 = vmul.f32 %v6017_v42, %v6017_v42 }
 0x2f6   : > { %v4105_v33 = vor.u32 %v4456_v22, %v4104_v40  ;;  %2675 = vmatpush.bf16.msra.mxu0 %v4041_v2  ;;  %2822 = vmatpush.bf16.msra.mxu3 %v4109_v43  ;;  %v4024_v10 = vld [vmem:[%s6969_s3 + $0x120] sm:$0xf]  ;;  %v4436_v2 = vld [vmem:[%s6969_s3 + $0x124] sm:$0xf0] }
 0x2f7   : > { %v1992_v49 = vadd.f32 %v6020_v46, %v6017_v42  ;;  %v6067_v31 = vadd.f32 %v5760_v58, %v1906_v36  ;;  %v2043_v62 = vmul.f32 %v6020_v46, %v6020_v46  ;;  %v4096_v58 = vld [vmem:[%s6969_s3 + $0x1b0] sm:$0xf]  ;;  %v4025_v12 = vor.u32 %v4436_v2, %v4024_v10  ;;  %v4072_v10 = vld [vmem:[%s6969_s3 + $0x180] sm:$0xf] }
 0x2f8   : > { %v1873_v28 = vpop.f32.mrf.mxu3  ;;  %2724 = vmatpush.bf16.msra.mxu1 %v4105_v33  ;;  %2773 = vmatpush.bf16.msra.mxu2 %v4045_v8  ;;  %v4088_v33 = vld [vmem:[%s6969_s3 + $0x1a0] sm:$0xf] }
 0x2f9   : > { %v1874_v50 = vadd.f32 %v1873_v28, %v1824_v26  ;;  %2086 = vadd.xlane.f32.xlu1 %v2085_v61  ;;  %1993 = vadd.xlane.f32.xlu2 %v1992_v49  ;;  %v4097_v61 = vor.u32 %v4454_v17, %v4096_v58  ;;  %v4098_v26 = vld [vmem:[%s6969_s3 + $0x1b8] sm:$0xf0]  ;;  %v2088_v35 = vadd.f32 %v2043_v62, %v2042_v37  ;;  %v4026_v62 = vld [vmem:[%s6969_s3 + $0x128] sm:$0xf0] }
 0x2fa   : > { %v2044_v40 = vmul.f32 %v6067_v31, %v6067_v31  ;;  %2676 = vmatpush.bf16.msra.mxu0 %v4033_v11  ;;  %v4101_v30 = vor.u32 %v4453_v54, %v4098_v26  ;;  %v4090_v58 = vld [vmem:[%s6969_s3 + $0x1a8] sm:$0xf0]  ;;  %v4433_v54 = vld [vmem:[%s6969_s3 + $0x114] sm:$0xf]  ;;  %v4018_v26 = vld [vmem:[%s6969_s3 + $0x118] sm:$0xf0] }
 0x2fb   : > { %v1907_v25 = vadd.f32 %v5065_v41, %v1874_v50  ;;  %v4093_v11 = vor.u32 %v4451_v48, %v4090_v58 }
 0x2fc   : > { %v1952_v29 = vpop.xlane.xlu0 %1951  ;;  %2725 = vmatpush.bf16.msra.mxu1 %v4097_v61  ;;  %2823 = vmatpush.bf16.msra.mxu3 %v4101_v30  ;;  %v4432_v30 = vld [vmem:[%s6969_s3 + $0x104] sm:$0xf0] }
 0x2fd   : > { %v6082_v41 = vadd.f32 %v5762_v45, %v1907_v25  ;;  %v6085_v32 = vmul.f32 %v1952_v29, %v5109_v9  ;;  %v4034_v45 = vld [vmem:[%s6969_s3 + $0x138] sm:$0xf0]  ;;  %v4435_v25 = vld [vmem:[%s6969_s3 + $0x124] sm:$0xf]  ;;  %v4089_v29 = vor.u32 %v4452_v7, %v4088_v33  ;;  %v4010_v7 = vld [vmem:[%s6969_s3 + $0x108] sm:$0xf0] }
 0x2fe   : > { %v2048_v36 = vpop.xlane.xlu2 %2047  ;;  %v4037_v49 = vor.u32 %v4437_v52, %v4034_v45  ;;  %v4029_v13 = vor.u32 %v4435_v25, %v4026_v62  ;;  %2677 = vmatpush.bf16.msra.mxu0 %v4025_v12  ;;  %v4016_v52 = vld [vmem:[%s6969_s3 + $0x110] sm:$0xf]  ;;  %v4434_v45 = vld [vmem:[%s6969_s3 + $0x114] sm:$0xf0]  ;;  %v4431_v12 = vld [vmem:[%s6969_s3 + $0x104] sm:$0xf] }
 0x2ff   : > { %v2094_v28 = vmul.f32 %v2048_v36, %v5109_v9  ;;  %v2110_v47 = vmul.f32 %v6085_v32, %v6085_v32  ;;  %v1995_v50 = vadd.f32 %v6082_v41, %v6067_v31  ;;  %v2045_v22 = vmul.f32 %v6082_v41, %v6082_v41  ;;  %v4080_v36 = vld [vmem:[%s6969_s3 + $0x190] sm:$0xf] }
 0x300   : > { %2774 = vmatpush.bf16.msra.mxu2 %v4037_v49  ;;  %2726 = vmatpush.bf16.msra.mxu1 %v4089_v29  ;;  %v4017_v61 = vor.u32 %v4434_v45, %v4016_v52  ;;  %v4450_v49 = vld [vmem:[%s6969_s3 + $0x194] sm:$0xf0]  ;;  %v4013_v62 = vor.u32 %v4431_v12, %v4010_v7  ;;  %v4074_v29 = vld [vmem:[%s6969_s3 + $0x188] sm:$0xf0] }
 0x301   : > { %v2126_v8 = vsub.f32 %v2094_v28, %v2110_v47  ;;  %2089 = vadd.xlane.f32.xlu2 %v2088_v35  ;;  %1996 = vadd.xlane.f32.xlu1 %v1995_v50  ;;  %v2091_v43 = vadd.f32 %v2045_v22, %v2044_v40  ;;  %v4081_v28 = vor.u32 %v4450_v49, %v4080_v36  ;;  %v4449_v35 = vld [vmem:[%s6969_s3 + $0x194] sm:$0xf]  ;;  %v4082_v40 = vld [vmem:[%s6969_s3 + $0x198] sm:$0xf0]  ;;  %v4008_v22 = vld [vmem:[%s6969_s3 + $0x100] sm:$0xf] }
 0x302   : > { %v4021_v47 = vor.u32 %v4433_v54, %v4018_v26  ;;  %2824 = vmatpush.bf16.msra.mxu3 %v4093_v11  ;;  %v4085_v50 = vor.u32 %v4449_v35, %v4082_v40  ;;  %2678 = vmatpush.bf16.msra.mxu0 %v4017_v61  ;;  %v4009_v33 = vor.u32 %v4432_v30, %v4008_v22  ;;  %v3971_v7 = vld [vmem:[%s6967_s1 + $0x1] ss:$2 sm:$0x3] }
 0x303   : > { %v6137_v37 = vadd.f32 1e-05, %v2126_v8  ;;  %2092 = vadd.xlane.f32.xlu0 %v2091_v43  ;;  %v4448_v8 = vld [vmem:[%s6969_s3 + $0x184] sm:$0xf0]  ;;  %v4447_v43 = vld [vmem:[%s6969_s3 + $0x184] sm:$0xf] }
 0x304   : > { %v1955_v17 = vpop.xlane.xlu1 %1954  ;;  %2775 = vmatpush.bf16.msra.mxu2 %v4029_v13  ;;  %2727 = vmatpush.bf16.msra.mxu1 %v4081_v28  ;;  %v4073_v25 = vor.u32 %v4448_v8, %v4072_v10  ;;  %v4077_v48 = vor.u32 %v4447_v43, %v4074_v29 }
 0x305   : > { %4700 = vrsqrt.f32 %v6137_v37  ;;  %v6174_v2 = vmul.f32 %v1955_v17, %v5109_v9  ;;  %vm2196_vm2 = vweird.f32 %v6137_v37 }
 0x306   : > { %2825 = vmatpush.bf16.msra.mxu3 %v4085_v50  ;;  %2679 = vmatpush.bf16.msra.mxu0 %v4009_v33 }
 0x307   : > { %v2111_v52 = vmul.f32 %v6174_v2, %v6174_v2 }
 0x308   : > { %2776 = vmatpush.bf16.msra.mxu2 %v4021_v47  ;;  %2728 = vmatpush.bf16.msra.mxu1 %v4073_v25 }
 0x30a   : > { %2826 = vmatpush.bf16.msra.mxu3 %v4077_v48 }
 0x30b   : > { %v4701_v13 = vpop.eup %4700 }
 0x30c   : > { %v2191_v58 = vmul.f32 %v4701_v13, %v6137_v37  ;;  %v2051_v11 = vpop.xlane.xlu1 %2050  ;;  %v1958_v17 = vpop.xlane.xlu2 %1957  ;;  %2777 = vmatpush.bf16.msra.mxu2 %v4013_v62  ;;  %vm2197_vm1 = vweird.f32 %v4701_v13  ;;  %v2143_v37 = vsub.f32 %v5769_v0, %v6085_v32 }
 0x30d   : > { %v2095_v45 = vmul.f32 %v2051_v11, %v5109_v9  ;;  %v6196_v26 = vmul.f32 %v1958_v17, %v5109_v9  ;;  %vm2198_vm3 = vmor %vm2196_vm2, %vm2197_vm1  ;;  %v2142_v11 = vsub.f32 %v5765_v38, %v6085_v32 }
 0x30e   : > { %v2192_v36 = vmul.f32 %v4701_v13, %v2191_v58 }
 0x30f   : > { %v2127_v61 = vsub.f32 %v2095_v45, %v2111_v52  ;;  %v2112_v40 = vmul.f32 %v6196_v26, %v6196_v26  ;;  %v6218_v52 = vperm.slane %v3971_v7, 0  ;;  %v6220_v45 = vperm.slane %v3971_v7, 1 }
 0x310   : > { %v2193_v49 = vmul.f32 0.5, %v2192_v36 }
 0x311   : > { %v2175_v54 = vadd.f32 1e-05, %v2127_v61 }
 0x312   : > { %v2194_v35 = vsub.f32 1.5, %v2193_v49 }
 0x313   : > { %4702 = vrsqrt.f32 %v2175_v54  ;;  %vm2206_vm5 = vweird.f32 %v2175_v54 }
 0x314   : > { %v2054_v28 = vpop.xlane.xlu2 %2053  ;;  %v1961_v47 = vpop.xlane.xlu1 %1960  ;;  %v2195_v10 = vmul.f32 %v4701_v13, %v2194_v35 }
 0x315   : > { %v2096_v50 = vmul.f32 %v2054_v28, %v5109_v9  ;;  %v6204_v8 = vmul.f32 %v1961_v47, %v5109_v9 }
 0x316   : > { %v2199_v29 = vsel %vm2198_vm3, %v4701_v13, %v2195_v10  ;;  %v3972_v13 = vld [vmem:[%s6968_s2 + $0x1] ss:$2 sm:$0x3]  ;;  %v2144_v10 = vsub.f32 %v5780_v3, %v6174_v2 }
 0x317   : > { %v2128_v22 = vsub.f32 %v2096_v50, %v2112_v40  ;;  %v2113_v48 = vmul.f32 %v6204_v8, %v6204_v8  ;;  %v2350_v61 = vmul.f32 %v2199_v29, %v2142_v11  ;;  %v2351_v49 = vmul.f32 %v2199_v29, %v2143_v37 }
 0x318   : > { %v6238_v7 = vperm.slane %v3972_v13, 1 }
 0x319   : > { %v4703_v30 = vpop.eup %4702  ;;  %v6201_v33 = vadd.f32 1e-05, %v2128_v22  ;;  %v6231_v22 = vperm.slane %v3972_v13, 0 }
 0x31a   : > { %v2201_v12 = vmul.f32 %v4703_v30, %v2175_v54  ;;  %vm2207_vm4 = vweird.f32 %v4703_v30 }
 0x31b   : > { %4704 = vrsqrt.f32 %v6201_v33  ;;  %vm2208_vm6 = vmor %vm2206_vm5, %vm2207_vm4  ;;  %vm2216_vm8 = vweird.f32 %v6201_v33 }
 0x31c   : > { %v2202_v25 = vmul.f32 %v4703_v30, %v2201_v12  ;;  %v2057_v62 = vpop.xlane.xlu1 %2056  ;;  %v1964_v43 = vpop.xlane.xlu2 %1963  ;;  %v2145_v12 = vsub.f32 %v5783_v51, %v6174_v2 }
 0x31d   : > { %v2097_v58 = vmul.f32 %v2057_v62, %v5109_v9  ;;  %v6228_v40 = vmul.f32 %v1964_v43, %v5109_v9  ;;  %v2388_v62 = vmul.f32 %v6220_v45, %v2351_v49 }
 0x31e   : > { %v2203_v17 = vmul.f32 0.5, %v2202_v25  ;;  %v2387_v25 = vmul.f32 %v6218_v52, %v2350_v61 }
 0x31f   : > { %v2129_v36 = vsub.f32 %v2097_v58, %v2113_v48  ;;  %v2114_v37 = vmul.f32 %v6228_v40, %v6228_v40 }
 0x320   : > { %v2204_v28 = vsub.f32 1.5, %v2203_v17  ;;  %v2424_v49 = vadd.f32 %v6231_v22, %v2387_v25 }
 0x321   : > { %v4705_v47 = vpop.eup %4704  ;;  %v6225_v35 = vadd.f32 1e-05, %v2129_v36 }
 0x322   : > { %v2205_v32 = vmul.f32 %v4703_v30, %v2204_v28  ;;  %v2211_v50 = vmul.f32 %v4705_v47, %v6201_v33  ;;  %vm2217_vm7 = vweird.f32 %v4705_v47  ;;  %v2147_v33 = vsub.f32 %v5795_v1, %v6196_v26 }
 0x323   : > { %4706 = vrsqrt.f32 %v6225_v35  ;;  %vm2218_vm9 = vmor %vm2216_vm8, %vm2217_vm7  ;;  %vm2226_vm11 = vweird.f32 %v6225_v35 }
 0x324   : > { %v2209_v54 = vsel %vm2208_vm6, %v4703_v30, %v2205_v32  ;;  %v2212_v43 = vmul.f32 %v4705_v47, %v2211_v50  ;;  %v2060_v29 = vpop.xlane.xlu2 %2059  ;;  %v1967_v48 = vpop.xlane.xlu1 %1966  ;;  %v2425_v30 = vadd.f32 %v6238_v7, %v2388_v62 }
 0x325   : > { %v2352_v58 = vmul.f32 %v2209_v54, %v2144_v10  ;;  %v2353_v11 = vmul.f32 %v2209_v54, %v2145_v12  ;;  %v2098_v2 = vmul.f32 %v2060_v29, %v5109_v9  ;;  %v6252_v10 = vmul.f32 %v1967_v48, %v5109_v9 }
 0x326   : > { %v2213_v17 = vmul.f32 0.5, %v2212_v43 }
 0x327   : > { %v2389_v36 = vmul.f32 %v6218_v52, %v2352_v58  ;;  %v2390_v13 = vmul.f32 %v6220_v45, %v2353_v11  ;;  %v2130_v28 = vsub.f32 %v2098_v2, %v2114_v37  ;;  %v2115_v48 = vmul.f32 %v6252_v10, %v6252_v10 }
 0x328   : > { %v2214_v61 = vsub.f32 1.5, %v2213_v17 }
 0x329   : > { %v4707_v32 = vpop.eup %4706  ;;  %v6249_v50 = vadd.f32 1e-05, %v2130_v28  ;;  %v2426_v12 = vadd.f32 %v6231_v22, %v2389_v36  ;;  %v2427_v54 = vadd.f32 %v6238_v7, %v2390_v13  ;;  %v2146_v28 = vsub.f32 %v5792_v5, %v6196_v26 }
 0x32a   : > { %v2221_v43 = vmul.f32 %v4707_v32, %v6225_v35  ;;  %v2215_v29 = vmul.f32 %v4705_v47, %v2214_v61  ;;  %vm2227_vm10 = vweird.f32 %v4707_v32 }
 0x32b   : > { %4708 = vrsqrt.f32 %v6249_v50  ;;  %v2456_v58 = vpack.c.bf16 %v2426_v12, %v2424_v49  ;;  %v2457_v25 = vpack.c.bf16 %v2427_v54, %v2425_v30  ;;  %vm2228_vm12 = vmor %vm2226_vm11, %vm2227_vm10  ;;  %vm2236_vm14 = vweird.f32 %v6249_v50 }
 0x32c   : > { %v2222_v11 = vmul.f32 %v4707_v32, %v2221_v43  ;;  %v2063_v62 = vpop.xlane.xlu1 %2062  ;;  %v1970_v37 = vpop.xlane.xlu2 %1969  ;;  %v2219_v36 = vsel %vm2218_vm9, %v4705_v47, %v2215_v29  ;;  %v2148_v29 = vsub.f32 %v5806_v14, %v6204_v8 }
 0x32d   : > { %v2099_v2 = vmul.f32 %v2063_v62, %v5109_v9  ;;  %2680 = vmatmul.bf16.vlgmr.msra.gmra.mxu0 %v2456_v58  ;;  %2729 = vmatmul.bf16.vlgmr.msra.gmra.mxu1 %v2457_v25  ;;  %v6269_v12 = vmul.f32 %v1970_v37, %v5109_v9  ;;  %v2354_v43 = vmul.f32 %v2219_v36, %v2146_v28 }
 0x32e   : > { %v2223_v17 = vmul.f32 0.5, %v2222_v11  ;;  %2778 = vmatmul.bf16.vlgmr.msra.gmra.mxu2 %v2456_v58  ;;  %2827 = vmatmul.bf16.vlgmr.msra.gmra.mxu3 %v2457_v25  ;;  %v2149_v58 = vsub.f32 %v5809_v19, %v6204_v8  ;;  %v2355_v26 = vmul.f32 %v2219_v36, %v2147_v33 }
 0x32f   : > { %v2131_v13 = vsub.f32 %v2099_v2, %v2115_v48  ;;  %v2116_v35 = vmul.f32 %v6269_v12, %v6269_v12  ;;  %v2391_v28 = vmul.f32 %v6218_v52, %v2354_v43 }
 0x330   : > { %v2224_v61 = vsub.f32 1.5, %v2223_v17  ;;  %v2392_v8 = vmul.f32 %v6220_v45, %v2355_v26 }
 0x331   : > { %v4709_v49 = vpop.eup %4708  ;;  %v6266_v30 = vadd.f32 1e-05, %v2131_v13 }
 0x332   : > { %v2225_v54 = vmul.f32 %v4707_v32, %v2224_v61  ;;  %v2231_v47 = vmul.f32 %v4709_v49, %v6249_v50  ;;  %vm2237_vm13 = vweird.f32 %v4709_v49  ;;  %v2429_v26 = vadd.f32 %v6238_v7, %v2392_v8 }
 0x333   : > { %4710 = vrsqrt.f32 %v6266_v30  ;;  %vm2238_vm15 = vmor %vm2236_vm14, %vm2237_vm13  ;;  %v2150_v8 = vsub.f32 %v5820_v15, %v6228_v40  ;;  %vm2246_vm1 = vweird.f32 %v6266_v30 }
 0x334   : > { %v2229_v25 = vsel %vm2228_vm12, %v4707_v32, %v2225_v54  ;;  %v2232_v11 = vmul.f32 %v4709_v49, %v2231_v47  ;;  %v2066_v62 = vpop.xlane.xlu2 %2065  ;;  %v1973_v37 = vpop.xlane.xlu1 %1972 }
 0x335   : > { %v2100_v48 = vmul.f32 %v2066_v62, %v5109_v9  ;;  %v2356_v2 = vmul.f32 %v2229_v25, %v2148_v29  ;;  %v2357_v17 = vmul.f32 %v2229_v25, %v2149_v58  ;;  %v6288_v47 = vmul.f32 %v1973_v37, %v5109_v9 }
 0x336   : > { %v2233_v13 = vmul.f32 0.5, %v2232_v11  ;;  %v2428_v58 = vadd.f32 %v6231_v22, %v2391_v28 }
 0x337   : > { %v2132_v61 = vsub.f32 %v2100_v48, %v2116_v35  ;;  %v2393_v36 = vmul.f32 %v6218_v52, %v2356_v2  ;;  %v2394_v32 = vmul.f32 %v6220_v45, %v2357_v17  ;;  %v2117_v37 = vmul.f32 %v6288_v47, %v6288_v47 }
 0x338   : > { %v2234_v19 = vsub.f32 1.5, %v2233_v13 }
 0x339   : > { %v4711_v33 = vpop.eup %4710  ;;  %v6285_v54 = vadd.f32 1e-05, %v2132_v61  ;;  %v2430_v43 = vadd.f32 %v6231_v22, %v2393_v36  ;;  %v2431_v11 = vadd.f32 %v6238_v7, %v2394_v32  ;;  %v2151_v32 = vsub.f32 %v5823_v21, %v6228_v40 }
 0x33a   : > { %v2241_v29 = vmul.f32 %v4711_v33, %v6266_v30  ;;  %v2235_v25 = vmul.f32 %v4709_v49, %v2234_v19  ;;  %vm2247_vm0 = vweird.f32 %v4711_v33 }
 0x33b   : > { %4712 = vrsqrt.f32 %v6285_v54  ;;  %v2458_v2 = vpack.c.bf16 %v2430_v43, %v2428_v58  ;;  %v2459_v13 = vpack.c.bf16 %v2431_v11, %v2429_v26  ;;  %v2152_v26 = vsub.f32 %v5834_v16, %v6252_v10  ;;  %vm2248_vm2 = vmor %vm2246_vm1, %vm2247_vm0 }
 0x33c   : > { %v2242_v62 = vmul.f32 %v4711_v33, %v2241_v29  ;;  %v2069_v35 = vpop.xlane.xlu1 %2068  ;;  %v1976_v48 = vpop.xlane.xlu2 %1975  ;;  %v2239_v28 = vsel %vm2238_vm15, %v4709_v49, %v2235_v25  ;;  %v2153_v11 = vsub.f32 %v5837_v23, %v6252_v10  ;;  %vm2256_vm4 = vweird.f32 %v6285_v54 }
 0x33d   : > { %v2101_v17 = vmul.f32 %v2069_v35, %v5109_v9  ;;  %2685 = vmatmul.bf16.gmra.mxu0 %v2458_v2  ;;  %2734 = vmatmul.bf16.gmra.mxu1 %v2459_v13  ;;  %v6308_v58 = vmul.f32 %v1976_v48, %v5109_v9  ;;  %v2358_v25 = vmul.f32 %v2239_v28, %v2150_v8 }
 0x33e   : > { %v2243_v19 = vmul.f32 0.5, %v2242_v62  ;;  %2783 = vmatmul.bf16.gmra.mxu2 %v2458_v2  ;;  %2832 = vmatmul.bf16.gmra.mxu3 %v2459_v13  ;;  %v2359_v40 = vmul.f32 %v2239_v28, %v2151_v32 }
 0x33f   : > { %v2133_v61 = vsub.f32 %v2101_v17, %v2117_v37  ;;  %v2118_v30 = vmul.f32 %v6308_v58, %v6308_v58 }
 0x340   : > { %v2244_v36 = vsub.f32 1.5, %v2243_v19  ;;  %v2396_v10 = vmul.f32 %v6220_v45, %v2359_v40 }
 0x341   : > { %v4713_v50 = vpop.eup %4712  ;;  %v6305_v29 = vadd.f32 1e-05, %v2133_v61  ;;  %v2395_v61 = vmul.f32 %v6218_v52, %v2358_v25 }
 0x342   : > { %v2245_v43 = vmul.f32 %v4711_v33, %v2244_v36  ;;  %v2251_v49 = vmul.f32 %v4713_v50, %v6285_v54  ;;  %vm2257_vm3 = vweird.f32 %v4713_v50  ;;  %v2433_v40 = vadd.f32 %v6238_v7, %v2396_v10 }
 0x343   : > { %4714 = vrsqrt.f32 %v6305_v29  ;;  %vm2258_vm5 = vmor %vm2256_vm4, %vm2257_vm3  ;;  %vm2266_vm7 = vweird.f32 %v6305_v29 }
 0x344   : > { %v2249_v62 = vsel %vm2248_vm2, %v4711_v33, %v2245_v43  ;;  %v2252_v35 = vmul.f32 %v4713_v50, %v2251_v49  ;;  %v2072_v48 = vpop.xlane.xlu2 %2071  ;;  %v1979_v2 = vpop.xlane.xlu1 %1978 }
 0x345   : > { %v2102_v37 = vmul.f32 %v2072_v48, %v5109_v9  ;;  %v2360_v17 = vmul.f32 %v2249_v62, %v2152_v26  ;;  %v2361_v13 = vmul.f32 %v2249_v62, %v2153_v11  ;;  %v6327_v49 = vmul.f32 %v1979_v2, %v5109_v9 }
 0x346   : > { %v2253_v19 = vmul.f32 0.5, %v2252_v35  ;;  %v2432_v11 = vadd.f32 %v6231_v22, %v2395_v61 }
 0x347   : > { %v2134_v8 = vsub.f32 %v2102_v37, %v2118_v30  ;;  %v2397_v28 = vmul.f32 %v6218_v52, %v2360_v17  ;;  %v2398_v33 = vmul.f32 %v6220_v45, %v2361_v13  ;;  %v2119_v2 = vmul.f32 %v6327_v49, %v6327_v49 }
 0x348   : > { %v2254_v36 = vsub.f32 1.5, %v2253_v19 }
 0x349   : > { %v4715_v32 = vpop.eup %4714  ;;  %v6324_v43 = vadd.f32 1e-05, %v2134_v8  ;;  %v2434_v25 = vadd.f32 %v6231_v22, %v2397_v28  ;;  %v2435_v35 = vadd.f32 %v6238_v7, %v2398_v33  ;;  %v2155_v33 = vsub.f32 %v5851_v44, %v6269_v12 }
 0x34a   : > { %v2261_v26 = vmul.f32 %v4715_v32, %v6305_v29  ;;  %v2255_v62 = vmul.f32 %v4713_v50, %v2254_v36  ;;  %v2154_v36 = vsub.f32 %v5848_v24, %v6269_v12  ;;  %vm2267_vm6 = vweird.f32 %v4715_v32 }
 0x34b   : > { %4716 = vrsqrt.f32 %v6324_v43  ;;  %v2460_v17 = vpack.c.bf16 %v2434_v25, %v2432_v11  ;;  %v2461_v19 = vpack.c.bf16 %v2435_v35, %v2433_v40  ;;  %v2156_v40 = vsub.f32 %v5862_v27, %v6288_v47  ;;  %vm2268_vm8 = vmor %vm2266_vm7, %vm2267_vm6 }
 0x34c   : > { %v2262_v48 = vmul.f32 %v4715_v32, %v2261_v26  ;;  %v2075_v30 = vpop.xlane.xlu1 %2074  ;;  %v1982_v37 = vpop.xlane.xlu2 %1981  ;;  %v2259_v8 = vsel %vm2258_vm5, %v4713_v50, %v2255_v62  ;;  %v2157_v35 = vsub.f32 %v5865_v18, %v6288_v47  ;;  %vm2276_vm10 = vweird.f32 %v6324_v43 }
 0x34d   : > { %v2103_v13 = vmul.f32 %v2075_v30, %v5109_v9  ;;  %2690 = vmatmul.bf16.gmra.mxu0 %v2460_v17  ;;  %2739 = vmatmul.bf16.gmra.mxu1 %v2461_v19  ;;  %v6347_v11 = vmul.f32 %v1982_v37, %v5109_v9  ;;  %v2362_v62 = vmul.f32 %v2259_v8, %v2154_v36 }
 0x34e   : > { %v2263_v61 = vmul.f32 0.5, %v2262_v48  ;;  %2788 = vmatmul.bf16.gmra.mxu2 %v2460_v17  ;;  %2837 = vmatmul.bf16.gmra.mxu3 %v2461_v19  ;;  %v2363_v12 = vmul.f32 %v2259_v8, %v2155_v33 }
 0x34f   : > { %v2135_v10 = vsub.f32 %v2103_v13, %v2119_v2  ;;  %v2120_v29 = vmul.f32 %v6347_v11, %v6347_v11 }
 0x350   : > { %v2264_v28 = vsub.f32 1.5, %v2263_v61  ;;  %v2400_v47 = vmul.f32 %v6220_v45, %v2363_v12 }
 0x351   : > { %v4717_v54 = vpop.eup %4716  ;;  %v6344_v26 = vadd.f32 1e-05, %v2135_v10  ;;  %v2399_v10 = vmul.f32 %v6218_v52, %v2362_v62 }
 0x352   : > { %v2265_v25 = vmul.f32 %v4715_v32, %v2264_v28  ;;  %v2271_v50 = vmul.f32 %v4717_v54, %v6324_v43  ;;  %vm2277_vm9 = vweird.f32 %v4717_v54  ;;  %v2437_v12 = vadd.f32 %v6238_v7, %v2400_v47 }
 0x353   : > { %4718 = vrsqrt.f32 %v6344_v26  ;;  %vm2278_vm11 = vmor %vm2276_vm10, %vm2277_vm9  ;;  %vm2286_vm13 = vweird.f32 %v6344_v26 }
 0x354   : > { %v2269_v48 = vsel %vm2268_vm8, %v4715_v32, %v2265_v25  ;;  %v2272_v30 = vmul.f32 %v4717_v54, %v2271_v50  ;;  %v2078_v37 = vpop.xlane.xlu2 %2077  ;;  %v1985_v17 = vpop.xlane.xlu1 %1984 }
 0x355   : > { %v2104_v2 = vmul.f32 %v2078_v37, %v5109_v9  ;;  %v2364_v13 = vmul.f32 %v2269_v48, %v2156_v40  ;;  %v2365_v19 = vmul.f32 %v2269_v48, %v2157_v35  ;;  %v6366_v50 = vmul.f32 %v1985_v17, %v5109_v9 }
 0x356   : > { %v2273_v61 = vmul.f32 0.5, %v2272_v30  ;;  %v2436_v35 = vadd.f32 %v6231_v22, %v2399_v10 }
 0x357   : > { %v2136_v36 = vsub.f32 %v2104_v2, %v2120_v29  ;;  %v2401_v8 = vmul.f32 %v6218_v52, %v2364_v13  ;;  %v2402_v32 = vmul.f32 %v6220_v45, %v2365_v19  ;;  %v2121_v17 = vmul.f32 %v6366_v50, %v6366_v50 }
 0x358   : > { %v2274_v28 = vsub.f32 1.5, %v2273_v61 }
 0x359   : > { %v4719_v33 = vpop.eup %4718  ;;  %v6363_v25 = vadd.f32 1e-05, %v2136_v36  ;;  %v2438_v62 = vadd.f32 %v6231_v22, %v2401_v8  ;;  %v2439_v30 = vadd.f32 %v6238_v7, %v2402_v32  ;;  %v2159_v32 = vsub.f32 %v5879_v56, %v6308_v58 }
 0x35a   : > { %v2281_v40 = vmul.f32 %v4719_v33, %v6344_v26  ;;  %v2275_v48 = vmul.f32 %v4717_v54, %v2274_v28  ;;  %v2158_v28 = vsub.f32 %v5876_v59, %v6308_v58  ;;  %vm2287_vm12 = vweird.f32 %v4719_v33 }
 0x35b   : > { %4720 = vrsqrt.f32 %v6363_v25  ;;  %v2462_v13 = vpack.c.bf16 %v2438_v62, %v2436_v35  ;;  %v2463_v61 = vpack.c.bf16 %v2439_v30, %v2437_v12  ;;  %v2160_v12 = vsub.f32 %v5890_v20, %v6327_v49  ;;  %vm2288_vm14 = vmor %vm2286_vm13, %vm2287_vm12 }
 0x35c   : > { %v2282_v37 = vmul.f32 %v4719_v33, %v2281_v40  ;;  %v2081_v29 = vpop.xlane.xlu1 %2080  ;;  %v1988_v2 = vpop.xlane.xlu2 %1987  ;;  %v2279_v36 = vsel %vm2278_vm11, %v4717_v54, %v2275_v48  ;;  %v2161_v30 = vsub.f32 %v5893_v4, %v6327_v49  ;;  %vm2296_vm0 = vweird.f32 %v6363_v25 }
 0x35d   : > { %v2105_v19 = vmul.f32 %v2081_v29, %v5109_v9  ;;  %2695 = vmatmul.bf16.gmra.mxu0 %v2462_v13  ;;  %2744 = vmatmul.bf16.gmra.mxu1 %v2463_v61  ;;  %v6386_v35 = vmul.f32 %v1988_v2, %v5109_v9  ;;  %v2366_v48 = vmul.f32 %v2279_v36, %v2158_v28 }
 0x35e   : > { %v2283_v10 = vmul.f32 0.5, %v2282_v37  ;;  %2793 = vmatmul.bf16.gmra.mxu2 %v2462_v13  ;;  %2842 = vmatmul.bf16.gmra.mxu3 %v2463_v61  ;;  %v2367_v58 = vmul.f32 %v2279_v36, %v2159_v32 }
 0x35f   : > { %v2137_v47 = vsub.f32 %v2105_v19, %v2121_v17  ;;  %v2122_v26 = vmul.f32 %v6386_v35, %v6386_v35 }
 0x360   : > { %v2284_v8 = vsub.f32 1.5, %v2283_v10  ;;  %v2404_v49 = vmul.f32 %v6220_v45, %v2367_v58 }
 0x361   : > { %v4721_v43 = vpop.eup %4720  ;;  %v6383_v40 = vadd.f32 1e-05, %v2137_v47  ;;  %v2403_v47 = vmul.f32 %v6218_v52, %v2366_v48 }
 0x362   : > { %v2285_v62 = vmul.f32 %v4719_v33, %v2284_v8  ;;  %v2291_v54 = vmul.f32 %v4721_v43, %v6363_v25  ;;  %vm2297_vm15 = vweird.f32 %v4721_v43  ;;  %v2441_v58 = vadd.f32 %v6238_v7, %v2404_v49 }
 0x363   : > { %4722 = vrsqrt.f32 %v6383_v40  ;;  %v2440_v48 = vadd.f32 %v6231_v22, %v2403_v47  ;;  %vm2298_vm1 = vmor %vm2296_vm0, %vm2297_vm15  ;;  %v2162_v25 = vsub.f32 %v5904_v39, %v6347_v11  ;;  %vm2306_vm3 = vweird.f32 %v6383_v40 }
 0x364   : > { %v2289_v37 = vsel %vm2288_vm14, %v4719_v33, %v2285_v62  ;;  %v2292_v29 = vmul.f32 %v4721_v43, %v2291_v54  ;;  %v2084_v2 = vpop.xlane.xlu2 %2083  ;;  %v1991_v13 = vpop.xlane.xlu1 %1990 }
 0x365   : > { %v2106_v17 = vmul.f32 %v2084_v2, %v5109_v9  ;;  %v2368_v19 = vmul.f32 %v2289_v37, %v2160_v12  ;;  %v2369_v61 = vmul.f32 %v2289_v37, %v2161_v30  ;;  %v6405_v54 = vmul.f32 %v1991_v13, %v5109_v9 }
 0x366   : > { %v2293_v10 = vmul.f32 0.5, %v2292_v29 }
 0x367   : > { %v2138_v28 = vsub.f32 %v2106_v17, %v2122_v26  ;;  %v2405_v36 = vmul.f32 %v6218_v52, %v2368_v19  ;;  %v2406_v33 = vmul.f32 %v6220_v45, %v2369_v61  ;;  %v2123_v61 = vmul.f32 %v6405_v54, %v6405_v54 }
 0x368   : > { %v2294_v8 = vsub.f32 1.5, %v2293_v10 }
 0x369   : > { %v4723_v32 = vpop.eup %4722  ;;  %v6402_v62 = vadd.f32 1e-05, %v2138_v28  ;;  %v2442_v37 = vadd.f32 %v6231_v22, %v2405_v36  ;;  %v2443_v29 = vadd.f32 %v6238_v7, %v2406_v33  ;;  %v4224_v33 = vld [vmem:[%s6971_s5 + $0x170] sm:$0xf] }
 0x36a   : > { %v2295_v12 = vmul.f32 %v4721_v43, %v2294_v8  ;;  %v2301_v30 = vmul.f32 %v4723_v32, %v6383_v40  ;;  %v2163_v8 = vsub.f32 %v5907_v6, %v6347_v11  ;;  %vm2307_vm2 = vweird.f32 %v4723_v32  ;;  %v4477_v11 = vld [vmem:[%s6971_s5 + $0x174] sm:$0xf] }
 0x36b   : > { %4724 = vrsqrt.f32 %v6402_v62  ;;  %v2464_v17 = vpack.c.bf16 %v2442_v37, %v2440_v48  ;;  %v2465_v47 = vpack.c.bf16 %v2443_v29, %v2441_v58  ;;  %v4226_v29 = vld [vmem:[%s6971_s5 + $0x178] sm:$0xf0]  ;;  %vm2308_vm4 = vmor %vm2306_vm3, %vm2307_vm2  ;;  %vm2316_vm6 = vweird.f32 %v6402_v62 }
 0x36c   : > { %v2302_v2 = vmul.f32 %v4723_v32, %v2301_v30  ;;  %v2087_v26 = vpop.xlane.xlu1 %2086  ;;  %v1994_v13 = vpop.xlane.xlu2 %1993  ;;  %v2299_v19 = vsel %vm2298_vm1, %v4721_v43, %v2295_v12  ;;  %v4478_v12 = vld [vmem:[%s6971_s5 + $0x174] sm:$0xf0]  ;;  %vm3604_vm1 = vcmask 31744  }
 0x36d   : > { %v2107_v10 = vmul.f32 %v2087_v26, %v5109_v9  ;;  %2700 = vmatmul.bf16.gmra.mxu0 %v2464_v17  ;;  %2749 = vmatmul.bf16.gmra.mxu1 %v2465_v47  ;;  %v2370_v43 = vmul.f32 %v2299_v19, %v2162_v25  ;;  %v6430_v37 = vmul.f32 %v1994_v13, %v5109_v9 }
 0x36e   : > { %v2303_v28 = vmul.f32 0.5, %v2302_v2  ;;  %2798 = vmatmul.bf16.gmra.mxu2 %v2464_v17  ;;  %2847 = vmatmul.bf16.gmra.mxu3 %v2465_v47  ;;  %v4225_v58 = vor.u32 %v4478_v12, %v4224_v33  ;;  %v2371_v17 = vmul.f32 %v2299_v19, %v2163_v8  ;;  %v2165_v13 = vsub.f32 %v5921_v55, %v6366_v50 }
 0x36f   : > { %v2139_v49 = vsub.f32 %v2107_v10, %v2123_v61  ;;  %v2164_v61 = vsub.f32 %v5918_v60, %v6366_v50  ;;  %v4229_v10 = vor.u32 %v4477_v11, %v4226_v29  ;;  %v2407_v40 = vmul.f32 %v6218_v52, %v2370_v43 }
 0x370   : > { %v2304_v36 = vsub.f32 1.5, %v2303_v28  ;;  %3109 = vmatpush.bf16.msrb.mxu0 %v4225_v58  ;;  %v2124_v19 = vmul.f32 %v6430_v37, %v6430_v37  ;;  %v2408_v58 = vmul.f32 %v6220_v45, %v2371_v17 }
 0x371   : > { %v4725_v30 = vpop.eup %4724  ;;  %v6427_v48 = vadd.f32 1e-05, %v2139_v49  ;;  %3207 = vmatpush.bf16.msrb.mxu2 %v4229_v10 }
 0x372   : > { %v2305_v2 = vmul.f32 %v4723_v32, %v2304_v36  ;;  %v2311_v26 = vmul.f32 %v4725_v30, %v6402_v62  ;;  %vm2317_vm5 = vweird.f32 %v4725_v30  ;;  %v2167_v62 = vsub.f32 %v5935_v34, %v6386_v35 }
 0x373   : > { %4726 = vrsqrt.f32 %v6427_v48  ;;  %vm2318_vm7 = vmor %vm2316_vm6, %vm2317_vm5  ;;  %vm2326_vm9 = vweird.f32 %v6427_v48 }
 0x374   : > { %v2309_v47 = vsel %vm2308_vm4, %v4723_v32, %v2305_v2  ;;  %v2312_v25 = vmul.f32 %v4725_v30, %v2311_v26  ;;  %v2090_v28 = vpop.xlane.xlu2 %2089  ;;  %v1997_v8 = vpop.xlane.xlu1 %1996 }
 0x375   : > { %v2108_v49 = vmul.f32 %v2090_v28, %v5109_v9  ;;  %v2372_v36 = vmul.f32 %v2309_v47, %v2164_v61  ;;  %v2373_v33 = vmul.f32 %v2309_v47, %v2165_v13  ;;  %v6451_v12 = vmul.f32 %v1997_v8, %v5109_v9 }
 0x376   : > { %v2313_v50 = vmul.f32 0.5, %v2312_v25  ;;  %v2093_v11 = vpop.xlane.xlu0 %2092  ;;  %v2444_v61 = vadd.f32 %v6231_v22, %v2407_v40 }
 0x377   : > { %v2140_v32 = vsub.f32 %v2108_v49, %v2124_v19  ;;  %v2409_v29 = vmul.f32 %v6218_v52, %v2372_v36  ;;  %v2410_v43 = vmul.f32 %v6220_v45, %v2373_v33  ;;  %v2109_v26 = vmul.f32 %v2093_v11, %v5109_v9 }
 0x378   : > { %v2314_v2 = vsub.f32 1.5, %v2313_v50  ;;  %v2125_v47 = vmul.f32 %v6451_v12, %v6451_v12  ;;  %v2445_v49 = vadd.f32 %v6238_v7, %v2408_v58  ;;  %v2166_v50 = vsub.f32 %v5932_v63, %v6386_v35  ;;  %v4475_v35 = vld [vmem:[%s6971_s5 + $0x164] sm:$0xf] }
 0x379   : > { %v4727_v13 = vpop.eup %4726  ;;  %v6458_v10 = vadd.f32 1e-05, %v2140_v32  ;;  %v2446_v17 = vadd.f32 %v6231_v22, %v2409_v29  ;;  %v2447_v25 = vadd.f32 %v6238_v7, %v2410_v43  ;;  %v4476_v29 = vld [vmem:[%s6971_s5 + $0x164] sm:$0xf0] }
 0x37a   : > { %v2315_v28 = vmul.f32 %v4725_v30, %v2314_v2  ;;  %v2321_v19 = vmul.f32 %v4727_v13, %v6427_v48  ;;  %v2141_v9 = vsub.f32 %v2109_v26, %v2125_v47  ;;  %vm2327_vm8 = vweird.f32 %v4727_v13  ;;  %v4288_v47 = vld [vmem:[%s6971_s5 + $0x1f0] sm:$0xf] }
 0x37b   : > { %4728 = vrsqrt.f32 %v6458_v10  ;;  %v2466_v40 = vpack.c.bf16 %v2446_v17, %v2444_v61  ;;  %v2467_v33 = vpack.c.bf16 %v2447_v25, %v2445_v49  ;;  %v4218_v61 = vld [vmem:[%s6971_s5 + $0x168] sm:$0xf0]  ;;  %v2168_v25 = vsub.f32 %v5957_v53, %v6405_v54  ;;  %v4493_v49 = vld [vmem:[%s6971_s5 + $0x1f4] sm:$0xf]  ;;  %vm2328_vm10 = vmor %vm2326_vm9, %vm2327_vm8 }
 0x37c   : > { %v2319_v8 = vsel %vm2318_vm7, %v4725_v30, %v2315_v28  ;;  %v2322_v36 = vmul.f32 %v4727_v13, %v2321_v19  ;;  %v6470_v32 = vadd.f32 1e-05, %v2141_v9  ;;  %v4216_v30 = vld [vmem:[%s6971_s5 + $0x160] sm:$0xf]  ;;  %v4221_v28 = vor.u32 %v4475_v35, %v4218_v61  ;;  %v4494_v19 = vld [vmem:[%s6971_s5 + $0x1f4] sm:$0xf0] }
 0x37d   : > { %2705 = vmatmul.bf16.gmra.mxu0 %v2466_v40  ;;  %2754 = vmatmul.bf16.gmra.mxu1 %v2467_v33  ;;  %v2374_v58 = vmul.f32 %v2319_v8, %v2166_v50  ;;  %v2375_v2 = vmul.f32 %v2319_v8, %v2167_v62  ;;  %v4217_v26 = vor.u32 %v4476_v29, %v4216_v30  ;;  %v4290_v9 = vld [vmem:[%s6971_s5 + $0x1f8] sm:$0xf0]  ;;  %v4474_v50 = vld [vmem:[%s6971_s5 + $0x154] sm:$0xf0]  ;;  %v4473_v62 = vld [vmem:[%s6971_s5 + $0x154] sm:$0xf]  ;;  %vm2336_vm13 = vweird.f32 %v6458_v10 }
 0x37e   : > { %v2323_v11 = vmul.f32 0.5, %v2322_v36  ;;  %2803 = vmatmul.bf16.gmra.mxu2 %v2466_v40  ;;  %4730 = vrsqrt.f32 %v6470_v32  ;;  %2852 = vmatmul.bf16.gmra.mxu3 %v2467_v33  ;;  %v4289_v36 = vor.u32 %v4494_v19, %v4288_v47  ;;  %v4208_v33 = vld [vmem:[%s6971_s5 + $0x150] sm:$0xf]  ;;  %v2169_v48 = vsub.f32 %v5960_v57, %v6405_v54  ;;  %v4210_v35 = vld [vmem:[%s6971_s5 + $0x158] sm:$0xf0] }
 0x37f   : > { %3110 = vmatpush.bf16.msrb.mxu0 %v4217_v26  ;;  %3208 = vmatpush.bf16.msrb.mxu2 %v4221_v28  ;;  %v4293_v30 = vor.u32 %v4493_v49, %v4290_v9  ;;  %v4209_v29 = vor.u32 %v4474_v50, %v4208_v33  ;;  %v2412_v54 = vmul.f32 %v6220_v45, %v2375_v2  ;;  %v4491_v28 = vld [vmem:[%s6971_s5 + $0x1e4] sm:$0xf]  ;;  %v4282_v19 = vld [vmem:[%s6971_s5 + $0x1e8] sm:$0xf0]  ;;  %vm2346_vm15 = vweird.f32 %v6470_v32 }
 0x380   : > { %v2324_v43 = vsub.f32 1.5, %v2323_v11  ;;  %v2411_v11 = vmul.f32 %v6218_v52, %v2374_v58  ;;  %3158 = vmatpush.bf16.msrb.mxu1 %v4289_v36  ;;  %v4213_v47 = vor.u32 %v4473_v62, %v4210_v35  ;;  %v4492_v58 = vld [vmem:[%s6971_s5 + $0x1e4] sm:$0xf0]  ;;  %v4471_v33 = vld [vmem:[%s6971_s5 + $0x144] sm:$0xf] }
 0x381   : > { %v6490_v17 = vpop.eup %4728  ;;  %3256 = vmatpush.bf16.msrb.mxu3 %v4293_v30  ;;  %v4472_v36 = vld [vmem:[%s6971_s5 + $0x144] sm:$0xf0] }
 0x382   : > { %v2325_v40 = vmul.f32 %v4727_v13, %v2324_v43  ;;  %v2331_v8 = vmul.f32 %v6490_v17, %v6458_v10  ;;  %v4280_v43 = vld [vmem:[%s6971_s5 + $0x1e0] sm:$0xf]  ;;  %vm2337_vm11 = vweird.f32 %v6490_v17  ;;  %v2172_v10 = vsub.f32 %v6067_v31, %v6451_v12 }
 0x383   : > { %v4281_v2 = vor.u32 %v4492_v58, %v4280_v43  ;;  %3111 = vmatpush.bf16.msrb.mxu0 %v4209_v29  ;;  %3209 = vmatpush.bf16.msrb.mxu2 %v4213_v47  ;;  %v2449_v29 = vadd.f32 %v6238_v7, %v2412_v54  ;;  %v4490_v47 = vld [vmem:[%s6971_s5 + $0x1d4] sm:$0xf0]  ;;  %vm2338_vm14 = vmor %vm2336_vm13, %vm2337_vm11 }
 0x384   : > { %v2329_v26 = vsel %vm2328_vm10, %v4727_v13, %v2325_v40  ;;  %v2332_v61 = vmul.f32 %v6490_v17, %v2331_v8  ;;  %v6536_v49 = vpop.eup %4730  ;;  %v4285_v40 = vor.u32 %v4491_v28, %v4282_v19  ;;  %v4200_v8 = vld [vmem:[%s6971_s5 + $0x140] sm:$0xf] }
 0x385   : > { %v2376_v13 = vmul.f32 %v2329_v26, %v2168_v25  ;;  %v2377_v9 = vmul.f32 %v2329_v26, %v2169_v48  ;;  %v2341_v25 = vmul.f32 %v6536_v49, %v6470_v32  ;;  %v4201_v62 = vor.u32 %v4472_v36, %v4200_v8  ;;  %v4202_v48 = vld [vmem:[%s6971_s5 + $0x148] sm:$0xf0]  ;;  %3159 = vmatpush.bf16.msrb.mxu1 %v4281_v2  ;;  %v4274_v2 = vld [vmem:[%s6971_s5 + $0x1d8] sm:$0xf0]  ;;  %v4184_v32 = vld [vmem:[%s6971_s5 + $0x120] sm:$0xf] }
 0x386   : > { %v2333_v50 = vmul.f32 0.5, %v2332_v61  ;;  %v4205_v43 = vor.u32 %v4471_v33, %v4202_v48  ;;  %v2448_v61 = vadd.f32 %v6231_v22, %v2411_v11  ;;  %3257 = vmatpush.bf16.msrb.mxu3 %v4285_v40  ;;  %vm2347_vm12 = vweird.f32 %v6536_v49 }
 0x387   : > { %v2413_v30 = vmul.f32 %v6218_v52, %v2376_v13  ;;  %v2414_v35 = vmul.f32 %v6220_v45, %v2377_v9  ;;  %v2342_v58 = vmul.f32 %v6536_v49, %v2341_v25  ;;  %v4272_v13 = vld [vmem:[%s6971_s5 + $0x1d0] sm:$0xf]  ;;  %v4489_v9 = vld [vmem:[%s6971_s5 + $0x1d4] sm:$0xf]  ;;  %3112 = vmatpush.bf16.msrb.mxu0 %v4201_v62  ;;  %v4470_v25 = vld [vmem:[%s6971_s5 + $0x134] sm:$0xf0] }
 0x388   : > { %v2334_v26 = vsub.f32 1.5, %v2333_v50  ;;  %v4273_v54 = vor.u32 %v4490_v47, %v4272_v13  ;;  %3210 = vmatpush.bf16.msrb.mxu2 %v4205_v43  ;;  %v4277_v33 = vor.u32 %v4489_v9, %v4274_v2  ;;  %v4192_v50 = vld [vmem:[%s6971_s5 + $0x130] sm:$0xf]  ;;  %v4469_v62 = vld [vmem:[%s6971_s5 + $0x134] sm:$0xf]  ;;  %v2173_v47 = vsub.f32 %v6082_v41, %v6451_v12  ;;  %vm2348_vm0 = vmor %vm2346_vm15, %vm2347_vm12 }
 0x389   : > { %v2450_v28 = vadd.f32 %v6231_v22, %v2413_v30  ;;  %v2451_v19 = vadd.f32 %v6238_v7, %v2414_v35  ;;  %v2343_v11 = vmul.f32 0.5, %v2342_v58  ;;  %v4193_v30 = vor.u32 %v4470_v25, %v4192_v50  ;;  %v4194_v35 = vld [vmem:[%s6971_s5 + $0x138] sm:$0xf0]  ;;  %v4488_v58 = vld [vmem:[%s6971_s5 + $0x1c4] sm:$0xf0] }
 0x38a   : > { %v2335_v40 = vmul.f32 %v6490_v17, %v2334_v26  ;;  %3160 = vmatpush.bf16.msrb.mxu1 %v4273_v54  ;;  %3258 = vmatpush.bf16.msrb.mxu3 %v4277_v33  ;;  %v4197_v43 = vor.u32 %v4469_v62, %v4194_v35  ;;  %v4264_v26 = vld [vmem:[%s6971_s5 + $0x1c0] sm:$0xf]  ;;  %v4467_v2 = vld [vmem:[%s6971_s5 + $0x124] sm:$0xf]  ;;  %v4486_v50 = vld [vmem:[%s6971_s5 + $0x1b4] sm:$0xf0] }
 0x38b   : > { %v2468_v8 = vpack.c.bf16 %v2450_v28, %v2448_v61  ;;  %v2469_v36 = vpack.c.bf16 %v2451_v19, %v2449_v29  ;;  %v2344_v48 = vsub.f32 1.5, %v2343_v11  ;;  %v4487_v61 = vld [vmem:[%s6971_s5 + $0x1c4] sm:$0xf]  ;;  %v4265_v29 = vor.u32 %v4488_v58, %v4264_v26  ;;  %v4266_v19 = vld [vmem:[%s6971_s5 + $0x1c8] sm:$0xf0]  ;;  %3113 = vmatpush.bf16.msrb.mxu0 %v4193_v30 }
 0x38c   : > { %v2339_v13 = vsel %vm2338_vm14, %v6490_v17, %v2335_v40  ;;  %v4269_v9 = vor.u32 %v4487_v61, %v4266_v19  ;;  %v4468_v11 = vld [vmem:[%s6971_s5 + $0x124] sm:$0xf0]  ;;  %v2170_v17 = vsub.f32 %v6017_v42, %v6430_v37  ;;  %3211 = vmatpush.bf16.msrb.mxu2 %v4197_v43  ;;  %v4186_v40 = vld [vmem:[%s6971_s5 + $0x128] sm:$0xf0]  ;;  %v4485_v25 = vld [vmem:[%s6971_s5 + $0x1b4] sm:$0xf] }
 0x38d   : > { %v2345_v28 = vmul.f32 %v6536_v49, %v2344_v48  ;;  %2710 = vmatmul.bf16.gmra.mxu0 %v2468_v8  ;;  %2759 = vmatmul.bf16.gmra.mxu1 %v2469_v36  ;;  %v4185_v12 = vor.u32 %v4468_v11, %v4184_v32  ;;  %v4189_v48 = vor.u32 %v4467_v2, %v4186_v40  ;;  %v4176_v26 = vld [vmem:[%s6971_s5 + $0x110] sm:$0xf]  ;;  %v4466_v58 = vld [vmem:[%s6971_s5 + $0x114] sm:$0xf0]  ;;  %v4465_v61 = vld [vmem:[%s6971_s5 + $0x114] sm:$0xf] }
 0x38e   : > { %2808 = vmatmul.bf16.gmra.mxu2 %v2468_v8  ;;  %2857 = vmatmul.bf16.gmra.mxu3 %v2469_v36  ;;  %v2171_v8 = vsub.f32 %v6020_v46, %v6430_v37  ;;  %v2378_v62 = vmul.f32 %v2339_v13, %v2170_v17  ;;  %v4258_v37 = vld [vmem:[%s6971_s5 + $0x1b8] sm:$0xf0]  ;;  %v4483_v32 = vld [vmem:[%s6971_s5 + $0x1a4] sm:$0xf]  ;;  %v4168_v40 = vld [vmem:[%s6971_s5 + $0x100] sm:$0xf] }
 0x38f   : > { %v2349_v54 = vsel %vm2348_vm0, %v6536_v49, %v2345_v28  ;;  %3161 = vmatpush.bf16.msrb.mxu1 %v4265_v29  ;;  %v4256_v49 = vld [vmem:[%s6971_s5 + $0x1b0] sm:$0xf]  ;;  %3259 = vmatpush.bf16.msrb.mxu3 %v4269_v9  ;;  %v4261_v43 = vor.u32 %v4485_v25, %v4258_v37  ;;  %v4177_v28 = vor.u32 %v4466_v58, %v4176_v26  ;;  %v4178_v29 = vld [vmem:[%s6971_s5 + $0x118] sm:$0xf0]  ;;  %v4484_v9 = vld [vmem:[%s6971_s5 + $0x1a4] sm:$0xf0] }
 0x390   : > { %v2380_v36 = vmul.f32 %v2349_v54, %v2172_v10  ;;  %v2381_v33 = vmul.f32 %v2349_v54, %v2173_v47  ;;  %v4257_v30 = vor.u32 %v4486_v50, %v4256_v49  ;;  %v2379_v35 = vmul.f32 %v2339_v13, %v2171_v8  ;;  %3114 = vmatpush.bf16.msrb.mxu0 %v4185_v12  ;;  %v4248_v47 = vld [vmem:[%s6971_s5 + $0x1a0] sm:$0xf]  ;;  %v4250_v54 = vld [vmem:[%s6971_s5 + $0x1a8] sm:$0xf0]  ;;  %v4464_v8 = vld [vmem:[%s6971_s5 + $0x104] sm:$0xf0] }
 0x391   : > { %3212 = vmatpush.bf16.msrb.mxu2 %v4189_v48  ;;  %v4181_v13 = vor.u32 %v4465_v61, %v4178_v29  ;;  %v2415_v11 = vmul.f32 %v6218_v52, %v2378_v62  ;;  %v4249_v17 = vor.u32 %v4484_v9, %v4248_v47  ;;  %v4253_v2 = vor.u32 %v4483_v32, %v4250_v54  ;;  %v4240_v25 = vld [vmem:[%s6971_s5 + $0x190] sm:$0xf]  ;;  %v4482_v62 = vld [vmem:[%s6971_s5 + $0x194] sm:$0xf0]  ;;  %v4481_v48 = vld [vmem:[%s6971_s5 + $0x194] sm:$0xf] }
 0x392   : > { %v2417_v10 = vmul.f32 %v6218_v52, %v2380_v36  ;;  %v2418_v19 = vmul.f32 %v6220_v45, %v2381_v33  ;;  %v2416_v12 = vmul.f32 %v6220_v45, %v2379_v35  ;;  %v4463_v52 = vld [vmem:[%s6971_s5 + $0x104] sm:$0xf]  ;;  %v4169_v33 = vor.u32 %v4464_v8, %v4168_v40  ;;  %v4170_v45 = vld [vmem:[%s6971_s5 + $0x108] sm:$0xf0]  ;;  %v4242_v35 = vld [vmem:[%s6971_s5 + $0x198] sm:$0xf0] }
 0x393   : > { %3162 = vmatpush.bf16.msrb.mxu1 %v4257_v30  ;;  %3260 = vmatpush.bf16.msrb.mxu3 %v4261_v43  ;;  %v4173_v50 = vor.u32 %v4463_v52, %v4170_v45  ;;  %v2452_v30 = vadd.f32 %v6231_v22, %v2415_v11  ;;  %v4241_v37 = vor.u32 %v4482_v62, %v4240_v25  ;;  %v4234_v29 = vld [vmem:[%s6971_s5 + $0x188] sm:$0xf0] }
 0x394   : > { %v2454_v36 = vadd.f32 %v6231_v22, %v2417_v10  ;;  %3115 = vmatpush.bf16.msrb.mxu0 %v4177_v28  ;;  %v2455_v49 = vadd.f32 %v6238_v7, %v2418_v19  ;;  %v2453_v43 = vadd.f32 %v6238_v7, %v2416_v12  ;;  %v4245_v58 = vor.u32 %v4481_v48, %v4242_v35  ;;  %v4232_v10 = vld [vmem:[%s6971_s5 + $0x180] sm:$0xf]  ;;  %v4480_v22 = vld [vmem:[%s6971_s5 + $0x184] sm:$0xf0]  ;;  %v4479_v28 = vld [vmem:[%s6971_s5 + $0x184] sm:$0xf] }
 0x395   : > { %3213 = vmatpush.bf16.msrb.mxu2 %v4181_v13  ;;  %v4233_v7 = vor.u32 %v4480_v22, %v4232_v10  ;;  %v4237_v19 = vor.u32 %v4479_v28, %v4234_v29  ;;  %v4005_v13 = vld [vmem:[%s6970_s4 + $0x1] ss:$2 sm:$0x3] }
 0x396   : > { %v2470_v26 = vpack.c.bf16 %v2454_v36, %v2452_v30  ;;  %v2471_v61 = vpack.c.bf16 %v2455_v49, %v2453_v43  ;;  %v6710_v32 = vperm.slane %v4005_v13, 0  ;;  %v6713_v12 = vperm.slane %v4005_v13, 1 }
 0x397   : > { %3163 = vmatpush.bf16.msrb.mxu1 %v4249_v17  ;;  %3261 = vmatpush.bf16.msrb.mxu3 %v4253_v2 }
 0x398   : > { %3116 = vmatpush.bf16.msrb.mxu0 %v4169_v33 }
 0x399   : > { %3214 = vmatpush.bf16.msrb.mxu2 %v4173_v50 }
 0x39b   : > { %3164 = vmatpush.bf16.msrb.mxu1 %v4241_v37  ;;  %3262 = vmatpush.bf16.msrb.mxu3 %v4245_v58 }
 0x39d   : > { %2715 = vmatmul.bf16.gmra.mxu0 %v2470_v26  ;;  %2764 = vmatmul.bf16.gmra.mxu1 %v2471_v61 }
 0x39e   : > { %2813 = vmatmul.bf16.gmra.mxu2 %v2470_v26  ;;  %2862 = vmatmul.bf16.gmra.mxu3 %v2471_v61 }
 0x39f   : > { %3165 = vmatpush.bf16.msrb.mxu1 %v4233_v7  ;;  %3263 = vmatpush.bf16.msrb.mxu3 %v4237_v19 }
 0x3aa   : > { %v2681_v47 = vpop.f32.mrf.mxu0  ;;  %v2730_v9 = vpop.f32.mrf.mxu1 }
 0x3ab   : > { %v2682_v11 = vadd.f32 %v2681_v47, %v6710_v32 }
 0x3ad   : > { %v2731_v8 = vadd.f32 %v2730_v9, %v2682_v11 }
 0x3af   : > { %v2868_v45 = vmax.f32 %v2731_v8, 0.0 }
 0x3b1   : > { %v2779_v17 = vpop.f32.mrf.mxu2  ;;  %v2828_v54 = vpop.f32.mrf.mxu3 }
 0x3b2   : > { %v2683_v2 = vpop.f32.mrf.mxu0  ;;  %v2732_v40 = vpop.f32.mrf.mxu1  ;;  %v2780_v33 = vadd.f32 %v2779_v17, %v6713_v12 }
 0x3b3   : > { %v2684_v52 = vadd.f32 %v2683_v2, %v6710_v32 }
 0x3b4   : > { %v2829_v48 = vadd.f32 %v2828_v54, %v2780_v33 }
 0x3b5   : > { %v2733_v36 = vadd.f32 %v2732_v40, %v2684_v52 }
 0x3b6   : > { %v2869_v26 = vmax.f32 %v2829_v48, 0.0 }
 0x3b7   : > { %v2870_v49 = vmax.f32 %v2733_v36, 0.0 }
 0x3b9   : > { %v2900_v50 = vpack.c.bf16 %v2870_v49, %v2868_v45  ;;  %v2781_v25 = vpop.f32.mrf.mxu2  ;;  %v2830_v62 = vpop.f32.mrf.mxu3 }
 0x3ba   : > { %v2782_v30 = vadd.f32 %v2781_v25, %v6713_v12  ;;  %v2686_v37 = vpop.f32.mrf.mxu0  ;;  %v2735_v43 = vpop.f32.mrf.mxu1 }
 0x3bb   : > { %3117 = vmatmul.bf16.vlgmr.msrb.gmra.mxu0 %v2900_v50  ;;  %3215 = vmatmul.bf16.vlgmr.msrb.gmra.mxu2 %v2900_v50  ;;  %v2687_v10 = vadd.f32 %v2686_v37, %v6710_v32 }
 0x3bc   : > { %v2831_v35 = vadd.f32 %v2830_v62, %v2782_v30 }
 0x3bd   : > { %v2736_v29 = vadd.f32 %v2735_v43, %v2687_v10 }
 0x3be   : > { %v2871_v58 = vmax.f32 %v2831_v35, 0.0 }
 0x3bf   : > { %v2872_v11 = vmax.f32 %v2736_v29, 0.0 }
 0x3c0   : > { %v2901_v61 = vpack.c.bf16 %v2871_v58, %v2869_v26 }
 0x3c1   : > { %v2784_v22 = vpop.f32.mrf.mxu2  ;;  %v2833_v28 = vpop.f32.mrf.mxu3 }
 0x3c2   : > { %3166 = vmatmul.bf16.vlgmr.msrb.gmra.mxu1 %v2901_v61  ;;  %3264 = vmatmul.bf16.vlgmr.msrb.gmra.mxu3 %v2901_v61  ;;  %v2688_v7 = vpop.f32.mrf.mxu0  ;;  %v2737_v13 = vpop.f32.mrf.mxu1  ;;  %v2785_v47 = vadd.f32 %v2784_v22, %v6713_v12 }
 0x3c3   : > { %v2689_v19 = vadd.f32 %v2688_v7, %v6710_v32 }
 0x3c4   : > { %v2834_v2 = vadd.f32 %v2833_v28, %v2785_v47 }
 0x3c5   : > { %v2738_v9 = vadd.f32 %v2737_v13, %v2689_v19 }
 0x3c6   : > { %v2873_v49 = vmax.f32 %v2834_v2, 0.0 }
 0x3c7   : > { %v2874_v17 = vmax.f32 %v2738_v9, 0.0 }
 0x3c9   : > { %v2786_v54 = vpop.f32.mrf.mxu2  ;;  %v2835_v8 = vpop.f32.mrf.mxu3  ;;  %v2902_v52 = vpack.c.bf16 %v2874_v17, %v2872_v11 }
 0x3ca   : > { %v2787_v40 = vadd.f32 %v2786_v54, %v6713_v12  ;;  %v2691_v36 = vpop.f32.mrf.mxu0  ;;  %v2740_v45 = vpop.f32.mrf.mxu1 }
 0x3cb   : > { %3122 = vmatmul.bf16.gmra.mxu0 %v2902_v52  ;;  %3220 = vmatmul.bf16.gmra.mxu2 %v2902_v52  ;;  %v2692_v25 = vadd.f32 %v2691_v36, %v6710_v32 }
 0x3cc   : > { %v2836_v33 = vadd.f32 %v2835_v8, %v2787_v40 }
 0x3cd   : > { %v2741_v35 = vadd.f32 %v2740_v45, %v2692_v25 }
 0x3ce   : > { %v2875_v50 = vmax.f32 %v2836_v33, 0.0 }
 0x3cf   : > { %v2876_v10 = vmax.f32 %v2741_v35, 0.0 }
 0x3d0   : > { %v2903_v62 = vpack.c.bf16 %v2875_v50, %v2873_v49 }
 0x3d1   : > { %v2789_v48 = vpop.f32.mrf.mxu2  ;;  %v2838_v30 = vpop.f32.mrf.mxu3 }
 0x3d2   : > { %3171 = vmatmul.bf16.gmra.mxu1 %v2903_v62  ;;  %3269 = vmatmul.bf16.gmra.mxu3 %v2903_v62  ;;  %v2693_v37 = vpop.f32.mrf.mxu0  ;;  %v2742_v26 = vpop.f32.mrf.mxu1  ;;  %v2790_v58 = vadd.f32 %v2789_v48, %v6713_v12 }
 0x3d3   : > { %v2694_v43 = vadd.f32 %v2693_v37, %v6710_v32 }
 0x3d4   : > { %v2839_v7 = vadd.f32 %v2838_v30, %v2790_v58 }
 0x3d5   : > { %v2743_v61 = vadd.f32 %v2742_v26, %v2694_v43 }
 0x3d6   : > { %v2877_v17 = vmax.f32 %v2839_v7, 0.0 }
 0x3d7   : > { %v2878_v22 = vmax.f32 %v2743_v61, 0.0 }
 0x3d9   : > { %v2791_v28 = vpop.f32.mrf.mxu2  ;;  %v2840_v19 = vpop.f32.mrf.mxu3  ;;  %v2904_v13 = vpack.c.bf16 %v2878_v22, %v2876_v10 }
 0x3da   : > { %v2792_v29 = vadd.f32 %v2791_v28, %v6713_v12  ;;  %v2696_v47 = vpop.f32.mrf.mxu0  ;;  %v2745_v11 = vpop.f32.mrf.mxu1 }
 0x3db   : > { %3127 = vmatmul.bf16.gmra.mxu0 %v2904_v13  ;;  %3225 = vmatmul.bf16.gmra.mxu2 %v2904_v13  ;;  %v2697_v2 = vadd.f32 %v2696_v47, %v6710_v32 }
 0x3dc   : > { %v2841_v9 = vadd.f32 %v2840_v19, %v2792_v29 }
 0x3dd   : > { %v2746_v33 = vadd.f32 %v2745_v11, %v2697_v2 }
 0x3de   : > { %v2879_v54 = vmax.f32 %v2841_v9, 0.0 }
 0x3df   : > { %v2880_v62 = vmax.f32 %v2746_v33, 0.0 }
 0x3e0   : > { %v2905_v40 = vpack.c.bf16 %v2879_v54, %v2877_v17 }
 0x3e1   : > { %v2794_v8 = vpop.f32.mrf.mxu2  ;;  %v2843_v52 = vpop.f32.mrf.mxu3 }
 0x3e2   : > { %3176 = vmatmul.bf16.gmra.mxu1 %v2905_v40  ;;  %3274 = vmatmul.bf16.gmra.mxu3 %v2905_v40  ;;  %v2698_v36 = vpop.f32.mrf.mxu0  ;;  %v2747_v49 = vpop.f32.mrf.mxu1  ;;  %v2795_v50 = vadd.f32 %v2794_v8, %v6713_v12 }
 0x3e3   : > { %v2699_v45 = vadd.f32 %v2698_v36, %v6710_v32 }
 0x3e4   : > { %v2844_v37 = vadd.f32 %v2843_v52, %v2795_v50 }
 0x3e5   : > { %v2748_v25 = vadd.f32 %v2747_v49, %v2699_v45 }
 0x3e6   : > { %v2881_v22 = vmax.f32 %v2844_v37, 0.0 }
 0x3e7   : > { %v2882_v48 = vmax.f32 %v2748_v25, 0.0 }
 0x3e9   : > { %v2796_v30 = vpop.f32.mrf.mxu2  ;;  %v2845_v43 = vpop.f32.mrf.mxu3  ;;  %v2906_v26 = vpack.c.bf16 %v2882_v48, %v2880_v62 }
 0x3ea   : > { %v2797_v35 = vadd.f32 %v2796_v30, %v6713_v12  ;;  %v2701_v58 = vpop.f32.mrf.mxu0  ;;  %v2750_v10 = vpop.f32.mrf.mxu1 }
 0x3eb   : > { %3132 = vmatmul.bf16.gmra.mxu0 %v2906_v26  ;;  %3230 = vmatmul.bf16.gmra.mxu2 %v2906_v26  ;;  %v2702_v7 = vadd.f32 %v2701_v58, %v6710_v32 }
 0x3ec   : > { %v2846_v61 = vadd.f32 %v2845_v43, %v2797_v35 }
 0x3ed   : > { %v2751_v9 = vadd.f32 %v2750_v10, %v2702_v7 }
 0x3ee   : > { %v2883_v28 = vmax.f32 %v2846_v61, 0.0 }
 0x3ef   : > { %v2884_v40 = vmax.f32 %v2751_v9, 0.0 }
 0x3f0   : > { %v2907_v29 = vpack.c.bf16 %v2883_v28, %v2881_v22 }
 0x3f1   : > { %v2799_v19 = vpop.f32.mrf.mxu2  ;;  %v2848_v13 = vpop.f32.mrf.mxu3 }
 0x3f2   : > { %3181 = vmatmul.bf16.gmra.mxu1 %v2907_v29  ;;  %3279 = vmatmul.bf16.gmra.mxu3 %v2907_v29  ;;  %v2703_v47 = vpop.f32.mrf.mxu0  ;;  %v2752_v17 = vpop.f32.mrf.mxu1  ;;  %v2800_v54 = vadd.f32 %v2799_v19, %v6713_v12 }
 0x3f3   : > { %v2704_v11 = vadd.f32 %v2703_v47, %v6710_v32 }
 0x3f4   : > { %v2849_v36 = vadd.f32 %v2848_v13, %v2800_v54 }
 0x3f5   : > { %v2753_v2 = vadd.f32 %v2752_v17, %v2704_v11 }
 0x3f6   : > { %v2885_v48 = vmax.f32 %v2849_v36, 0.0 }
 0x3f7   : > { %v2886_v8 = vmax.f32 %v2753_v2, 0.0 }
 0x3f9   : > { %v2801_v52 = vpop.f32.mrf.mxu2  ;;  %v2850_v45 = vpop.f32.mrf.mxu3  ;;  %v2908_v49 = vpack.c.bf16 %v2886_v8, %v2884_v40 }
 0x3fa   : > { %v2802_v33 = vadd.f32 %v2801_v52, %v6713_v12  ;;  %v2706_v50 = vpop.f32.mrf.mxu0  ;;  %v2755_v62 = vpop.f32.mrf.mxu1 }
 0x3fb   : > { %3137 = vmatmul.bf16.gmra.mxu0 %v2908_v49  ;;  %3235 = vmatmul.bf16.gmra.mxu2 %v2908_v49  ;;  %v2707_v37 = vadd.f32 %v2706_v50, %v6710_v32 }
 0x3fc   : > { %v2851_v25 = vadd.f32 %v2850_v45, %v2802_v33 }
 0x3fd   : > { %v2756_v61 = vadd.f32 %v2755_v62, %v2707_v37 }
 0x3fe   : > { %v2887_v30 = vmax.f32 %v2851_v25, 0.0 }
 0x3ff   : > { %v2888_v29 = vmax.f32 %v2756_v61, 0.0 }
 0x400   : > { %v2909_v35 = vpack.c.bf16 %v2887_v30, %v2885_v48 }
 0x401   : > { %v2804_v43 = vpop.f32.mrf.mxu2  ;;  %v2853_v26 = vpop.f32.mrf.mxu3 }
 0x402   : > { %3186 = vmatmul.bf16.gmra.mxu1 %v2909_v35  ;;  %3284 = vmatmul.bf16.gmra.mxu3 %v2909_v35  ;;  %v2708_v58 = vpop.f32.mrf.mxu0  ;;  %v2757_v22 = vpop.f32.mrf.mxu1  ;;  %v2805_v28 = vadd.f32 %v2804_v43, %v6713_v12 }
 0x403   : > { %v2709_v10 = vadd.f32 %v2708_v58, %v6710_v32 }
 0x404   : > { %v2854_v47 = vadd.f32 %v2853_v26, %v2805_v28 }
 0x405   : > { %v2758_v7 = vadd.f32 %v2757_v22, %v2709_v10 }
 0x406   : > { %v2889_v8 = vmax.f32 %v2854_v47, 0.0 }
 0x407   : > { %v2890_v19 = vmax.f32 %v2758_v7, 0.0 }
 0x409   : > { %v2806_v13 = vpop.f32.mrf.mxu2  ;;  %v2910_v9 = vpack.c.bf16 %v2890_v19, %v2888_v29  ;;  %v2855_v17 = vpop.f32.mrf.mxu3 }
 0x40a   : > { %v2807_v11 = vadd.f32 %v2806_v13, %v6713_v12  ;;  %v2711_v54 = vpop.f32.mrf.mxu0  ;;  %v2760_v40 = vpop.f32.mrf.mxu1 }
 0x40b   : > { %3142 = vmatmul.bf16.gmra.mxu0 %v2910_v9  ;;  %3240 = vmatmul.bf16.gmra.mxu2 %v2910_v9  ;;  %v2712_v33 = vadd.f32 %v2711_v54, %v6710_v32 }
 0x40c   : > { %v2856_v2 = vadd.f32 %v2855_v17, %v2807_v11 }
 0x40d   : > { %v2761_v25 = vadd.f32 %v2760_v40, %v2712_v33 }
 0x40e   : > { %v2891_v52 = vmax.f32 %v2856_v2, 0.0 }
 0x40f   : > { %v2892_v35 = vmax.f32 %v2761_v25, 0.0 }
 0x410   : > { %v2911_v36 = vpack.c.bf16 %v2891_v52, %v2889_v8 }
 0x411   : > { %v2809_v45 = vpop.f32.mrf.mxu2  ;;  %v2858_v49 = vpop.f32.mrf.mxu3 }
 0x412   : > { %3191 = vmatmul.bf16.gmra.mxu1 %v2911_v36  ;;  %3289 = vmatmul.bf16.gmra.mxu3 %v2911_v36  ;;  %v2713_v50 = vpop.f32.mrf.mxu0  ;;  %v2762_v48 = vpop.f32.mrf.mxu1  ;;  %v2810_v30 = vadd.f32 %v2809_v45, %v6713_v12 }
 0x413   : > { %v2714_v62 = vadd.f32 %v2713_v50, %v6710_v32 }
 0x414   : > { %v2859_v58 = vadd.f32 %v2858_v49, %v2810_v30 }
 0x415   : > { %v2763_v37 = vadd.f32 %v2762_v48, %v2714_v62 }
 0x416   : > { %v2893_v19 = vmax.f32 %v2859_v58, 0.0 }
 0x417   : > { %v2894_v43 = vmax.f32 %v2763_v37, 0.0 }
 0x419   : > { %v2811_v26 = vpop.f32.mrf.mxu2  ;;  %v2912_v61 = vpack.c.bf16 %v2894_v43, %v2892_v35  ;;  %v2860_v22 = vpop.f32.mrf.mxu3 }
 0x41a   : > { %v2812_v10 = vadd.f32 %v2811_v26, %v6713_v12  ;;  %v2716_v28 = vpop.f32.mrf.mxu0  ;;  %v2765_v29 = vpop.f32.mrf.mxu1 }
 0x41b   : > { %3147 = vmatmul.bf16.gmra.mxu0 %v2912_v61  ;;  %3245 = vmatmul.bf16.gmra.mxu2 %v2912_v61  ;;  %v2717_v9 = vadd.f32 %v2716_v28, %v6710_v32 }
 0x41c   : > { %v2861_v7 = vadd.f32 %v2860_v22, %v2812_v10  ;;  %v4294_v22 = vld [vmem:[%s6972_s6 + $0x1] ss:$2 sm:$0x3] }
 0x41d   : > { %v2766_v2 = vadd.f32 %v2765_v29, %v2717_v9 }
 0x41e   : > { %v2895_v13 = vmax.f32 %v2861_v7, 0.0 }
 0x41f   : > { %v2896_v33 = vmax.f32 %v2766_v2, 0.0 }
 0x420   : > { %v2913_v47 = vpack.c.bf16 %v2895_v13, %v2893_v19  ;;  %v6750_v13 = vperm.slane %v4294_v22, 0 }
 0x421   : > { %v2814_v11 = vpop.f32.mrf.mxu2  ;;  %v2863_v17 = vpop.f32.mrf.mxu3 }
 0x422   : > { %3196 = vmatmul.bf16.gmra.mxu1 %v2913_v47  ;;  %3294 = vmatmul.bf16.gmra.mxu3 %v2913_v47  ;;  %v2718_v54 = vpop.f32.mrf.mxu0  ;;  %v2767_v8 = vpop.f32.mrf.mxu1  ;;  %v2815_v52 = vadd.f32 %v2814_v11, %v6713_v12 }
 0x423   : > { %v2719_v40 = vadd.f32 %v2718_v54, %v6710_v32 }
 0x424   : > { %v2864_v50 = vadd.f32 %v2863_v17, %v2815_v52 }
 0x425   : > { %v2768_v36 = vadd.f32 %v2767_v8, %v2719_v40  ;;  %v6760_v8 = vperm.slane %v4294_v22, 1 }
 0x426   : > { %v2897_v37 = vmax.f32 %v2864_v50, 0.0 }
 0x427   : > { %v2898_v45 = vmax.f32 %v2768_v36, 0.0 }
 0x429   : > { %v2816_v49 = vpop.f32.mrf.mxu2  ;;  %v2914_v25 = vpack.c.bf16 %v2898_v45, %v2896_v33  ;;  %v2865_v48 = vpop.f32.mrf.mxu3 }
 0x42a   : > { %v2817_v62 = vadd.f32 %v2816_v49, %v6713_v12 }
 0x42b   : > { %3152 = vmatmul.bf16.gmra.mxu0 %v2914_v25  ;;  %3250 = vmatmul.bf16.gmra.mxu2 %v2914_v25 }
 0x42c   : > { %v2866_v30 = vadd.f32 %v2865_v48, %v2817_v62 }
 0x42e   : > { %v2899_v35 = vmax.f32 %v2866_v30, 0.0 }
 0x430   : > { %v2915_v43 = vpack.c.bf16 %v2899_v35, %v2897_v37 }
 0x432   : > { %3201 = vmatmul.bf16.gmra.mxu1 %v2915_v43  ;;  %3299 = vmatmul.bf16.gmra.mxu3 %v2915_v43 }
 0x438   : > { %v3118_v32 = vpop.f32.mrf.mxu0 }
 0x43e   : > { %v3216_v26 = vpop.f32.mrf.mxu2 }
 0x43f   : > { %v3167_v58 = vpop.f32.mrf.mxu1 }
 0x440   : > { %v3168_v61 = vadd.f32 %v3167_v58, %v3118_v32  ;;  %v3120_v10 = vpop.f32.mrf.mxu0 }
 0x442   : > { %v3305_v19 = vadd.f32 %v3168_v61, %v5765_v38 }
 0x444   : > { %v6754_v17 = vadd.f32 %v6750_v13, %v3305_v19 }
 0x445   : > { %v3265_v28 = vpop.f32.mrf.mxu3 }
 0x446   : > { %v3266_v12 = vadd.f32 %v3265_v28, %v3216_v26  ;;  %v3218_v7 = vpop.f32.mrf.mxu2  ;;  %7000 = vst [vmem:[#allocation2_spill] sm:$0xff] %v6754_v17 }
 0x447   : > { %v3169_v29 = vpop.f32.mrf.mxu1 }
 0x448   : > { %v3170_v47 = vadd.f32 %v3169_v29, %v3120_v10  ;;  %v3123_v9 = vpop.f32.mrf.mxu0  ;;  %v3306_v40 = vadd.f32 %v3266_v12, %v5769_v0 }
 0x44a   : > { %v3307_v11 = vadd.f32 %v3170_v47, %v5780_v3  ;;  %v6766_v50 = vadd.f32 %v6760_v8, %v3306_v40 }
 0x44c   : > { %v6757_v54 = vadd.f32 %v6750_v13, %v3307_v11  ;;  %7002 = vst [vmem:[#allocation5_spill] sm:$0xff] %v6766_v50 }
 0x44d   : > { %v3267_v2 = vpop.f32.mrf.mxu3 }
 0x44e   : > { %7001 = vst [vmem:[#allocation4_spill] sm:$0xff] %v6757_v54  ;;  %v3268_v52 = vadd.f32 %v3267_v2, %v3218_v7  ;;  %v3221_v33 = vpop.f32.mrf.mxu2 }
 0x44f   : > { %v3172_v36 = vpop.f32.mrf.mxu1 }
 0x450   : > { %v3308_v45 = vadd.f32 %v3268_v52, %v5783_v51  ;;  %v3173_v3 = vadd.f32 %v3172_v36, %v3123_v9  ;;  %v3125_v49 = vpop.f32.mrf.mxu0 }
 0x452   : > { %v6769_v25 = vadd.f32 %v6760_v8, %v3308_v45  ;;  %v3309_v35 = vadd.f32 %v3173_v3, %v5792_v5  ;;  %v7006_v5 = vld [vmem:[#allocation3_spill] sm:$0xff] }
 0x454   : > { %7003 = vst [vmem:[#allocation6_spill] sm:$0xff] %v6769_v25  ;;  %v6776_v26 = vadd.f32 %v6750_v13, %v3309_v35 }
 0x455   : > { %v3270_v62 = vpop.f32.mrf.mxu3 }
 0x456   : > { %v3271_v48 = vadd.f32 %v3270_v62, %v3221_v33  ;;  %v3223_v37 = vpop.f32.mrf.mxu2  ;;  %7004 = vst [vmem:[#allocation7_spill] sm:$0xff] %v6776_v26 }
 0x457   : > { %v3174_v30 = vpop.f32.mrf.mxu1 }
 0x458   : > { %v3175_v43 = vadd.f32 %v3174_v30, %v3125_v49  ;;  %v3128_v32 = vpop.f32.mrf.mxu0  ;;  %v3310_v10 = vadd.f32 %v3271_v48, %v5795_v1 }
 0x45a   : > { %v3311_v51 = vadd.f32 %v3175_v43, %v5806_v14  ;;  %v6786_v14 = vadd.f32 %v6760_v8, %v3310_v10 }
 0x45c   : > { %v6779_v58 = vadd.f32 %v6750_v13, %v3311_v51  ;;  %7007 = vst [vmem:[#allocation3_spill] sm:$0xff] %v6786_v14 }
 0x45d   : > { %v3272_v61 = vpop.f32.mrf.mxu3 }
 0x45e   : > { %7005 = vst [vmem:[#allocation8_spill] sm:$0xff] %v6779_v58  ;;  %v3273_v22 = vadd.f32 %v3272_v61, %v3223_v37  ;;  %v3226_v7 = vpop.f32.mrf.mxu2 }
 0x45f   : > { %v3177_v12 = vpop.f32.mrf.mxu1 }
 0x460   : > { %v3312_v29 = vadd.f32 %v3273_v22, %v7006_v5  ;;  %v3178_v19 = vadd.f32 %v3177_v12, %v3128_v32  ;;  %v3130_v47 = vpop.f32.mrf.mxu0 }
 0x462   : > { %v6789_v9 = vadd.f32 %v6760_v8, %v3312_v29  ;;  %v3313_v36 = vadd.f32 %v3178_v19, %v5820_v15 }
 0x464   : > { %7008 = vst [vmem:[#allocation9_spill] sm:$0xff] %v6789_v9  ;;  %v6796_v49 = vadd.f32 %v6750_v13, %v3313_v36 }
 0x465   : > { %v3275_v1 = vpop.f32.mrf.mxu3 }
 0x466   : > { %v3276_v2 = vadd.f32 %v3275_v1, %v3226_v7  ;;  %v3228_v52 = vpop.f32.mrf.mxu2 }
 0x467   : > { %v3179_v40 = vpop.f32.mrf.mxu1 }
 0x468   : > { %v3180_v33 = vadd.f32 %v3179_v40, %v3130_v47  ;;  %v3133_v45 = vpop.f32.mrf.mxu0  ;;  %v3314_v30 = vadd.f32 %v3276_v2, %v5823_v21 }
 0x46a   : > { %v3315_v3 = vadd.f32 %v3180_v33, %v5834_v16  ;;  %v6806_v16 = vadd.f32 %v6760_v8, %v3314_v30 }
 0x46c   : > { %v6799_v62 = vadd.f32 %v6750_v13, %v3315_v3  ;;  %7009 = vst [vmem:[#allocation10_spill] sm:$0xff] %v6806_v16 }
 0x46d   : > { %v3277_v48 = vpop.f32.mrf.mxu3 }
 0x46e   : > { %v3278_v37 = vadd.f32 %v3277_v48, %v3228_v52  ;;  %v3231_v32 = vpop.f32.mrf.mxu2 }
 0x46f   : > { %v3182_v43 = vpop.f32.mrf.mxu1 }
 0x470   : > { %v3316_v15 = vadd.f32 %v3278_v37, %v5837_v23  ;;  %v3183_v51 = vadd.f32 %v3182_v43, %v3133_v45  ;;  %v3135_v61 = vpop.f32.mrf.mxu0 }
 0x472   : > { %v6809_v10 = vadd.f32 %v6760_v8, %v3316_v15  ;;  %v3317_v29 = vadd.f32 %v3183_v51, %v5848_v24 }
 0x474   : > { %7010 = vst [vmem:[#allocation11_spill] sm:$0xff] %v6809_v10  ;;  %v6816_v1 = vadd.f32 %v6750_v13, %v3317_v29 }
 0x475   : > { %v3280_v21 = vpop.f32.mrf.mxu3 }
 0x476   : > { %v3281_v12 = vadd.f32 %v3280_v21, %v3231_v32  ;;  %v3233_v5 = vpop.f32.mrf.mxu2 }
 0x477   : > { %v3184_v7 = vpop.f32.mrf.mxu1 }
 0x478   : > { %v3185_v19 = vadd.f32 %v3184_v7, %v3135_v61  ;;  %v3138_v47 = vpop.f32.mrf.mxu0  ;;  %v3318_v52 = vadd.f32 %v3281_v12, %v5851_v44 }
 0x47a   : > { %v3319_v23 = vadd.f32 %v3185_v19, %v5862_v27  ;;  %v6828_v30 = vadd.f32 %v6760_v8, %v3318_v52 }
 0x47c   : > { %v6819_v2 = vadd.f32 %v6750_v13, %v3319_v23 }
 0x47d   : > { %v3282_v40 = vpop.f32.mrf.mxu3 }
 0x47e   : > { %v3283_v36 = vadd.f32 %v3282_v40, %v3233_v5  ;;  %v3236_v3 = vpop.f32.mrf.mxu2 }
 0x47f   : > { %v3187_v45 = vpop.f32.mrf.mxu1 }
 0x480   : > { %v3320_v24 = vadd.f32 %v3283_v36, %v5865_v18  ;;  %v6825_v48 = vadd.f32 %v3187_v45, %v3138_v47  ;;  %v3140_v27 = vpop.f32.mrf.mxu0 }
 0x482   : > { %v6831_v37 = vadd.f32 %v6760_v8, %v3320_v24 }
 0x485   : > { %v3285_v43 = vpop.f32.mrf.mxu3 }
 0x486   : > { %v6835_v32 = vadd.f32 %v3285_v43, %v3236_v3  ;;  %v3238_v51 = vpop.f32.mrf.mxu2 }
 0x487   : > { %v3189_v15 = vpop.f32.mrf.mxu1 }
 0x488   : > { %v3143_v61 = vpop.f32.mrf.mxu0 }
 0x48d   : > { %v3287_v21 = vpop.f32.mrf.mxu3 }
 0x48e   : > { %v3241_v12 = vpop.f32.mrf.mxu2 }
 0x48f   : > { %v3192_v18 = vpop.f32.mrf.mxu1 }
 0x490   : > { %v3145_v7 = vpop.f32.mrf.mxu0  ;;  %v3193_v10 = vadd.f32 %v3192_v18, %v3143_v61  ;;  %v4502_v18 = vld [vmem:[%s6975_s9 + $0x30] sm:$0xff] }
 0x495   : > { %v3290_v5 = vpop.f32.mrf.mxu3 }
 0x496   : > { %v3243_v19 = vpop.f32.mrf.mxu2 }
 0x497   : > { %v3194_v29 = vpop.f32.mrf.mxu1 }
 0x498   : > { %v3148_v47 = vpop.f32.mrf.mxu0  ;;  %v3195_v9 = vadd.f32 %v3194_v29, %v3145_v7 }
 0x49d   : > { %v3292_v23 = vpop.f32.mrf.mxu3 }
 0x49e   : > { %v3246_v52 = vpop.f32.mrf.mxu2 }
 0x49f   : > { %v3197_v40 = vpop.f32.mrf.mxu1 }
 0x4a0   : > { %v3150_v36 = vpop.f32.mrf.mxu0  ;;  %v3198_v50 = vadd.f32 %v3197_v40, %v3148_v47  ;;  %v3327_v47 = vadd.f32 %v3195_v9, %v5918_v60 }
 0x4a2   : > { %v3329_v26 = vadd.f32 %v3198_v50, %v5932_v63  ;;  %v3293_v63 = vadd.f32 %v3292_v23, %v3243_v19  ;;  %v3366_v9 = vadd.f32 %v6750_v13, %v3327_v47  ;;  %v4501_v19 = vld [vmem:[%s6975_s9 + $0x28] sm:$0xff]  ;;  %v7018_v47 = vld [vmem:[#allocation10_spill] sm:$0xff] }
 0x4a3   : > { %v4509_v23 = vld [vmem:[%s6975_s9 + $0x68] sm:$0xff] }
 0x4a4   : > { %v3368_v50 = vadd.f32 %v6750_v13, %v3329_v26  ;;  %v3321_v26 = vadd.f32 %v6825_v48, %v5876_v59  ;;  %v4503_v59 = vld [vmem:[%s6975_s9 + $0x38] sm:$0xff] }
 0x4a5   : > { %v3295_v45 = vpop.f32.mrf.mxu3  ;;  %3574 = vmatpush.bf16.msra.mxu2 %v4503_v59 }
 0x4a6   : > { %v3248_v0 = vpop.f32.mrf.mxu2  ;;  %v3296_v40 = vadd.f32 %v3295_v45, %v3246_v52  ;;  %v4500_v45 = vld [vmem:[%s6975_s9 + $0x20] sm:$0xff] }
 0x4a7   : > { %v3199_v24 = vpop.f32.mrf.mxu1 }
 0x4a8   : > { %v3153_v3 = vpop.f32.mrf.mxu0  ;;  %v3200_v44 = vadd.f32 %v3199_v24, %v3150_v36  ;;  %v3190_v24 = vadd.f32 %v3189_v15, %v3140_v27  ;;  %v4511_v15 = vld [vmem:[%s6975_s9 + $0x78] sm:$0xff] }
 0x4a9   : > { %3588 = vmatpush.bf16.msra.mxu3 %v4511_v15  ;;  %3575 = vmatpush.bf16.msra.mxu2 %v4502_v18 }
 0x4aa   : > { %v3331_v17 = vadd.f32 %v3200_v44, %v5957_v53  ;;  %v3323_v60 = vadd.f32 %v3190_v24, %v5890_v20  ;;  %v4745_v44 = vmov 0   ;;  %v7017_v24 = vld [vmem:[#allocation11_spill] sm:$0xff] }
 0x4ab   : > { %4662 = vset.pattern.permute.xlu1 %v4745_v44  ;;  %4663 = vset.pattern.permute.xlu2 %v4745_v44 }
 0x4ac   : > { %4664 = vset.pattern.permute.xlu0 %v4745_v44 }
 0x4ad   : > { %v3297_v43 = vpop.f32.mrf.mxu3  ;;  %3576 = vmatpush.bf16.msra.mxu2 %v4501_v19 }
 0x4ae   : > { %v3251_v38 = vpop.f32.mrf.mxu2  ;;  %v3298_v58 = vadd.f32 %v3297_v43, %v3248_v0  ;;  %v7014_v43 = vld [vmem:[#allocation8_spill] sm:$0xff] }
 0x4af   : > { %v3202_v11 = vpop.f32.mrf.mxu1 }
 0x4b0   : > { %v3203_v22 = vadd.f32 %v3202_v11, %v3153_v3  ;;  %v3155_v35 = vpop.f32.mrf.mxu0  ;;  %v4508_v3 = vld [vmem:[%s6975_s9 + $0x60] sm:$0xff] }
 0x4b1   : > { %3577 = vmatpush.bf16.msra.mxu2 %v4500_v45 }
 0x4b2   : > { %v3333_v25 = vadd.f32 %v3203_v22, %v6017_v42  ;;  %v3370_v22 = vadd.f32 %v6750_v13, %v3331_v17  ;;  %v3330_v17 = vadd.f32 %v3296_v40, %v5935_v34  ;;  %v3394_v34 = vld [vmem:[%s6974_s8] sm:$0xff]  ;;  %v7019_v40 = vpack.c.bf16 %v7017_v24, %v7018_v47 }
 0x4b3   : > { %3398 = vperm.xlu1 %4662, %v3394_v34  }
 0x4b4   : > { %v3372_v11 = vadd.f32 %v6750_v13, %v3333_v25  ;;  %v3332_v25 = vadd.f32 %v3298_v58, %v5960_v57  ;;  %v3369_v48 = vadd.f32 %v6760_v8, %v3330_v17 }
 0x4b5   : > { %v3300_v28 = vpop.f32.mrf.mxu3 }
 0x4b6   : > { %v3301_v54 = vadd.f32 %v3300_v28, %v3251_v38  ;;  %v3253_v42 = vpop.f32.mrf.mxu2  ;;  %v3325_v28 = vadd.f32 %v3193_v10, %v5904_v39  ;;  %v3390_v39 = vpack.c.bf16 %v3370_v22, %v3368_v50  ;;  %v3371_v20 = vadd.f32 %v6760_v8, %v3332_v25  ;;  %v7023_v22 = vld [vmem:[#allocation9_spill] sm:$0xff]  ;;  %v4497_v50 = vld [vmem:[%s6975_s9 + $0x8] sm:$0xff]  ;;  %v4506_v25 = vld [vmem:[%s6975_s9 + $0x50] sm:$0xff] }
 0x4b7   : > { %v3204_v33 = vpop.f32.mrf.mxu1  ;;  %v3362_v10 = vadd.f32 %v6750_v13, %v3323_v60  ;;  %v4496_v60 = vld [vmem:[%s6975_s9] sm:$0xff] }
 0x4b8   : > { %v3205_v14 = vadd.f32 %v3204_v33, %v3155_v35  ;;  %v3334_v53 = vadd.f32 %v3301_v54, %v6020_v46  ;;  %v3364_v57 = vadd.f32 %v6750_v13, %v3325_v28  ;;  %v3395_v33 = vld [vmem:[%s6974_s8 + $0x8] sm:$0xff]  ;;  %v4507_v28 = vld [vmem:[%s6975_s9 + $0x58] sm:$0xff] }
 0x4b9   : > { %3403 = vperm.xlu2 %4663, %v3395_v33   ;;  %v4665_v33 = vld [vmem:[%s6976_s10] ss:$0 sm:$0xff] }
 0x4ba   : > { %v3335_v16 = vadd.f32 %v3205_v14, %v6067_v31  ;;  %v3291_v14 = vadd.f32 %v3290_v5, %v3241_v12  ;;  %v3373_v46 = vadd.f32 %v6760_v8, %v3334_v53  ;;  %v3388_v27 = vpack.c.bf16 %v3366_v9, %v3364_v57  ;;  %v4510_v12 = vld [vmem:[%s6975_s9 + $0x70] sm:$0xff]  ;;  %v7026_v53 = vld [vmem:[#allocation6_spill] sm:$0xff] }
 0x4bb   : > { %3589 = vmatpush.bf16.msra.mxu3 %v4510_v12 }
 0x4bc   : > { %v3374_v36 = vadd.f32 %v6750_v13, %v3335_v16  ;;  %v3288_v16 = vadd.f32 %v3287_v21, %v3238_v51  ;;  %v3360_v51 = vadd.f32 %v6750_v13, %v3321_v26  ;;  %v3322_v13 = vadd.f32 %v6835_v32, %v5879_v56 }
 0x4bd   : > { %v3302_v35 = vpop.f32.mrf.mxu3  ;;  %v7011_v32 = vpack.c.bf16 %v6819_v2, %v6816_v1  ;;  %v4499_v1 = vld [vmem:[%s6975_s9 + $0x18] sm:$0xff]  ;;  %v7013_v2 = vpack.c.bf16 %v6831_v37, %v6828_v30  ;;  %v7024_v30 = vld [vmem:[#allocation3_spill] sm:$0xff] }
 0x4be   : > { %v3392_v38 = vpack.c.bf16 %v3374_v36, %v3372_v11  ;;  %v3303_v31 = vadd.f32 %v3302_v35, %v3253_v42  ;;  %v3324_v61 = vadd.f32 %v3288_v16, %v5893_v4  ;;  %v3386_v7 = vpack.c.bf16 %v3362_v10, %v3360_v51  ;;  %v7015_v11 = vld [vmem:[#allocation7_spill] sm:$0xff]  ;;  %3578 = vmatpush.bf16.msra.mxu2 %v4499_v1  ;;  %v7021_v42 = vld [vmem:[#allocation2_spill] sm:$0xff] }
 0x4bf   : > { %v3361_v56 = vadd.f32 %v6760_v8, %v3322_v13  ;;  %3590 = vmatpush.bf16.msra.mxu3 %v4509_v23  ;;  %v7016_v36 = vpack.c.bf16 %v7014_v43, %v7015_v11  ;;  %v7025_v37 = vpack.c.bf16 %v7023_v22, %v7024_v30 }
 0x4c0   : > { %v3336_v0 = vadd.f32 %v3303_v31, %v6082_v41  ;;  %3412 = vmatpush.bf16.msra.mxu0 %v3392_v38  ;;  %v3328_v41 = vadd.f32 %v3293_v63, %v5921_v55  ;;  %v3326_v55 = vadd.f32 %v3291_v14, %v5907_v6  ;;  %v3391_v6 = vpack.c.bf16 %v3371_v20, %v3369_v48  ;;  %v7027_v38 = vld [vmem:[#allocation5_spill] sm:$0xff]  ;;  %v4498_v63 = vld [vmem:[%s6975_s9 + $0x10] sm:$0xff]  ;;  %v4504_v14 = vld [vmem:[%s6975_s9 + $0x40] sm:$0xff] }
 0x4c1   : > { %v3363_v5 = vadd.f32 %v6760_v8, %v3324_v61  ;;  %v7028_v31 = vpack.c.bf16 %v7026_v53, %v7027_v38 }
 0x4c2   : > { %v3375_v54 = vadd.f32 %v6760_v8, %v3336_v0  ;;  %v3367_v21 = vadd.f32 %v6760_v8, %v3328_v41  ;;  %v3365_v4 = vadd.f32 %v6760_v8, %v3326_v55  ;;  %v7012_v8 = vpack.c.bf16 %v6799_v62, %v6796_v49  ;;  %v4495_v49 = vld [vmem:[%s6973_s7] sm:$0xff]  ;;  %v7020_v62 = vld [vmem:[#allocation4_spill] sm:$0xff]  ;;  %3579 = vmatpush.bf16.msra.mxu2 %v4498_v63  ;;  %v4505_v0 = vld [vmem:[%s6975_s9 + $0x48] sm:$0xff] }
 0x4c3   : > { %v3387_v52 = vpack.c.bf16 %v3363_v5, %v3361_v56  ;;  %3591 = vmatpush.bf16.msra.mxu3 %v4508_v3  ;;  %v7022_v35 = vpack.c.bf16 %v7020_v62, %v7021_v42 }
 0x4c4   : > { %v3393_v58 = vpack.c.bf16 %v3375_v54, %v3373_v46  ;;  %3413 = vmatpush.bf16.msra.mxu0 %v3390_v39  ;;  %v3389_v29 = vpack.c.bf16 %v3367_v21, %v3365_v4 }
 0x4c6   : > { %3426 = vmatpush.bf16.msra.mxu1 %v3393_v58  ;;  %3580 = vmatpush.bf16.msra.mxu2 %v4497_v50 }
 0x4c7   : > { %3592 = vmatpush.bf16.msra.mxu3 %v4507_v28 }
 0x4c8   : > { %3414 = vmatpush.bf16.msra.mxu0 %v3388_v27 }
 0x4ca   : > { %3427 = vmatpush.bf16.msra.mxu1 %v3391_v6  ;;  %3581 = vmatpush.bf16.msra.mxu2 %v4496_v60 }
 0x4cb   : > { %3593 = vmatpush.bf16.msra.mxu3 %v4506_v25 }
 0x4cc   : > { %3415 = vmatpush.bf16.msra.mxu0 %v3386_v7 }
 0x4ce   : > { %3428 = vmatpush.bf16.msra.mxu1 %v3389_v29 }
 0x4cf   : > { %3594 = vmatpush.bf16.msra.mxu3 %v4505_v0 }
 0x4d0   : > { %3416 = vmatpush.bf16.msra.mxu0 %v7011_v32 }
 0x4d2   : > { %3429 = vmatpush.bf16.msra.mxu1 %v3387_v52 }
 0x4d3   : > { %3595 = vmatpush.bf16.msra.mxu3 %v4504_v14 }
 0x4d4   : > { %3417 = vmatpush.bf16.msra.mxu0 %v7012_v8 }
 0x4d6   : > { %3430 = vmatpush.bf16.msra.mxu1 %v7013_v2 }
 0x4d8   : > { %3418 = vmatpush.bf16.msra.mxu0 %v7016_v36 }
 0x4da   : > { %3431 = vmatpush.bf16.msra.mxu1 %v7019_v40 }
 0x4dc   : > { %3419 = vmatpush.bf16.msra.mxu0 %v7022_v35 }
 0x4de   : > { %3432 = vmatpush.bf16.msra.mxu1 %v7025_v37 }
 0x4df   : > { %3420 = vmatmul.bf16.vlgmr.msra.gmra.mxu0 %v4495_v49 }
 0x4e2   : > { %3433 = vmatpush.bf16.msra.mxu1 %v7028_v31 }
 0x4e5   : > { %3434 = vmatmul.bf16.vlgmr.msra.gmra.mxu1 %v4495_v49 }
 0x513   : > { %v3404_v54 = vpop.permute.xlu2 %3403 }
 0x525   : > { %v3399_v17 = vpop.permute.xlu1 %3398 }
 0x55c   : > { %v3421_v9 = vpop.f32.mrf.mxu0 }
 0x55d   : > { %v3422_v16 = vadd.f32 %v3421_v9, %v3399_v17 }
 0x562   : > { %v3435_v46 = vpop.f32.mrf.mxu1 }
 0x563   : > { %v3436_v20 = vadd.f32 %v3435_v46, %v3399_v17 }
 0x564   : > { %v3423_v39 = vpop.f32.mrf.mxu0 }
 0x565   : > { %v3424_v26 = vadd.f32 %v3423_v39, %v3404_v54 }
 0x567   : > { %v3440_v57 = vpack.c.bf16 %v3424_v26, %v3422_v16 }
 0x569   : > { %3582 = vmatmul.bf16.vlgmr.msra.gmra.mxu2 %v3440_v57 }
 0x56a   : > { %v3437_v41 = vpop.f32.mrf.mxu1 }
 0x56b   : > { %v3438_v58 = vadd.f32 %v3437_v41, %v3404_v54 }
 0x56d   : > { %v3441_v10 = vpack.c.bf16 %v3438_v58, %v3436_v20 }
 0x56f   : > { %3596 = vmatmul.bf16.vlgmr.msra.gmra.mxu3 %v3441_v10 }
 0x5ec   : > { %v3583_v34 = vpop.f32.mrf.mxu2 }
 0x5ed   : > { %v3584_v55 = vadd.f32 %v4665_v33, %v3583_v34 }
 0x5f2   : > { %v3597_v59 = vpop.f32.mrf.mxu3 }
 0x5f3   : > { %v3598_v27 = vadd.f32 %v3597_v59, %v3584_v55 }
 0x5f4   : > { %v3585_v48 = vpop.f32.mrf.mxu2 }
 0x5f5   : > { %v3586_v44 = vadd.f32 %v4665_v33, %v3585_v48  ;;  %v3602_v51 = vmul.f32 %v3598_v27, %v3598_v27 }
 0x5f7   : > { %v3605_v6 = vsel %vm3604_vm1, %v3602_v51, 0.0 }
 0x5fa   : > { %v3599_v15 = vpop.f32.mrf.mxu3 }
 0x5fb   : > { %v3600_v61 = vadd.f32 %v3599_v15, %v3586_v44 }
 0x5fd   : > { %v3603_v21 = vmul.f32 %v3600_v61, %v3600_v61 }
 0x5ff   : > { %v3606_v18 = vsel %vm3604_vm1, %v3603_v21, 0.0 }
 0x600   : > { %v3607_v12 = vadd.f32 %v3606_v18, %v3605_v6 }
 0x602   : > { %3608 = vadd.xlane.f32.xlu0 %v3607_v12 }
 0x675   : > { %v3609_v13 = vpop.xlane.xlu0 %3608 }
 0x676   : > { %v3610_v4 = vrot.slane %v3609_v13, 4 }
 0x678   : > { %v3611_v7 = vadd.f32 %v3610_v4, %v3609_v13 }
 0x67a   : > { %v3612_v5 = vrot.slane %v3611_v7, 2 }
 0x67c   : > { %v3613_v29 = vadd.f32 %v3612_v5, %v3611_v7 }
 0x67e   : > { %v3614_v19 = vrot.slane %v3613_v29, 1 }
 0x680   : > { %v3615_v23 = vadd.f32 %v3614_v19, %v3613_v29 }
 0x682   : > { %4591 = vpush %v3615_v23 }
 0x6b3   : > { %s4592_s30 = spop %4591 }
 0x6b4   : > { %v3617_v56 = vstv %s4592_s30 }
 0x6b5   : > { %4732 = vrsqrt.f32 %v3617_v56  ;;  %vm3625_vm2 = vcmp.eq.f32.partialorder %v3617_v56, inf  ;;  %v3628_v43 = vand.u32 2147483648, %v3617_v56  ;;  %vm3627_vm3 = vcmp.eq.f32.partialorder %v3617_v56, 0.0 }
 0x6bb   : > { %v4733_v32 = vpop.eup %4732 }
 0x6bc   : > { %v3619_v52 = vmul.f32 %v4733_v32, %v3617_v56 }
 0x6be   : > { %v3620_v45 = vmul.f32 %v4733_v32, %v3619_v52 }
 0x6c0   : > { %v3621_v3 = vmul.f32 0.5, %v3620_v45 }
 0x6c2   : > { %v3622_v8 = vsub.f32 1.5, %v3621_v3 }
 0x6c4   : > { %v3623_v1 = vmul.f32 %v4733_v32, %v3622_v8 }
 0x6c6   : > { %v3624_v2 = vmul.f32 %v3623_v1, %v3617_v56 }
 0x6c8   : > { %v3626_v11 = vsel %vm3625_vm2, %v3617_v56, %v3624_v2 }
 0x6c9   : > { %v3629_v36 = vsel %vm3627_vm3, %v3628_v43, %v3626_v11 }
 0x6ca   : > { %4593 = vpush %v3629_v36 }
 0x6fb   : > { %s4594_s12 = spop %4593 }
 0x6fc   : > { %s3631_s14 = smax.f32 %s4746_s13, %s4594_s12 }
 0x6fd   : > { %v3632_v24 = vstv %s3631_s14 }
 0x6fe   : > { %4734 = vrcp.f32 %v3632_v24  ;;  %v3644_v62 = vand.u32 2147483648, %v3632_v24  ;;  %v3642_v35 = vand.u32 2147483647, %v3632_v24  ;;  %vm3638_vm5 = vweird.f32 %v3632_v24 }
 0x700   : > { %v3645_v30 = vor.u32 1.1754944e-38, %v3644_v62  ;;  %vm3643_vm7 = vcmp.eq.f32.partialorder %v3642_v35, 8.507059e+37 }
 0x704   : > { %v4735_v47 = vpop.eup %4734 }
 0x705   : > { %v3634_v40 = vmul.f32 %v4735_v47, %v3632_v24  ;;  %vm3639_vm4 = vweird.f32 %v4735_v47 }
 0x706   : > { %vm3640_vm6 = vmor %vm3638_vm5, %vm3639_vm4 }
 0x707   : > { %v3635_v49 = vsub.f32 1.0, %v3634_v40 }
 0x709   : > { %v3636_v42 = vmul.f32 %v4735_v47, %v3635_v49 }
 0x70b   : > { %v3637_v22 = vadd.f32 %v4735_v47, %v3636_v42 }
 0x70d   : > { %v3641_v37 = vsel %vm3640_vm6, %v4735_v47, %v3637_v22 }
 0x70e   : > { %v3646_v53 = vsel %vm3643_vm7, %v3645_v30, %v3641_v37 }
 0x70f   : > { %v3647_v38 = vmul.f32 %v3646_v53, %v3598_v27  ;;  %v3648_v31 = vmul.f32 %v3646_v53, %v3600_v61 }
 0x711   : > { %3649 = vst.msk [vmem:[%s386_s20] sm:$0xff] %vm3604_vm1, %v3647_v38 }
 0x712   : > { %3650 = vst.msk [vmem:[%s386_s20 + $0x8] sm:$0xff] %vm3604_vm1, %v3648_v31 }
 0x713 PF: > { %s21_s17 = sadd.s32 1, %s4742_s17  }
 0x714   : > { %p18_p4 = scmp.ge.s32.totalorder %s21_s17, 4  }
 0x716   :  { %20 = sbr.rel (!%p18_p4) target bundleno = 1 (0x1), region = 100 }

</bundles_post_ra>
